<compile_context>
chip_gen: v5e
topology: v5e:2x2
jax: 0.10.0
libtpu: 0.0.40
codegen_flags: <defaults>
</compile_context>

<pallas_src>
import functools
import numpy as np
import jax
import jax.numpy as jnp
from jax.experimental import pallas as pl
from jax.experimental.pallas import tpu as pltpu

HIDDEN = 32
NUM_HEADS = 2
HEAD_DIM = HIDDEN // NUM_HEADS
FFN = 64
NUM_LAYERS = 2
VOCAB = 50
MAX_POS = 32
LN_EPS = 1e-12
NEG_INF = -1e9


# ---------------------------- fused Pallas kernel ----------------------------

def _fused_encoder_kernel(ids_ref, masks_ref,
                          word_emb_ref, pos_ref, emb_g_ref, emb_b_ref,
                          wq_ref, bq_ref, wk_ref, bk_ref, wv_ref, bv_ref,
                          wo_ref, bo_ref,
                          w1_ref, b1_ref, w2_ref, b2_ref,
                          ln1_g_ref, ln1_b_ref, ln2_g_ref, ln2_b_ref,
                          o_ref, *,
                          num_layers, num_heads, head_dim, windows, seq_len,
                          vocab_pad, scale, eps):
    m = windows * seq_len                                         # rows this step

    def layer_norm(v, g, b):
        mu = jnp.mean(v, axis=-1, keepdims=True)
        c = v - mu
        var = jnp.mean(c * c, axis=-1, keepdims=True)
        return c * jax.lax.rsqrt(var + eps) * g + b

    # ---- in-kernel embedding lookup: one-hot matmul on the MXU (no XLA gather) ----
    ids = ids_ref[...]                                            # [M, 1] int32
    iota = jax.lax.broadcasted_iota(jnp.int32, (m, vocab_pad), 1)
    onehot = (ids == iota).astype(jnp.float32)                    # [M, Vp]
    x = jnp.dot(onehot, word_emb_ref[...],
                preferred_element_type=jnp.float32)               # [M, H]
    x = x + pos_ref[...]                                          # pos table (pre-tiled)
    x = layer_norm(x, emb_g_ref[...], emb_b_ref[...])

    # ---- in-kernel additive attention mask ----
    madd = (1.0 - masks_ref[...].astype(jnp.float32)) * NEG_INF   # [W, L]

    for l in range(num_layers):                                   # static unroll
        # ---- multi-head self-attention: heads live on a leading (non-lane) axis ----
        attn = None
        for h in range(num_heads):                                # static unroll
            i = l * num_heads + h
            # per-head projections over ALL windows at once (M rows)
            q = (jnp.dot(x, wq_ref[i], preferred_element_type=jnp.float32)
                 + bq_ref[i]) * scale                             # scale folded into q
            k = jnp.dot(x, wk_ref[i], preferred_element_type=jnp.float32) + bk_ref[i]
            v = jnp.dot(x, wv_ref[i], preferred_element_type=jnp.float32) + bv_ref[i]
            ctx_rows = []
            for w in range(windows):                              # static unroll
                r0 = w * seq_len                                  # sublane-aligned
                qw = q[r0:r0 + seq_len, :]
                kw = k[r0:r0 + seq_len, :]
                vw = v[r0:r0 + seq_len, :]
                # contract over head_dim directly (no explicit K transpose)
                s = jax.lax.dot_general(qw, kw, (((1,), (1,)), ((), ())),
                                        preferred_element_type=jnp.float32)
                s = s + madd[w:w + 1, :]                          # [L, L]
                s = s - jnp.max(s, axis=-1, keepdims=True)
                p = jnp.exp(s)
                p = p * pl.reciprocal(jnp.sum(p, axis=-1, keepdims=True),
                                      approx=True)
                ctx_rows.append(jnp.dot(p, vw,
                                        preferred_element_type=jnp.float32))
            ctx = jnp.concatenate(ctx_rows, axis=0)               # [M, dh] sublane concat
            # per-head accumulation of the output projection (no lane concat)
            contrib = jnp.dot(ctx, wo_ref[i],
                              preferred_element_type=jnp.float32)  # [M, H]
            attn = contrib if attn is None else attn + contrib
        attn = attn + bo_ref[l]
        x1 = layer_norm(attn + x, ln1_g_ref[l], ln1_b_ref[l])

        # ---- FFN (tanh-approx GELU; HF BERT uses erf GELU -> ~1e-3 diff) ----
        h1 = jnp.dot(x1, w1_ref[l], preferred_element_type=jnp.float32) + b1_ref[l]
        h1 = 0.5 * h1 * (1.0 + jnp.tanh(
            0.7978845608028654 * (h1 + 0.044715 * h1 * h1 * h1)))
        ff = jnp.dot(h1, w2_ref[l], preferred_element_type=jnp.float32) + b2_ref[l]
        x = layer_norm(ff + x1, ln2_g_ref[l], ln2_b_ref[l])

    o_ref[...] = x.astype(o_ref.dtype)


@jax.jit
def transformer_encode(params, input_ids, input_masks):
    """Synthetic BERT-style encoder, fused into a single pallas_call."""
    B, L = input_ids.shape
    assert L <= MAX_POS, f"sequence length {L} exceeds MAX_POS={MAX_POS}"
    # 2-way grid keeps v7x megacore parallelism; on v5e/v6e it's a 2-step loop.
    n_steps = 2 if (B > 1 and B % 2 == 0) else 1
    wps = B // n_steps                  # windows per grid step
    m = wps * L                         # activation rows per grid step
    vocab_pad = ((VOCAB + 7) // 8) * 8  # pad table rows to a sublane multiple

    ids_r = input_ids.astype(jnp.int32).reshape(n_steps, m, 1)
    masks_r = input_masks.astype(jnp.int32).reshape(n_steps, wps, L)
    word_emb_pad = jnp.pad(params["word_emb"], ((0, vocab_pad - VOCAB), (0, 0)))
    pos_tiled = jnp.tile(params["pos_emb"][:L], (wps, 1))          # [M, H], tiny

    kernel = functools.partial(
        _fused_encoder_kernel,
        num_layers=NUM_LAYERS, num_heads=NUM_HEADS, head_dim=HEAD_DIM,
        windows=wps, seq_len=L, vocab_pad=vocab_pad,
        scale=1.0 / float(np.sqrt(HEAD_DIM)), eps=LN_EPS)

    weights = [word_emb_pad, pos_tiled,
               params["emb_ln_g"], params["emb_ln_b"],
               params["wq"], params["bq"], params["wk"], params["bk"],
               params["wv"], params["bv"], params["wo"], params["bo"],
               params["w1"], params["b1"], params["w2"], params["b2"],
               params["ln1_g"], params["ln1_b"], params["ln2_g"], params["ln2_b"]]

    def full_spec(arr):                 # resident weights: constant block index
        nd = arr.ndim
        return pl.BlockSpec(arr.shape, lambda s, _nd=nd: (0,) * _nd)

    in_specs = ([pl.BlockSpec((None, m, 1), lambda s: (s, 0, 0)),      # token ids
                 pl.BlockSpec((None, wps, L), lambda s: (s, 0, 0))]    # attn masks
                + [full_spec(w_) for w_ in weights])

    out = pl.pallas_call(
        kernel,
        out_shape=jax.ShapeDtypeStruct((n_steps, m, HIDDEN), jnp.float32),
        grid=(n_steps,),
        in_specs=in_specs,
        out_specs=pl.BlockSpec((None, m, HIDDEN), lambda s: (s, 0, 0)),
        compiler_params=pltpu.CompilerParams(dimension_semantics=("parallel",)),
    )(ids_r, masks_r, *weights)
    return out.reshape(B, L, HIDDEN)


# ---------------------------- parameters ----------------------------

def init_params(key):
    keys = jax.random.split(key, 16)
    it = iter(keys)

    def w(shape):
        return jax.random.normal(next(it), shape, jnp.float32) * 0.02

    nlh = NUM_LAYERS * NUM_HEADS
    params = {
        "word_emb": w((VOCAB, HIDDEN)),
        "pos_emb": w((MAX_POS, HIDDEN)),
        "emb_ln_g": jnp.ones((1, HIDDEN), jnp.float32),
        "emb_ln_b": jnp.zeros((1, HIDDEN), jnp.float32),
        # per-(layer, head) attention weights: heads on a leading axis so the
        # kernel never slices the lane dimension of activations.
        "wq": w((nlh, HIDDEN, HEAD_DIM)),
        "wk": w((nlh, HIDDEN, HEAD_DIM)),
        "wv": w((nlh, HIDDEN, HEAD_DIM)),
        "bq": jnp.zeros((nlh, 1, HEAD_DIM), jnp.float32),
        "bk": jnp.zeros((nlh, 1, HEAD_DIM), jnp.float32),
        "bv": jnp.zeros((nlh, 1, HEAD_DIM), jnp.float32),
        "wo": w((nlh, HEAD_DIM, HIDDEN)),
        "bo": jnp.zeros((NUM_LAYERS, 1, HIDDEN), jnp.float32),
        "w1": w((NUM_LAYERS, HIDDEN, FFN)),
        "b1": jnp.zeros((NUM_LAYERS, 1, FFN), jnp.float32),
        "w2": w((NUM_LAYERS, FFN, HIDDEN)),
        "b2": jnp.zeros((NUM_LAYERS, 1, HIDDEN), jnp.float32),
        "ln1_g": jnp.ones((NUM_LAYERS, 1, HIDDEN), jnp.float32),
        "ln1_b": jnp.zeros((NUM_LAYERS, 1, HIDDEN), jnp.float32),
        "ln2_g": jnp.ones((NUM_LAYERS, 1, HIDDEN), jnp.float32),
        "ln2_b": jnp.zeros((NUM_LAYERS, 1, HIDDEN), jnp.float32),
    }
    return params


# ---------------------------- module forward (glue) ----------------------------

def transformer_encoder_forward(params, input_ids, input_masks, mask_windows_np,
                                num_windows, window_size, is_training,
                                context_lengths=(0,)):
    num_contexts = len(context_lengths)
    features = transformer_encode(params, input_ids, input_masks)   # [B, L, H]
    H = features.shape[-1]
    features = features.reshape(num_contexts, num_windows, -1, H)

    # `flattened_emb[boolean_mask]` produces a dynamic shape; mask_windows is a
    # concrete host array, so we turn it into static gather indices.
    flat_mask = np.asarray(mask_windows_np).reshape(num_windows * window_size) > 0
    sel_idx = np.nonzero(flat_mask)[0]

    outs = []
    for i in range(num_contexts):
        f = features[i]                                             # [num_windows, L, H]
        f = f[:, context_lengths[i]:, :][:, :window_size, :]        # [num_windows, window_size, H]
        flat = f.reshape(num_windows * window_size, H)
        outs.append(flat[sel_idx][None])                            # [1, n_sel, H]
    out = jnp.concatenate(outs, axis=0)
    # transformer_dropout: module is run with is_training=False -> eval mode -> identity
    # TODO(synk): training-mode dropout path not implemented (inference only here).
    return out


# ---------------------------- main ----------------------------

if __name__ == "__main__":
    key = jax.random.PRNGKey(0)
    pkey, ikey = jax.random.split(key, 2)
    params = init_params(pkey)

    num_contexts = 1
    num_windows = 4
    window_size = 8
    seq_len = 16                    # per-window sequence length fed to the transformer
    context_lengths = [0]
    B = num_contexts * num_windows  # transformer batch

    input_ids = jax.random.randint(ikey, (B, seq_len), 0, VOCAB, dtype=jnp.int32)
    input_masks = jnp.ones((B, seq_len), jnp.int32)

    # deterministic window mask: keep first 6 of 8 positions in every window
    mask_windows_np = np.zeros((num_windows, window_size), np.int32)
    mask_windows_np[:, :6] = 1

    out = transformer_encoder_forward(params, input_ids, input_masks,
                                      mask_windows_np, num_windows, window_size,
                                      is_training=False,
                                      context_lengths=context_lengths)
    out = jax.block_until_ready(out)
    assert out.shape == (num_contexts, int(mask_windows_np.sum()), HIDDEN), out.shape
    assert bool(jnp.all(jnp.isfinite(out)))
    print("KERNEL_OK")
</pallas_src>

<mosaic_0001>
module attributes {stable_mosaic.version = 11 : i64} {
  func.func @_fused_encoder_kernel(%arg0: i32, %arg1: memref<1x32x1xi32, #tpu.memory_space<vmem>>, %arg2: memref<1x2x16xi32, #tpu.memory_space<vmem>>, %arg3: memref<56x32xf32, #tpu.memory_space<vmem>>, %arg4: memref<32x32xf32, #tpu.memory_space<vmem>>, %arg5: memref<1x32xf32, #tpu.memory_space<vmem>>, %arg6: memref<1x32xf32, #tpu.memory_space<vmem>>, %arg7: memref<4x32x16xf32, #tpu.memory_space<vmem>>, %arg8: memref<4x1x16xf32, #tpu.memory_space<vmem>>, %arg9: memref<4x32x16xf32, #tpu.memory_space<vmem>>, %arg10: memref<4x1x16xf32, #tpu.memory_space<vmem>>, %arg11: memref<4x32x16xf32, #tpu.memory_space<vmem>>, %arg12: memref<4x1x16xf32, #tpu.memory_space<vmem>>, %arg13: memref<4x16x32xf32, #tpu.memory_space<vmem>>, %arg14: memref<2x1x32xf32, #tpu.memory_space<vmem>>, %arg15: memref<2x32x64xf32, #tpu.memory_space<vmem>>, %arg16: memref<2x1x64xf32, #tpu.memory_space<vmem>>, %arg17: memref<2x64x32xf32, #tpu.memory_space<vmem>>, %arg18: memref<2x1x32xf32, #tpu.memory_space<vmem>>, %arg19: memref<2x1x32xf32, #tpu.memory_space<vmem>>, %arg20: memref<2x1x32xf32, #tpu.memory_space<vmem>>, %arg21: memref<2x1x32xf32, #tpu.memory_space<vmem>>, %arg22: memref<2x1x32xf32, #tpu.memory_space<vmem>>, %arg23: memref<1x32x32xf32, #tpu.memory_space<vmem>>) attributes {dimension_semantics = [#tpu.dimension_semantics<parallel>], iteration_bounds = array<i64: 2>, scalar_prefetch = 0 : i64, scratch_operands = 0 : i64, tpu.core_type = #tpu.core_type<tc>, window_params = [{transform_indices = @transform_0, window_bounds = array<i64: 1, 32, 1>}, {transform_indices = @transform_1, window_bounds = array<i64: 1, 2, 16>}, {pipeline_mode = #tpu.pipeline_mode<synchronous>, transform_indices = @transform_2, window_bounds = array<i64: 56, 32>}, {pipeline_mode = #tpu.pipeline_mode<synchronous>, transform_indices = @transform_3, window_bounds = array<i64: 32, 32>}, {pipeline_mode = #tpu.pipeline_mode<synchronous>, transform_indices = @transform_4, window_bounds = array<i64: 1, 32>}, {pipeline_mode = #tpu.pipeline_mode<synchronous>, transform_indices = @transform_5, window_bounds = array<i64: 1, 32>}, {pipeline_mode = #tpu.pipeline_mode<synchronous>, transform_indices = @transform_6, window_bounds = array<i64: 4, 32, 16>}, {pipeline_mode = #tpu.pipeline_mode<synchronous>, transform_indices = @transform_7, window_bounds = array<i64: 4, 1, 16>}, {pipeline_mode = #tpu.pipeline_mode<synchronous>, transform_indices = @transform_8, window_bounds = array<i64: 4, 32, 16>}, {pipeline_mode = #tpu.pipeline_mode<synchronous>, transform_indices = @transform_9, window_bounds = array<i64: 4, 1, 16>}, {pipeline_mode = #tpu.pipeline_mode<synchronous>, transform_indices = @transform_10, window_bounds = array<i64: 4, 32, 16>}, {pipeline_mode = #tpu.pipeline_mode<synchronous>, transform_indices = @transform_11, window_bounds = array<i64: 4, 1, 16>}, {pipeline_mode = #tpu.pipeline_mode<synchronous>, transform_indices = @transform_12, window_bounds = array<i64: 4, 16, 32>}, {pipeline_mode = #tpu.pipeline_mode<synchronous>, transform_indices = @transform_13, window_bounds = array<i64: 2, 1, 32>}, {pipeline_mode = #tpu.pipeline_mode<synchronous>, transform_indices = @transform_14, window_bounds = array<i64: 2, 32, 64>}, {pipeline_mode = #tpu.pipeline_mode<synchronous>, transform_indices = @transform_15, window_bounds = array<i64: 2, 1, 64>}, {pipeline_mode = #tpu.pipeline_mode<synchronous>, transform_indices = @transform_16, window_bounds = array<i64: 2, 64, 32>}, {pipeline_mode = #tpu.pipeline_mode<synchronous>, transform_indices = @transform_17, window_bounds = array<i64: 2, 1, 32>}, {pipeline_mode = #tpu.pipeline_mode<synchronous>, transform_indices = @transform_18, window_bounds = array<i64: 2, 1, 32>}, {pipeline_mode = #tpu.pipeline_mode<synchronous>, transform_indices = @transform_19, window_bounds = array<i64: 2, 1, 32>}, {pipeline_mode = #tpu.pipeline_mode<synchronous>, transform_indices = @transform_20, window_bounds = array<i64: 2, 1, 32>}, {pipeline_mode = #tpu.pipeline_mode<synchronous>, transform_indices = @transform_21, window_bounds = array<i64: 2, 1, 32>}, {transform_indices = @transform_22, window_bounds = array<i64: 1, 32, 32>}]} {
    %c0 = arith.constant 0 : index
    %c0_0 = arith.constant 0 : index
    %c0_1 = arith.constant 0 : index
    %0 = vector.load %arg1[%c0, %c0_0, %c0_1] : memref<1x32x1xi32, #tpu.memory_space<vmem>>, vector<1x32x1xi32>
    %1 = vector.shape_cast %0 : vector<1x32x1xi32> to vector<32x1xi32>
    %2 = tpu.iota {dimensions = array<i32: 1>} : vector<32x56xi32>
    %3 = vector.broadcast %1 : vector<32x1xi32> to vector<32x56xi32>
    %4 = arith.cmpi eq, %3, %2 : vector<32x56xi32>
    %5 = arith.extui %4 : vector<32x56xi1> to vector<32x56xi32>
    %6 = arith.sitofp %5 : vector<32x56xi32> to vector<32x56xf32>
    %c0_2 = arith.constant 0 : index
    %c0_3 = arith.constant 0 : index
    %7 = vector.load %arg3[%c0_2, %c0_3] : memref<56x32xf32, #tpu.memory_space<vmem>>, vector<56x32xf32>
    %cst = arith.constant dense<0.000000e+00> : vector<32x32xf32>
    %8 = tpu.matmul %6, %7, %cst {dimension_numbers = #tpu.dot_dimension_numbers<[1], [0], [0], [1], [0, 0, 1, 1], [], []>} : vector<32x56xf32>, vector<56x32xf32>, vector<32x32xf32> -> vector<32x32xf32>
    %c0_4 = arith.constant 0 : index
    %c0_5 = arith.constant 0 : index
    %9 = vector.load %arg4[%c0_4, %c0_5] : memref<32x32xf32, #tpu.memory_space<vmem>>, vector<32x32xf32>
    %10 = arith.addf %8, %9 : vector<32x32xf32>
    %c0_6 = arith.constant 0 : index
    %c0_7 = arith.constant 0 : index
    %11 = vector.load %arg5[%c0_6, %c0_7] : memref<1x32xf32, #tpu.memory_space<vmem>>, vector<1x32xf32>
    %c0_8 = arith.constant 0 : index
    %c0_9 = arith.constant 0 : index
    %12 = vector.load %arg6[%c0_8, %c0_9] : memref<1x32xf32, #tpu.memory_space<vmem>>, vector<1x32xf32>
    %cst_10 = arith.constant dense<0.000000e+00> : vector<32xf32>
    %13 = vector.multi_reduction <add>, %10, %cst_10 [1] : vector<32x32xf32> to vector<32xf32>
    %14 = vector.shape_cast %13 : vector<32xf32> to vector<32x1xf32>
    %cst_11 = arith.constant 3.200000e+01 : f32
    %15 = vector.broadcast %cst_11 : f32 to vector<32x1xf32>
    %16 = arith.divf %14, %15 : vector<32x1xf32>
    %17 = vector.broadcast %16 : vector<32x1xf32> to vector<32x32xf32>
    %18 = arith.subf %10, %17 : vector<32x32xf32>
    %19 = arith.mulf %18, %18 : vector<32x32xf32>
    %cst_12 = arith.constant dense<0.000000e+00> : vector<32xf32>
    %20 = vector.multi_reduction <add>, %19, %cst_12 [1] : vector<32x32xf32> to vector<32xf32>
    %21 = vector.shape_cast %20 : vector<32xf32> to vector<32x1xf32>
    %cst_13 = arith.constant 3.200000e+01 : f32
    %22 = vector.broadcast %cst_13 : f32 to vector<32x1xf32>
    %23 = arith.divf %21, %22 : vector<32x1xf32>
    %cst_14 = arith.constant 9.99999996E-13 : f32
    %24 = vector.broadcast %cst_14 : f32 to vector<32x1xf32>
    %25 = arith.addf %23, %24 : vector<32x1xf32>
    %26 = math.rsqrt %25 : vector<32x1xf32>
    %27 = vector.broadcast %26 : vector<32x1xf32> to vector<32x32xf32>
    %28 = arith.mulf %18, %27 : vector<32x32xf32>
    %29 = vector.broadcast %11 : vector<1x32xf32> to vector<32x32xf32>
    %30 = arith.mulf %28, %29 : vector<32x32xf32>
    %31 = vector.broadcast %12 : vector<1x32xf32> to vector<32x32xf32>
    %32 = arith.addf %30, %31 : vector<32x32xf32>
    %c0_15 = arith.constant 0 : index
    %c0_16 = arith.constant 0 : index
    %c0_17 = arith.constant 0 : index
    %33 = vector.load %arg2[%c0_15, %c0_16, %c0_17] : memref<1x2x16xi32, #tpu.memory_space<vmem>>, vector<1x2x16xi32>
    %34 = vector.shape_cast %33 : vector<1x2x16xi32> to vector<2x16xi32>
    %35 = arith.sitofp %34 : vector<2x16xi32> to vector<2x16xf32>
    %cst_18 = arith.constant 1.000000e+00 : f32
    %36 = vector.broadcast %cst_18 : f32 to vector<2x16xf32>
    %37 = arith.subf %36, %35 : vector<2x16xf32>
    %cst_19 = arith.constant -1.000000e+09 : f32
    %38 = vector.broadcast %cst_19 : f32 to vector<2x16xf32>
    %39 = arith.mulf %37, %38 : vector<2x16xf32>
    %c0_20 = arith.constant 0 : index
    %c0_21 = arith.constant 0 : index
    %c0_22 = arith.constant 0 : index
    %40 = vector.load %arg7[%c0_20, %c0_21, %c0_22] : memref<4x32x16xf32, #tpu.memory_space<vmem>>, vector<1x32x16xf32>
    %41 = vector.shape_cast %40 : vector<1x32x16xf32> to vector<32x16xf32>
    %cst_23 = arith.constant dense<0.000000e+00> : vector<32x16xf32>
    %42 = tpu.matmul %32, %41, %cst_23 {dimension_numbers = #tpu.dot_dimension_numbers<[1], [0], [0], [1], [0, 0, 1, 1], [], []>} : vector<32x32xf32>, vector<32x16xf32>, vector<32x16xf32> -> vector<32x16xf32>
    %c0_24 = arith.constant 0 : index
    %c0_25 = arith.constant 0 : index
    %c0_26 = arith.constant 0 : index
    %43 = vector.load %arg8[%c0_24, %c0_25, %c0_26] : memref<4x1x16xf32, #tpu.memory_space<vmem>>, vector<1x1x16xf32>
    %44 = vector.shape_cast %43 : vector<1x1x16xf32> to vector<1x16xf32>
    %45 = vector.broadcast %44 : vector<1x16xf32> to vector<32x16xf32>
    %46 = arith.addf %42, %45 : vector<32x16xf32>
    %cst_27 = arith.constant 2.500000e-01 : f32
    %47 = vector.broadcast %cst_27 : f32 to vector<32x16xf32>
    %48 = arith.mulf %46, %47 : vector<32x16xf32>
    %c0_28 = arith.constant 0 : index
    %c0_29 = arith.constant 0 : index
    %c0_30 = arith.constant 0 : index
    %49 = vector.load %arg9[%c0_28, %c0_29, %c0_30] : memref<4x32x16xf32, #tpu.memory_space<vmem>>, vector<1x32x16xf32>
    %50 = vector.shape_cast %49 : vector<1x32x16xf32> to vector<32x16xf32>
    %cst_31 = arith.constant dense<0.000000e+00> : vector<32x16xf32>
    %51 = tpu.matmul %32, %50, %cst_31 {dimension_numbers = #tpu.dot_dimension_numbers<[1], [0], [0], [1], [0, 0, 1, 1], [], []>} : vector<32x32xf32>, vector<32x16xf32>, vector<32x16xf32> -> vector<32x16xf32>
    %c0_32 = arith.constant 0 : index
    %c0_33 = arith.constant 0 : index
    %c0_34 = arith.constant 0 : index
    %52 = vector.load %arg10[%c0_32, %c0_33, %c0_34] : memref<4x1x16xf32, #tpu.memory_space<vmem>>, vector<1x1x16xf32>
    %53 = vector.shape_cast %52 : vector<1x1x16xf32> to vector<1x16xf32>
    %54 = vector.broadcast %53 : vector<1x16xf32> to vector<32x16xf32>
    %55 = arith.addf %51, %54 : vector<32x16xf32>
    %c0_35 = arith.constant 0 : index
    %c0_36 = arith.constant 0 : index
    %c0_37 = arith.constant 0 : index
    %56 = vector.load %arg11[%c0_35, %c0_36, %c0_37] : memref<4x32x16xf32, #tpu.memory_space<vmem>>, vector<1x32x16xf32>
    %57 = vector.shape_cast %56 : vector<1x32x16xf32> to vector<32x16xf32>
    %cst_38 = arith.constant dense<0.000000e+00> : vector<32x16xf32>
    %58 = tpu.matmul %32, %57, %cst_38 {dimension_numbers = #tpu.dot_dimension_numbers<[1], [0], [0], [1], [0, 0, 1, 1], [], []>} : vector<32x32xf32>, vector<32x16xf32>, vector<32x16xf32> -> vector<32x16xf32>
    %c0_39 = arith.constant 0 : index
    %c0_40 = arith.constant 0 : index
    %c0_41 = arith.constant 0 : index
    %59 = vector.load %arg12[%c0_39, %c0_40, %c0_41] : memref<4x1x16xf32, #tpu.memory_space<vmem>>, vector<1x1x16xf32>
    %60 = vector.shape_cast %59 : vector<1x1x16xf32> to vector<1x16xf32>
    %61 = vector.broadcast %60 : vector<1x16xf32> to vector<32x16xf32>
    %62 = arith.addf %58, %61 : vector<32x16xf32>
    %63 = vector.extract_strided_slice %48 {offsets = [0, 0], sizes = [16, 16], strides = [1, 1]} : vector<32x16xf32> to vector<16x16xf32>
    %64 = vector.extract_strided_slice %55 {offsets = [0, 0], sizes = [16, 16], strides = [1, 1]} : vector<32x16xf32> to vector<16x16xf32>
    %65 = vector.extract_strided_slice %62 {offsets = [0, 0], sizes = [16, 16], strides = [1, 1]} : vector<32x16xf32> to vector<16x16xf32>
    %cst_42 = arith.constant dense<0.000000e+00> : vector<16x16xf32>
    %66 = tpu.matmul %63, %64, %cst_42 {dimension_numbers = #tpu.dot_dimension_numbers<[1], [1], [0], [0], [0, 0, 1, 0], [], []>} : vector<16x16xf32>, vector<16x16xf32>, vector<16x16xf32> -> vector<16x16xf32>
    %67 = vector.extract_strided_slice %39 {offsets = [0, 0], sizes = [1, 16], strides = [1, 1]} : vector<2x16xf32> to vector<1x16xf32>
    %68 = vector.broadcast %67 : vector<1x16xf32> to vector<16x16xf32>
    %69 = arith.addf %66, %68 : vector<16x16xf32>
    %cst_43 = arith.constant dense<0xFF800000> : vector<16xf32>
    %70 = vector.multi_reduction <maximumf>, %69, %cst_43 [1] : vector<16x16xf32> to vector<16xf32>
    %71 = vector.shape_cast %70 : vector<16xf32> to vector<16x1xf32>
    %72 = vector.broadcast %71 : vector<16x1xf32> to vector<16x16xf32>
    %73 = arith.subf %69, %72 : vector<16x16xf32>
    %74 = math.exp %73 : vector<16x16xf32>
    %cst_44 = arith.constant dense<0.000000e+00> : vector<16xf32>
    %75 = vector.multi_reduction <add>, %74, %cst_44 [1] : vector<16x16xf32> to vector<16xf32>
    %76 = vector.shape_cast %75 : vector<16xf32> to vector<16x1xf32>
    %77 = tpu.reciprocal %76 {approx = true} : vector<16x1xf32> -> vector<16x1xf32>
    %78 = vector.broadcast %77 : vector<16x1xf32> to vector<16x16xf32>
    %79 = arith.mulf %74, %78 : vector<16x16xf32>
    %cst_45 = arith.constant dense<0.000000e+00> : vector<16x16xf32>
    %80 = tpu.matmul %79, %65, %cst_45 {dimension_numbers = #tpu.dot_dimension_numbers<[1], [0], [0], [1], [0, 0, 1, 1], [], []>} : vector<16x16xf32>, vector<16x16xf32>, vector<16x16xf32> -> vector<16x16xf32>
    %81 = vector.extract_strided_slice %48 {offsets = [16, 0], sizes = [16, 16], strides = [1, 1]} : vector<32x16xf32> to vector<16x16xf32>
    %82 = vector.extract_strided_slice %55 {offsets = [16, 0], sizes = [16, 16], strides = [1, 1]} : vector<32x16xf32> to vector<16x16xf32>
    %83 = vector.extract_strided_slice %62 {offsets = [16, 0], sizes = [16, 16], strides = [1, 1]} : vector<32x16xf32> to vector<16x16xf32>
    %cst_46 = arith.constant dense<0.000000e+00> : vector<16x16xf32>
    %84 = tpu.matmul %81, %82, %cst_46 {dimension_numbers = #tpu.dot_dimension_numbers<[1], [1], [0], [0], [0, 0, 1, 0], [], []>} : vector<16x16xf32>, vector<16x16xf32>, vector<16x16xf32> -> vector<16x16xf32>
    %85 = vector.extract_strided_slice %39 {offsets = [1, 0], sizes = [1, 16], strides = [1, 1]} : vector<2x16xf32> to vector<1x16xf32>
    %86 = vector.broadcast %85 : vector<1x16xf32> to vector<16x16xf32>
    %87 = arith.addf %84, %86 : vector<16x16xf32>
    %cst_47 = arith.constant dense<0xFF800000> : vector<16xf32>
    %88 = vector.multi_reduction <maximumf>, %87, %cst_47 [1] : vector<16x16xf32> to vector<16xf32>
    %89 = vector.shape_cast %88 : vector<16xf32> to vector<16x1xf32>
    %90 = vector.broadcast %89 : vector<16x1xf32> to vector<16x16xf32>
    %91 = arith.subf %87, %90 : vector<16x16xf32>
    %92 = math.exp %91 : vector<16x16xf32>
    %cst_48 = arith.constant dense<0.000000e+00> : vector<16xf32>
    %93 = vector.multi_reduction <add>, %92, %cst_48 [1] : vector<16x16xf32> to vector<16xf32>
    %94 = vector.shape_cast %93 : vector<16xf32> to vector<16x1xf32>
    %95 = tpu.reciprocal %94 {approx = true} : vector<16x1xf32> -> vector<16x1xf32>
    %96 = vector.broadcast %95 : vector<16x1xf32> to vector<16x16xf32>
    %97 = arith.mulf %92, %96 : vector<16x16xf32>
    %cst_49 = arith.constant dense<0.000000e+00> : vector<16x16xf32>
    %98 = tpu.matmul %97, %83, %cst_49 {dimension_numbers = #tpu.dot_dimension_numbers<[1], [0], [0], [1], [0, 0, 1, 1], [], []>} : vector<16x16xf32>, vector<16x16xf32>, vector<16x16xf32> -> vector<16x16xf32>
    %99 = tpu.concatenate %80, %98 in 0 : vector<16x16xf32>, vector<16x16xf32> -> vector<32x16xf32>
    %c0_50 = arith.constant 0 : index
    %c0_51 = arith.constant 0 : index
    %c0_52 = arith.constant 0 : index
    %100 = vector.load %arg13[%c0_50, %c0_51, %c0_52] : memref<4x16x32xf32, #tpu.memory_space<vmem>>, vector<1x16x32xf32>
    %101 = vector.shape_cast %100 : vector<1x16x32xf32> to vector<16x32xf32>
    %cst_53 = arith.constant dense<0.000000e+00> : vector<32x32xf32>
    %102 = tpu.matmul %99, %101, %cst_53 {dimension_numbers = #tpu.dot_dimension_numbers<[1], [0], [0], [1], [0, 0, 1, 1], [], []>} : vector<32x16xf32>, vector<16x32xf32>, vector<32x32xf32> -> vector<32x32xf32>
    %c1 = arith.constant 1 : index
    %c0_54 = arith.constant 0 : index
    %c0_55 = arith.constant 0 : index
    %103 = vector.load %arg7[%c1, %c0_54, %c0_55] : memref<4x32x16xf32, #tpu.memory_space<vmem>>, vector<1x32x16xf32>
    %104 = vector.shape_cast %103 : vector<1x32x16xf32> to vector<32x16xf32>
    %cst_56 = arith.constant dense<0.000000e+00> : vector<32x16xf32>
    %105 = tpu.matmul %32, %104, %cst_56 {dimension_numbers = #tpu.dot_dimension_numbers<[1], [0], [0], [1], [0, 0, 1, 1], [], []>} : vector<32x32xf32>, vector<32x16xf32>, vector<32x16xf32> -> vector<32x16xf32>
    %c1_57 = arith.constant 1 : index
    %c0_58 = arith.constant 0 : index
    %c0_59 = arith.constant 0 : index
    %106 = vector.load %arg8[%c1_57, %c0_58, %c0_59] : memref<4x1x16xf32, #tpu.memory_space<vmem>>, vector<1x1x16xf32>
    %107 = vector.shape_cast %106 : vector<1x1x16xf32> to vector<1x16xf32>
    %108 = vector.broadcast %107 : vector<1x16xf32> to vector<32x16xf32>
    %109 = arith.addf %105, %108 : vector<32x16xf32>
    %cst_60 = arith.constant 2.500000e-01 : f32
    %110 = vector.broadcast %cst_60 : f32 to vector<32x16xf32>
    %111 = arith.mulf %109, %110 : vector<32x16xf32>
    %c1_61 = arith.constant 1 : index
    %c0_62 = arith.constant 0 : index
    %c0_63 = arith.constant 0 : index
    %112 = vector.load %arg9[%c1_61, %c0_62, %c0_63] : memref<4x32x16xf32, #tpu.memory_space<vmem>>, vector<1x32x16xf32>
    %113 = vector.shape_cast %112 : vector<1x32x16xf32> to vector<32x16xf32>
    %cst_64 = arith.constant dense<0.000000e+00> : vector<32x16xf32>
    %114 = tpu.matmul %32, %113, %cst_64 {dimension_numbers = #tpu.dot_dimension_numbers<[1], [0], [0], [1], [0, 0, 1, 1], [], []>} : vector<32x32xf32>, vector<32x16xf32>, vector<32x16xf32> -> vector<32x16xf32>
    %c1_65 = arith.constant 1 : index
    %c0_66 = arith.constant 0 : index
    %c0_67 = arith.constant 0 : index
    %115 = vector.load %arg10[%c1_65, %c0_66, %c0_67] : memref<4x1x16xf32, #tpu.memory_space<vmem>>, vector<1x1x16xf32>
    %116 = vector.shape_cast %115 : vector<1x1x16xf32> to vector<1x16xf32>
    %117 = vector.broadcast %116 : vector<1x16xf32> to vector<32x16xf32>
    %118 = arith.addf %114, %117 : vector<32x16xf32>
    %c1_68 = arith.constant 1 : index
    %c0_69 = arith.constant 0 : index
    %c0_70 = arith.constant 0 : index
    %119 = vector.load %arg11[%c1_68, %c0_69, %c0_70] : memref<4x32x16xf32, #tpu.memory_space<vmem>>, vector<1x32x16xf32>
    %120 = vector.shape_cast %119 : vector<1x32x16xf32> to vector<32x16xf32>
    %cst_71 = arith.constant dense<0.000000e+00> : vector<32x16xf32>
    %121 = tpu.matmul %32, %120, %cst_71 {dimension_numbers = #tpu.dot_dimension_numbers<[1], [0], [0], [1], [0, 0, 1, 1], [], []>} : vector<32x32xf32>, vector<32x16xf32>, vector<32x16xf32> -> vector<32x16xf32>
    %c1_72 = arith.constant 1 : index
    %c0_73 = arith.constant 0 : index
    %c0_74 = arith.constant 0 : index
    %122 = vector.load %arg12[%c1_72, %c0_73, %c0_74] : memref<4x1x16xf32, #tpu.memory_space<vmem>>, vector<1x1x16xf32>
    %123 = vector.shape_cast %122 : vector<1x1x16xf32> to vector<1x16xf32>
    %124 = vector.broadcast %123 : vector<1x16xf32> to vector<32x16xf32>
    %125 = arith.addf %121, %124 : vector<32x16xf32>
    %126 = vector.extract_strided_slice %111 {offsets = [0, 0], sizes = [16, 16], strides = [1, 1]} : vector<32x16xf32> to vector<16x16xf32>
    %127 = vector.extract_strided_slice %118 {offsets = [0, 0], sizes = [16, 16], strides = [1, 1]} : vector<32x16xf32> to vector<16x16xf32>
    %128 = vector.extract_strided_slice %125 {offsets = [0, 0], sizes = [16, 16], strides = [1, 1]} : vector<32x16xf32> to vector<16x16xf32>
    %cst_75 = arith.constant dense<0.000000e+00> : vector<16x16xf32>
    %129 = tpu.matmul %126, %127, %cst_75 {dimension_numbers = #tpu.dot_dimension_numbers<[1], [1], [0], [0], [0, 0, 1, 0], [], []>} : vector<16x16xf32>, vector<16x16xf32>, vector<16x16xf32> -> vector<16x16xf32>
    %130 = vector.extract_strided_slice %39 {offsets = [0, 0], sizes = [1, 16], strides = [1, 1]} : vector<2x16xf32> to vector<1x16xf32>
    %131 = vector.broadcast %130 : vector<1x16xf32> to vector<16x16xf32>
    %132 = arith.addf %129, %131 : vector<16x16xf32>
    %cst_76 = arith.constant dense<0xFF800000> : vector<16xf32>
    %133 = vector.multi_reduction <maximumf>, %132, %cst_76 [1] : vector<16x16xf32> to vector<16xf32>
    %134 = vector.shape_cast %133 : vector<16xf32> to vector<16x1xf32>
    %135 = vector.broadcast %134 : vector<16x1xf32> to vector<16x16xf32>
    %136 = arith.subf %132, %135 : vector<16x16xf32>
    %137 = math.exp %136 : vector<16x16xf32>
    %cst_77 = arith.constant dense<0.000000e+00> : vector<16xf32>
    %138 = vector.multi_reduction <add>, %137, %cst_77 [1] : vector<16x16xf32> to vector<16xf32>
    %139 = vector.shape_cast %138 : vector<16xf32> to vector<16x1xf32>
    %140 = tpu.reciprocal %139 {approx = true} : vector<16x1xf32> -> vector<16x1xf32>
    %141 = vector.broadcast %140 : vector<16x1xf32> to vector<16x16xf32>
    %142 = arith.mulf %137, %141 : vector<16x16xf32>
    %cst_78 = arith.constant dense<0.000000e+00> : vector<16x16xf32>
    %143 = tpu.matmul %142, %128, %cst_78 {dimension_numbers = #tpu.dot_dimension_numbers<[1], [0], [0], [1], [0, 0, 1, 1], [], []>} : vector<16x16xf32>, vector<16x16xf32>, vector<16x16xf32> -> vector<16x16xf32>
    %144 = vector.extract_strided_slice %111 {offsets = [16, 0], sizes = [16, 16], strides = [1, 1]} : vector<32x16xf32> to vector<16x16xf32>
    %145 = vector.extract_strided_slice %118 {offsets = [16, 0], sizes = [16, 16], strides = [1, 1]} : vector<32x16xf32> to vector<16x16xf32>
    %146 = vector.extract_strided_slice %125 {offsets = [16, 0], sizes = [16, 16], strides = [1, 1]} : vector<32x16xf32> to vector<16x16xf32>
    %cst_79 = arith.constant dense<0.000000e+00> : vector<16x16xf32>
    %147 = tpu.matmul %144, %145, %cst_79 {dimension_numbers = #tpu.dot_dimension_numbers<[1], [1], [0], [0], [0, 0, 1, 0], [], []>} : vector<16x16xf32>, vector<16x16xf32>, vector<16x16xf32> -> vector<16x16xf32>
    %148 = vector.extract_strided_slice %39 {offsets = [1, 0], sizes = [1, 16], strides = [1, 1]} : vector<2x16xf32> to vector<1x16xf32>
    %149 = vector.broadcast %148 : vector<1x16xf32> to vector<16x16xf32>
    %150 = arith.addf %147, %149 : vector<16x16xf32>
    %cst_80 = arith.constant dense<0xFF800000> : vector<16xf32>
    %151 = vector.multi_reduction <maximumf>, %150, %cst_80 [1] : vector<16x16xf32> to vector<16xf32>
    %152 = vector.shape_cast %151 : vector<16xf32> to vector<16x1xf32>
    %153 = vector.broadcast %152 : vector<16x1xf32> to vector<16x16xf32>
    %154 = arith.subf %150, %153 : vector<16x16xf32>
    %155 = math.exp %154 : vector<16x16xf32>
    %cst_81 = arith.constant dense<0.000000e+00> : vector<16xf32>
    %156 = vector.multi_reduction <add>, %155, %cst_81 [1] : vector<16x16xf32> to vector<16xf32>
    %157 = vector.shape_cast %156 : vector<16xf32> to vector<16x1xf32>
    %158 = tpu.reciprocal %157 {approx = true} : vector<16x1xf32> -> vector<16x1xf32>
    %159 = vector.broadcast %158 : vector<16x1xf32> to vector<16x16xf32>
    %160 = arith.mulf %155, %159 : vector<16x16xf32>
    %cst_82 = arith.constant dense<0.000000e+00> : vector<16x16xf32>
    %161 = tpu.matmul %160, %146, %cst_82 {dimension_numbers = #tpu.dot_dimension_numbers<[1], [0], [0], [1], [0, 0, 1, 1], [], []>} : vector<16x16xf32>, vector<16x16xf32>, vector<16x16xf32> -> vector<16x16xf32>
    %162 = tpu.concatenate %143, %161 in 0 : vector<16x16xf32>, vector<16x16xf32> -> vector<32x16xf32>
    %c1_83 = arith.constant 1 : index
    %c0_84 = arith.constant 0 : index
    %c0_85 = arith.constant 0 : index
    %163 = vector.load %arg13[%c1_83, %c0_84, %c0_85] : memref<4x16x32xf32, #tpu.memory_space<vmem>>, vector<1x16x32xf32>
    %164 = vector.shape_cast %163 : vector<1x16x32xf32> to vector<16x32xf32>
    %cst_86 = arith.constant dense<0.000000e+00> : vector<32x32xf32>
    %165 = tpu.matmul %162, %164, %cst_86 {dimension_numbers = #tpu.dot_dimension_numbers<[1], [0], [0], [1], [0, 0, 1, 1], [], []>} : vector<32x16xf32>, vector<16x32xf32>, vector<32x32xf32> -> vector<32x32xf32>
    %166 = arith.addf %102, %165 : vector<32x32xf32>
    %c0_87 = arith.constant 0 : index
    %c0_88 = arith.constant 0 : index
    %c0_89 = arith.constant 0 : index
    %167 = vector.load %arg14[%c0_87, %c0_88, %c0_89] : memref<2x1x32xf32, #tpu.memory_space<vmem>>, vector<1x1x32xf32>
    %168 = vector.shape_cast %167 : vector<1x1x32xf32> to vector<1x32xf32>
    %169 = vector.broadcast %168 : vector<1x32xf32> to vector<32x32xf32>
    %170 = arith.addf %166, %169 : vector<32x32xf32>
    %171 = arith.addf %170, %32 : vector<32x32xf32>
    %c0_90 = arith.constant 0 : index
    %c0_91 = arith.constant 0 : index
    %c0_92 = arith.constant 0 : index
    %172 = vector.load %arg19[%c0_90, %c0_91, %c0_92] : memref<2x1x32xf32, #tpu.memory_space<vmem>>, vector<1x1x32xf32>
    %173 = vector.shape_cast %172 : vector<1x1x32xf32> to vector<1x32xf32>
    %c0_93 = arith.constant 0 : index
    %c0_94 = arith.constant 0 : index
    %c0_95 = arith.constant 0 : index
    %174 = vector.load %arg20[%c0_93, %c0_94, %c0_95] : memref<2x1x32xf32, #tpu.memory_space<vmem>>, vector<1x1x32xf32>
    %175 = vector.shape_cast %174 : vector<1x1x32xf32> to vector<1x32xf32>
    %cst_96 = arith.constant dense<0.000000e+00> : vector<32xf32>
    %176 = vector.multi_reduction <add>, %171, %cst_96 [1] : vector<32x32xf32> to vector<32xf32>
    %177 = vector.shape_cast %176 : vector<32xf32> to vector<32x1xf32>
    %cst_97 = arith.constant 3.200000e+01 : f32
    %178 = vector.broadcast %cst_97 : f32 to vector<32x1xf32>
    %179 = arith.divf %177, %178 : vector<32x1xf32>
    %180 = vector.broadcast %179 : vector<32x1xf32> to vector<32x32xf32>
    %181 = arith.subf %171, %180 : vector<32x32xf32>
    %182 = arith.mulf %181, %181 : vector<32x32xf32>
    %cst_98 = arith.constant dense<0.000000e+00> : vector<32xf32>
    %183 = vector.multi_reduction <add>, %182, %cst_98 [1] : vector<32x32xf32> to vector<32xf32>
    %184 = vector.shape_cast %183 : vector<32xf32> to vector<32x1xf32>
    %cst_99 = arith.constant 3.200000e+01 : f32
    %185 = vector.broadcast %cst_99 : f32 to vector<32x1xf32>
    %186 = arith.divf %184, %185 : vector<32x1xf32>
    %cst_100 = arith.constant 9.99999996E-13 : f32
    %187 = vector.broadcast %cst_100 : f32 to vector<32x1xf32>
    %188 = arith.addf %186, %187 : vector<32x1xf32>
    %189 = math.rsqrt %188 : vector<32x1xf32>
    %190 = vector.broadcast %189 : vector<32x1xf32> to vector<32x32xf32>
    %191 = arith.mulf %181, %190 : vector<32x32xf32>
    %192 = vector.broadcast %173 : vector<1x32xf32> to vector<32x32xf32>
    %193 = arith.mulf %191, %192 : vector<32x32xf32>
    %194 = vector.broadcast %175 : vector<1x32xf32> to vector<32x32xf32>
    %195 = arith.addf %193, %194 : vector<32x32xf32>
    %c0_101 = arith.constant 0 : index
    %c0_102 = arith.constant 0 : index
    %c0_103 = arith.constant 0 : index
    %196 = vector.load %arg15[%c0_101, %c0_102, %c0_103] : memref<2x32x64xf32, #tpu.memory_space<vmem>>, vector<1x32x64xf32>
    %197 = vector.shape_cast %196 : vector<1x32x64xf32> to vector<32x64xf32>
    %cst_104 = arith.constant dense<0.000000e+00> : vector<32x64xf32>
    %198 = tpu.matmul %195, %197, %cst_104 {dimension_numbers = #tpu.dot_dimension_numbers<[1], [0], [0], [1], [0, 0, 1, 1], [], []>} : vector<32x32xf32>, vector<32x64xf32>, vector<32x64xf32> -> vector<32x64xf32>
    %c0_105 = arith.constant 0 : index
    %c0_106 = arith.constant 0 : index
    %c0_107 = arith.constant 0 : index
    %199 = vector.load %arg16[%c0_105, %c0_106, %c0_107] : memref<2x1x64xf32, #tpu.memory_space<vmem>>, vector<1x1x64xf32>
    %200 = vector.shape_cast %199 : vector<1x1x64xf32> to vector<1x64xf32>
    %201 = vector.broadcast %200 : vector<1x64xf32> to vector<32x64xf32>
    %202 = arith.addf %198, %201 : vector<32x64xf32>
    %cst_108 = arith.constant 5.000000e-01 : f32
    %203 = vector.broadcast %cst_108 : f32 to vector<32x64xf32>
    %204 = arith.mulf %203, %202 : vector<32x64xf32>
    %cst_109 = arith.constant 4.471500e-02 : f32
    %205 = vector.broadcast %cst_109 : f32 to vector<32x64xf32>
    %206 = arith.mulf %205, %202 : vector<32x64xf32>
    %207 = arith.mulf %206, %202 : vector<32x64xf32>
    %208 = arith.mulf %207, %202 : vector<32x64xf32>
    %209 = arith.addf %202, %208 : vector<32x64xf32>
    %cst_110 = arith.constant 0.797884583 : f32
    %210 = vector.broadcast %cst_110 : f32 to vector<32x64xf32>
    %211 = arith.mulf %210, %209 : vector<32x64xf32>
    %212 = math.tanh %211 : vector<32x64xf32>
    %cst_111 = arith.constant 1.000000e+00 : f32
    %213 = vector.broadcast %cst_111 : f32 to vector<32x64xf32>
    %214 = arith.addf %213, %212 : vector<32x64xf32>
    %215 = arith.mulf %204, %214 : vector<32x64xf32>
    %c0_112 = arith.constant 0 : index
    %c0_113 = arith.constant 0 : index
    %c0_114 = arith.constant 0 : index
    %216 = vector.load %arg17[%c0_112, %c0_113, %c0_114] : memref<2x64x32xf32, #tpu.memory_space<vmem>>, vector<1x64x32xf32>
    %217 = vector.shape_cast %216 : vector<1x64x32xf32> to vector<64x32xf32>
    %cst_115 = arith.constant dense<0.000000e+00> : vector<32x32xf32>
    %218 = tpu.matmul %215, %217, %cst_115 {dimension_numbers = #tpu.dot_dimension_numbers<[1], [0], [0], [1], [0, 0, 1, 1], [], []>} : vector<32x64xf32>, vector<64x32xf32>, vector<32x32xf32> -> vector<32x32xf32>
    %c0_116 = arith.constant 0 : index
    %c0_117 = arith.constant 0 : index
    %c0_118 = arith.constant 0 : index
    %219 = vector.load %arg18[%c0_116, %c0_117, %c0_118] : memref<2x1x32xf32, #tpu.memory_space<vmem>>, vector<1x1x32xf32>
    %220 = vector.shape_cast %219 : vector<1x1x32xf32> to vector<1x32xf32>
    %221 = vector.broadcast %220 : vector<1x32xf32> to vector<32x32xf32>
    %222 = arith.addf %218, %221 : vector<32x32xf32>
    %223 = arith.addf %222, %195 : vector<32x32xf32>
    %c0_119 = arith.constant 0 : index
    %c0_120 = arith.constant 0 : index
    %c0_121 = arith.constant 0 : index
    %224 = vector.load %arg21[%c0_119, %c0_120, %c0_121] : memref<2x1x32xf32, #tpu.memory_space<vmem>>, vector<1x1x32xf32>
    %225 = vector.shape_cast %224 : vector<1x1x32xf32> to vector<1x32xf32>
    %c0_122 = arith.constant 0 : index
    %c0_123 = arith.constant 0 : index
    %c0_124 = arith.constant 0 : index
    %226 = vector.load %arg22[%c0_122, %c0_123, %c0_124] : memref<2x1x32xf32, #tpu.memory_space<vmem>>, vector<1x1x32xf32>
    %227 = vector.shape_cast %226 : vector<1x1x32xf32> to vector<1x32xf32>
    %cst_125 = arith.constant dense<0.000000e+00> : vector<32xf32>
    %228 = vector.multi_reduction <add>, %223, %cst_125 [1] : vector<32x32xf32> to vector<32xf32>
    %229 = vector.shape_cast %228 : vector<32xf32> to vector<32x1xf32>
    %cst_126 = arith.constant 3.200000e+01 : f32
    %230 = vector.broadcast %cst_126 : f32 to vector<32x1xf32>
    %231 = arith.divf %229, %230 : vector<32x1xf32>
    %232 = vector.broadcast %231 : vector<32x1xf32> to vector<32x32xf32>
    %233 = arith.subf %223, %232 : vector<32x32xf32>
    %234 = arith.mulf %233, %233 : vector<32x32xf32>
    %cst_127 = arith.constant dense<0.000000e+00> : vector<32xf32>
    %235 = vector.multi_reduction <add>, %234, %cst_127 [1] : vector<32x32xf32> to vector<32xf32>
    %236 = vector.shape_cast %235 : vector<32xf32> to vector<32x1xf32>
    %cst_128 = arith.constant 3.200000e+01 : f32
    %237 = vector.broadcast %cst_128 : f32 to vector<32x1xf32>
    %238 = arith.divf %236, %237 : vector<32x1xf32>
    %cst_129 = arith.constant 9.99999996E-13 : f32
    %239 = vector.broadcast %cst_129 : f32 to vector<32x1xf32>
    %240 = arith.addf %238, %239 : vector<32x1xf32>
    %241 = math.rsqrt %240 : vector<32x1xf32>
    %242 = vector.broadcast %241 : vector<32x1xf32> to vector<32x32xf32>
    %243 = arith.mulf %233, %242 : vector<32x32xf32>
    %244 = vector.broadcast %225 : vector<1x32xf32> to vector<32x32xf32>
    %245 = arith.mulf %243, %244 : vector<32x32xf32>
    %246 = vector.broadcast %227 : vector<1x32xf32> to vector<32x32xf32>
    %247 = arith.addf %245, %246 : vector<32x32xf32>
    %c2 = arith.constant 2 : index
    %c0_130 = arith.constant 0 : index
    %c0_131 = arith.constant 0 : index
    %248 = vector.load %arg7[%c2, %c0_130, %c0_131] : memref<4x32x16xf32, #tpu.memory_space<vmem>>, vector<1x32x16xf32>
    %249 = vector.shape_cast %248 : vector<1x32x16xf32> to vector<32x16xf32>
    %cst_132 = arith.constant dense<0.000000e+00> : vector<32x16xf32>
    %250 = tpu.matmul %247, %249, %cst_132 {dimension_numbers = #tpu.dot_dimension_numbers<[1], [0], [0], [1], [0, 0, 1, 1], [], []>} : vector<32x32xf32>, vector<32x16xf32>, vector<32x16xf32> -> vector<32x16xf32>
    %c2_133 = arith.constant 2 : index
    %c0_134 = arith.constant 0 : index
    %c0_135 = arith.constant 0 : index
    %251 = vector.load %arg8[%c2_133, %c0_134, %c0_135] : memref<4x1x16xf32, #tpu.memory_space<vmem>>, vector<1x1x16xf32>
    %252 = vector.shape_cast %251 : vector<1x1x16xf32> to vector<1x16xf32>
    %253 = vector.broadcast %252 : vector<1x16xf32> to vector<32x16xf32>
    %254 = arith.addf %250, %253 : vector<32x16xf32>
    %cst_136 = arith.constant 2.500000e-01 : f32
    %255 = vector.broadcast %cst_136 : f32 to vector<32x16xf32>
    %256 = arith.mulf %254, %255 : vector<32x16xf32>
    %c2_137 = arith.constant 2 : index
    %c0_138 = arith.constant 0 : index
    %c0_139 = arith.constant 0 : index
    %257 = vector.load %arg9[%c2_137, %c0_138, %c0_139] : memref<4x32x16xf32, #tpu.memory_space<vmem>>, vector<1x32x16xf32>
    %258 = vector.shape_cast %257 : vector<1x32x16xf32> to vector<32x16xf32>
    %cst_140 = arith.constant dense<0.000000e+00> : vector<32x16xf32>
    %259 = tpu.matmul %247, %258, %cst_140 {dimension_numbers = #tpu.dot_dimension_numbers<[1], [0], [0], [1], [0, 0, 1, 1], [], []>} : vector<32x32xf32>, vector<32x16xf32>, vector<32x16xf32> -> vector<32x16xf32>
    %c2_141 = arith.constant 2 : index
    %c0_142 = arith.constant 0 : index
    %c0_143 = arith.constant 0 : index
    %260 = vector.load %arg10[%c2_141, %c0_142, %c0_143] : memref<4x1x16xf32, #tpu.memory_space<vmem>>, vector<1x1x16xf32>
    %261 = vector.shape_cast %260 : vector<1x1x16xf32> to vector<1x16xf32>
    %262 = vector.broadcast %261 : vector<1x16xf32> to vector<32x16xf32>
    %263 = arith.addf %259, %262 : vector<32x16xf32>
    %c2_144 = arith.constant 2 : index
    %c0_145 = arith.constant 0 : index
    %c0_146 = arith.constant 0 : index
    %264 = vector.load %arg11[%c2_144, %c0_145, %c0_146] : memref<4x32x16xf32, #tpu.memory_space<vmem>>, vector<1x32x16xf32>
    %265 = vector.shape_cast %264 : vector<1x32x16xf32> to vector<32x16xf32>
    %cst_147 = arith.constant dense<0.000000e+00> : vector<32x16xf32>
    %266 = tpu.matmul %247, %265, %cst_147 {dimension_numbers = #tpu.dot_dimension_numbers<[1], [0], [0], [1], [0, 0, 1, 1], [], []>} : vector<32x32xf32>, vector<32x16xf32>, vector<32x16xf32> -> vector<32x16xf32>
    %c2_148 = arith.constant 2 : index
    %c0_149 = arith.constant 0 : index
    %c0_150 = arith.constant 0 : index
    %267 = vector.load %arg12[%c2_148, %c0_149, %c0_150] : memref<4x1x16xf32, #tpu.memory_space<vmem>>, vector<1x1x16xf32>
    %268 = vector.shape_cast %267 : vector<1x1x16xf32> to vector<1x16xf32>
    %269 = vector.broadcast %268 : vector<1x16xf32> to vector<32x16xf32>
    %270 = arith.addf %266, %269 : vector<32x16xf32>
    %271 = vector.extract_strided_slice %256 {offsets = [0, 0], sizes = [16, 16], strides = [1, 1]} : vector<32x16xf32> to vector<16x16xf32>
    %272 = vector.extract_strided_slice %263 {offsets = [0, 0], sizes = [16, 16], strides = [1, 1]} : vector<32x16xf32> to vector<16x16xf32>
    %273 = vector.extract_strided_slice %270 {offsets = [0, 0], sizes = [16, 16], strides = [1, 1]} : vector<32x16xf32> to vector<16x16xf32>
    %cst_151 = arith.constant dense<0.000000e+00> : vector<16x16xf32>
    %274 = tpu.matmul %271, %272, %cst_151 {dimension_numbers = #tpu.dot_dimension_numbers<[1], [1], [0], [0], [0, 0, 1, 0], [], []>} : vector<16x16xf32>, vector<16x16xf32>, vector<16x16xf32> -> vector<16x16xf32>
    %275 = vector.extract_strided_slice %39 {offsets = [0, 0], sizes = [1, 16], strides = [1, 1]} : vector<2x16xf32> to vector<1x16xf32>
    %276 = vector.broadcast %275 : vector<1x16xf32> to vector<16x16xf32>
    %277 = arith.addf %274, %276 : vector<16x16xf32>
    %cst_152 = arith.constant dense<0xFF800000> : vector<16xf32>
    %278 = vector.multi_reduction <maximumf>, %277, %cst_152 [1] : vector<16x16xf32> to vector<16xf32>
    %279 = vector.shape_cast %278 : vector<16xf32> to vector<16x1xf32>
    %280 = vector.broadcast %279 : vector<16x1xf32> to vector<16x16xf32>
    %281 = arith.subf %277, %280 : vector<16x16xf32>
    %282 = math.exp %281 : vector<16x16xf32>
    %cst_153 = arith.constant dense<0.000000e+00> : vector<16xf32>
    %283 = vector.multi_reduction <add>, %282, %cst_153 [1] : vector<16x16xf32> to vector<16xf32>
    %284 = vector.shape_cast %283 : vector<16xf32> to vector<16x1xf32>
    %285 = tpu.reciprocal %284 {approx = true} : vector<16x1xf32> -> vector<16x1xf32>
    %286 = vector.broadcast %285 : vector<16x1xf32> to vector<16x16xf32>
    %287 = arith.mulf %282, %286 : vector<16x16xf32>
    %cst_154 = arith.constant dense<0.000000e+00> : vector<16x16xf32>
    %288 = tpu.matmul %287, %273, %cst_154 {dimension_numbers = #tpu.dot_dimension_numbers<[1], [0], [0], [1], [0, 0, 1, 1], [], []>} : vector<16x16xf32>, vector<16x16xf32>, vector<16x16xf32> -> vector<16x16xf32>
    %289 = vector.extract_strided_slice %256 {offsets = [16, 0], sizes = [16, 16], strides = [1, 1]} : vector<32x16xf32> to vector<16x16xf32>
    %290 = vector.extract_strided_slice %263 {offsets = [16, 0], sizes = [16, 16], strides = [1, 1]} : vector<32x16xf32> to vector<16x16xf32>
    %291 = vector.extract_strided_slice %270 {offsets = [16, 0], sizes = [16, 16], strides = [1, 1]} : vector<32x16xf32> to vector<16x16xf32>
    %cst_155 = arith.constant dense<0.000000e+00> : vector<16x16xf32>
    %292 = tpu.matmul %289, %290, %cst_155 {dimension_numbers = #tpu.dot_dimension_numbers<[1], [1], [0], [0], [0, 0, 1, 0], [], []>} : vector<16x16xf32>, vector<16x16xf32>, vector<16x16xf32> -> vector<16x16xf32>
    %293 = vector.extract_strided_slice %39 {offsets = [1, 0], sizes = [1, 16], strides = [1, 1]} : vector<2x16xf32> to vector<1x16xf32>
    %294 = vector.broadcast %293 : vector<1x16xf32> to vector<16x16xf32>
    %295 = arith.addf %292, %294 : vector<16x16xf32>
    %cst_156 = arith.constant dense<0xFF800000> : vector<16xf32>
    %296 = vector.multi_reduction <maximumf>, %295, %cst_156 [1] : vector<16x16xf32> to vector<16xf32>
    %297 = vector.shape_cast %296 : vector<16xf32> to vector<16x1xf32>
    %298 = vector.broadcast %297 : vector<16x1xf32> to vector<16x16xf32>
    %299 = arith.subf %295, %298 : vector<16x16xf32>
    %300 = math.exp %299 : vector<16x16xf32>
    %cst_157 = arith.constant dense<0.000000e+00> : vector<16xf32>
    %301 = vector.multi_reduction <add>, %300, %cst_157 [1] : vector<16x16xf32> to vector<16xf32>
    %302 = vector.shape_cast %301 : vector<16xf32> to vector<16x1xf32>
    %303 = tpu.reciprocal %302 {approx = true} : vector<16x1xf32> -> vector<16x1xf32>
    %304 = vector.broadcast %303 : vector<16x1xf32> to vector<16x16xf32>
    %305 = arith.mulf %300, %304 : vector<16x16xf32>
    %cst_158 = arith.constant dense<0.000000e+00> : vector<16x16xf32>
    %306 = tpu.matmul %305, %291, %cst_158 {dimension_numbers = #tpu.dot_dimension_numbers<[1], [0], [0], [1], [0, 0, 1, 1], [], []>} : vector<16x16xf32>, vector<16x16xf32>, vector<16x16xf32> -> vector<16x16xf32>
    %307 = tpu.concatenate %288, %306 in 0 : vector<16x16xf32>, vector<16x16xf32> -> vector<32x16xf32>
    %c2_159 = arith.constant 2 : index
    %c0_160 = arith.constant 0 : index
    %c0_161 = arith.constant 0 : index
    %308 = vector.load %arg13[%c2_159, %c0_160, %c0_161] : memref<4x16x32xf32, #tpu.memory_space<vmem>>, vector<1x16x32xf32>
    %309 = vector.shape_cast %308 : vector<1x16x32xf32> to vector<16x32xf32>
    %cst_162 = arith.constant dense<0.000000e+00> : vector<32x32xf32>
    %310 = tpu.matmul %307, %309, %cst_162 {dimension_numbers = #tpu.dot_dimension_numbers<[1], [0], [0], [1], [0, 0, 1, 1], [], []>} : vector<32x16xf32>, vector<16x32xf32>, vector<32x32xf32> -> vector<32x32xf32>
    %c3 = arith.constant 3 : index
    %c0_163 = arith.constant 0 : index
    %c0_164 = arith.constant 0 : index
    %311 = vector.load %arg7[%c3, %c0_163, %c0_164] : memref<4x32x16xf32, #tpu.memory_space<vmem>>, vector<1x32x16xf32>
    %312 = vector.shape_cast %311 : vector<1x32x16xf32> to vector<32x16xf32>
    %cst_165 = arith.constant dense<0.000000e+00> : vector<32x16xf32>
    %313 = tpu.matmul %247, %312, %cst_165 {dimension_numbers = #tpu.dot_dimension_numbers<[1], [0], [0], [1], [0, 0, 1, 1], [], []>} : vector<32x32xf32>, vector<32x16xf32>, vector<32x16xf32> -> vector<32x16xf32>
    %c3_166 = arith.constant 3 : index
    %c0_167 = arith.constant 0 : index
    %c0_168 = arith.constant 0 : index
    %314 = vector.load %arg8[%c3_166, %c0_167, %c0_168] : memref<4x1x16xf32, #tpu.memory_space<vmem>>, vector<1x1x16xf32>
    %315 = vector.shape_cast %314 : vector<1x1x16xf32> to vector<1x16xf32>
    %316 = vector.broadcast %315 : vector<1x16xf32> to vector<32x16xf32>
    %317 = arith.addf %313, %316 : vector<32x16xf32>
    %cst_169 = arith.constant 2.500000e-01 : f32
    %318 = vector.broadcast %cst_169 : f32 to vector<32x16xf32>
    %319 = arith.mulf %317, %318 : vector<32x16xf32>
    %c3_170 = arith.constant 3 : index
    %c0_171 = arith.constant 0 : index
    %c0_172 = arith.constant 0 : index
    %320 = vector.load %arg9[%c3_170, %c0_171, %c0_172] : memref<4x32x16xf32, #tpu.memory_space<vmem>>, vector<1x32x16xf32>
    %321 = vector.shape_cast %320 : vector<1x32x16xf32> to vector<32x16xf32>
    %cst_173 = arith.constant dense<0.000000e+00> : vector<32x16xf32>
    %322 = tpu.matmul %247, %321, %cst_173 {dimension_numbers = #tpu.dot_dimension_numbers<[1], [0], [0], [1], [0, 0, 1, 1], [], []>} : vector<32x32xf32>, vector<32x16xf32>, vector<32x16xf32> -> vector<32x16xf32>
    %c3_174 = arith.constant 3 : index
    %c0_175 = arith.constant 0 : index
    %c0_176 = arith.constant 0 : index
    %323 = vector.load %arg10[%c3_174, %c0_175, %c0_176] : memref<4x1x16xf32, #tpu.memory_space<vmem>>, vector<1x1x16xf32>
    %324 = vector.shape_cast %323 : vector<1x1x16xf32> to vector<1x16xf32>
    %325 = vector.broadcast %324 : vector<1x16xf32> to vector<32x16xf32>
    %326 = arith.addf %322, %325 : vector<32x16xf32>
    %c3_177 = arith.constant 3 : index
    %c0_178 = arith.constant 0 : index
    %c0_179 = arith.constant 0 : index
    %327 = vector.load %arg11[%c3_177, %c0_178, %c0_179] : memref<4x32x16xf32, #tpu.memory_space<vmem>>, vector<1x32x16xf32>
    %328 = vector.shape_cast %327 : vector<1x32x16xf32> to vector<32x16xf32>
    %cst_180 = arith.constant dense<0.000000e+00> : vector<32x16xf32>
    %329 = tpu.matmul %247, %328, %cst_180 {dimension_numbers = #tpu.dot_dimension_numbers<[1], [0], [0], [1], [0, 0, 1, 1], [], []>} : vector<32x32xf32>, vector<32x16xf32>, vector<32x16xf32> -> vector<32x16xf32>
    %c3_181 = arith.constant 3 : index
    %c0_182 = arith.constant 0 : index
    %c0_183 = arith.constant 0 : index
    %330 = vector.load %arg12[%c3_181, %c0_182, %c0_183] : memref<4x1x16xf32, #tpu.memory_space<vmem>>, vector<1x1x16xf32>
    %331 = vector.shape_cast %330 : vector<1x1x16xf32> to vector<1x16xf32>
    %332 = vector.broadcast %331 : vector<1x16xf32> to vector<32x16xf32>
    %333 = arith.addf %329, %332 : vector<32x16xf32>
    %334 = vector.extract_strided_slice %319 {offsets = [0, 0], sizes = [16, 16], strides = [1, 1]} : vector<32x16xf32> to vector<16x16xf32>
    %335 = vector.extract_strided_slice %326 {offsets = [0, 0], sizes = [16, 16], strides = [1, 1]} : vector<32x16xf32> to vector<16x16xf32>
    %336 = vector.extract_strided_slice %333 {offsets = [0, 0], sizes = [16, 16], strides = [1, 1]} : vector<32x16xf32> to vector<16x16xf32>
    %cst_184 = arith.constant dense<0.000000e+00> : vector<16x16xf32>
    %337 = tpu.matmul %334, %335, %cst_184 {dimension_numbers = #tpu.dot_dimension_numbers<[1], [1], [0], [0], [0, 0, 1, 0], [], []>} : vector<16x16xf32>, vector<16x16xf32>, vector<16x16xf32> -> vector<16x16xf32>
    %338 = vector.extract_strided_slice %39 {offsets = [0, 0], sizes = [1, 16], strides = [1, 1]} : vector<2x16xf32> to vector<1x16xf32>
    %339 = vector.broadcast %338 : vector<1x16xf32> to vector<16x16xf32>
    %340 = arith.addf %337, %339 : vector<16x16xf32>
    %cst_185 = arith.constant dense<0xFF800000> : vector<16xf32>
    %341 = vector.multi_reduction <maximumf>, %340, %cst_185 [1] : vector<16x16xf32> to vector<16xf32>
    %342 = vector.shape_cast %341 : vector<16xf32> to vector<16x1xf32>
    %343 = vector.broadcast %342 : vector<16x1xf32> to vector<16x16xf32>
    %344 = arith.subf %340, %343 : vector<16x16xf32>
    %345 = math.exp %344 : vector<16x16xf32>
    %cst_186 = arith.constant dense<0.000000e+00> : vector<16xf32>
    %346 = vector.multi_reduction <add>, %345, %cst_186 [1] : vector<16x16xf32> to vector<16xf32>
    %347 = vector.shape_cast %346 : vector<16xf32> to vector<16x1xf32>
    %348 = tpu.reciprocal %347 {approx = true} : vector<16x1xf32> -> vector<16x1xf32>
    %349 = vector.broadcast %348 : vector<16x1xf32> to vector<16x16xf32>
    %350 = arith.mulf %345, %349 : vector<16x16xf32>
    %cst_187 = arith.constant dense<0.000000e+00> : vector<16x16xf32>
    %351 = tpu.matmul %350, %336, %cst_187 {dimension_numbers = #tpu.dot_dimension_numbers<[1], [0], [0], [1], [0, 0, 1, 1], [], []>} : vector<16x16xf32>, vector<16x16xf32>, vector<16x16xf32> -> vector<16x16xf32>
    %352 = vector.extract_strided_slice %319 {offsets = [16, 0], sizes = [16, 16], strides = [1, 1]} : vector<32x16xf32> to vector<16x16xf32>
    %353 = vector.extract_strided_slice %326 {offsets = [16, 0], sizes = [16, 16], strides = [1, 1]} : vector<32x16xf32> to vector<16x16xf32>
    %354 = vector.extract_strided_slice %333 {offsets = [16, 0], sizes = [16, 16], strides = [1, 1]} : vector<32x16xf32> to vector<16x16xf32>
    %cst_188 = arith.constant dense<0.000000e+00> : vector<16x16xf32>
    %355 = tpu.matmul %352, %353, %cst_188 {dimension_numbers = #tpu.dot_dimension_numbers<[1], [1], [0], [0], [0, 0, 1, 0], [], []>} : vector<16x16xf32>, vector<16x16xf32>, vector<16x16xf32> -> vector<16x16xf32>
    %356 = vector.extract_strided_slice %39 {offsets = [1, 0], sizes = [1, 16], strides = [1, 1]} : vector<2x16xf32> to vector<1x16xf32>
    %357 = vector.broadcast %356 : vector<1x16xf32> to vector<16x16xf32>
    %358 = arith.addf %355, %357 : vector<16x16xf32>
    %cst_189 = arith.constant dense<0xFF800000> : vector<16xf32>
    %359 = vector.multi_reduction <maximumf>, %358, %cst_189 [1] : vector<16x16xf32> to vector<16xf32>
    %360 = vector.shape_cast %359 : vector<16xf32> to vector<16x1xf32>
    %361 = vector.broadcast %360 : vector<16x1xf32> to vector<16x16xf32>
    %362 = arith.subf %358, %361 : vector<16x16xf32>
    %363 = math.exp %362 : vector<16x16xf32>
    %cst_190 = arith.constant dense<0.000000e+00> : vector<16xf32>
    %364 = vector.multi_reduction <add>, %363, %cst_190 [1] : vector<16x16xf32> to vector<16xf32>
    %365 = vector.shape_cast %364 : vector<16xf32> to vector<16x1xf32>
    %366 = tpu.reciprocal %365 {approx = true} : vector<16x1xf32> -> vector<16x1xf32>
    %367 = vector.broadcast %366 : vector<16x1xf32> to vector<16x16xf32>
    %368 = arith.mulf %363, %367 : vector<16x16xf32>
    %cst_191 = arith.constant dense<0.000000e+00> : vector<16x16xf32>
    %369 = tpu.matmul %368, %354, %cst_191 {dimension_numbers = #tpu.dot_dimension_numbers<[1], [0], [0], [1], [0, 0, 1, 1], [], []>} : vector<16x16xf32>, vector<16x16xf32>, vector<16x16xf32> -> vector<16x16xf32>
    %370 = tpu.concatenate %351, %369 in 0 : vector<16x16xf32>, vector<16x16xf32> -> vector<32x16xf32>
    %c3_192 = arith.constant 3 : index
    %c0_193 = arith.constant 0 : index
    %c0_194 = arith.constant 0 : index
    %371 = vector.load %arg13[%c3_192, %c0_193, %c0_194] : memref<4x16x32xf32, #tpu.memory_space<vmem>>, vector<1x16x32xf32>
    %372 = vector.shape_cast %371 : vector<1x16x32xf32> to vector<16x32xf32>
    %cst_195 = arith.constant dense<0.000000e+00> : vector<32x32xf32>
    %373 = tpu.matmul %370, %372, %cst_195 {dimension_numbers = #tpu.dot_dimension_numbers<[1], [0], [0], [1], [0, 0, 1, 1], [], []>} : vector<32x16xf32>, vector<16x32xf32>, vector<32x32xf32> -> vector<32x32xf32>
    %374 = arith.addf %310, %373 : vector<32x32xf32>
    %c1_196 = arith.constant 1 : index
    %c0_197 = arith.constant 0 : index
    %c0_198 = arith.constant 0 : index
    %375 = vector.load %arg14[%c1_196, %c0_197, %c0_198] : memref<2x1x32xf32, #tpu.memory_space<vmem>>, vector<1x1x32xf32>
    %376 = vector.shape_cast %375 : vector<1x1x32xf32> to vector<1x32xf32>
    %377 = vector.broadcast %376 : vector<1x32xf32> to vector<32x32xf32>
    %378 = arith.addf %374, %377 : vector<32x32xf32>
    %379 = arith.addf %378, %247 : vector<32x32xf32>
    %c1_199 = arith.constant 1 : index
    %c0_200 = arith.constant 0 : index
    %c0_201 = arith.constant 0 : index
    %380 = vector.load %arg19[%c1_199, %c0_200, %c0_201] : memref<2x1x32xf32, #tpu.memory_space<vmem>>, vector<1x1x32xf32>
    %381 = vector.shape_cast %380 : vector<1x1x32xf32> to vector<1x32xf32>
    %c1_202 = arith.constant 1 : index
    %c0_203 = arith.constant 0 : index
    %c0_204 = arith.constant 0 : index
    %382 = vector.load %arg20[%c1_202, %c0_203, %c0_204] : memref<2x1x32xf32, #tpu.memory_space<vmem>>, vector<1x1x32xf32>
    %383 = vector.shape_cast %382 : vector<1x1x32xf32> to vector<1x32xf32>
    %cst_205 = arith.constant dense<0.000000e+00> : vector<32xf32>
    %384 = vector.multi_reduction <add>, %379, %cst_205 [1] : vector<32x32xf32> to vector<32xf32>
    %385 = vector.shape_cast %384 : vector<32xf32> to vector<32x1xf32>
    %cst_206 = arith.constant 3.200000e+01 : f32
    %386 = vector.broadcast %cst_206 : f32 to vector<32x1xf32>
    %387 = arith.divf %385, %386 : vector<32x1xf32>
    %388 = vector.broadcast %387 : vector<32x1xf32> to vector<32x32xf32>
    %389 = arith.subf %379, %388 : vector<32x32xf32>
    %390 = arith.mulf %389, %389 : vector<32x32xf32>
    %cst_207 = arith.constant dense<0.000000e+00> : vector<32xf32>
    %391 = vector.multi_reduction <add>, %390, %cst_207 [1] : vector<32x32xf32> to vector<32xf32>
    %392 = vector.shape_cast %391 : vector<32xf32> to vector<32x1xf32>
    %cst_208 = arith.constant 3.200000e+01 : f32
    %393 = vector.broadcast %cst_208 : f32 to vector<32x1xf32>
    %394 = arith.divf %392, %393 : vector<32x1xf32>
    %cst_209 = arith.constant 9.99999996E-13 : f32
    %395 = vector.broadcast %cst_209 : f32 to vector<32x1xf32>
    %396 = arith.addf %394, %395 : vector<32x1xf32>
    %397 = math.rsqrt %396 : vector<32x1xf32>
    %398 = vector.broadcast %397 : vector<32x1xf32> to vector<32x32xf32>
    %399 = arith.mulf %389, %398 : vector<32x32xf32>
    %400 = vector.broadcast %381 : vector<1x32xf32> to vector<32x32xf32>
    %401 = arith.mulf %399, %400 : vector<32x32xf32>
    %402 = vector.broadcast %383 : vector<1x32xf32> to vector<32x32xf32>
    %403 = arith.addf %401, %402 : vector<32x32xf32>
    %c1_210 = arith.constant 1 : index
    %c0_211 = arith.constant 0 : index
    %c0_212 = arith.constant 0 : index
    %404 = vector.load %arg15[%c1_210, %c0_211, %c0_212] : memref<2x32x64xf32, #tpu.memory_space<vmem>>, vector<1x32x64xf32>
    %405 = vector.shape_cast %404 : vector<1x32x64xf32> to vector<32x64xf32>
    %cst_213 = arith.constant dense<0.000000e+00> : vector<32x64xf32>
    %406 = tpu.matmul %403, %405, %cst_213 {dimension_numbers = #tpu.dot_dimension_numbers<[1], [0], [0], [1], [0, 0, 1, 1], [], []>} : vector<32x32xf32>, vector<32x64xf32>, vector<32x64xf32> -> vector<32x64xf32>
    %c1_214 = arith.constant 1 : index
    %c0_215 = arith.constant 0 : index
    %c0_216 = arith.constant 0 : index
    %407 = vector.load %arg16[%c1_214, %c0_215, %c0_216] : memref<2x1x64xf32, #tpu.memory_space<vmem>>, vector<1x1x64xf32>
    %408 = vector.shape_cast %407 : vector<1x1x64xf32> to vector<1x64xf32>
    %409 = vector.broadcast %408 : vector<1x64xf32> to vector<32x64xf32>
    %410 = arith.addf %406, %409 : vector<32x64xf32>
    %cst_217 = arith.constant 5.000000e-01 : f32
    %411 = vector.broadcast %cst_217 : f32 to vector<32x64xf32>
    %412 = arith.mulf %411, %410 : vector<32x64xf32>
    %cst_218 = arith.constant 4.471500e-02 : f32
    %413 = vector.broadcast %cst_218 : f32 to vector<32x64xf32>
    %414 = arith.mulf %413, %410 : vector<32x64xf32>
    %415 = arith.mulf %414, %410 : vector<32x64xf32>
    %416 = arith.mulf %415, %410 : vector<32x64xf32>
    %417 = arith.addf %410, %416 : vector<32x64xf32>
    %cst_219 = arith.constant 0.797884583 : f32
    %418 = vector.broadcast %cst_219 : f32 to vector<32x64xf32>
    %419 = arith.mulf %418, %417 : vector<32x64xf32>
    %420 = math.tanh %419 : vector<32x64xf32>
    %cst_220 = arith.constant 1.000000e+00 : f32
    %421 = vector.broadcast %cst_220 : f32 to vector<32x64xf32>
    %422 = arith.addf %421, %420 : vector<32x64xf32>
    %423 = arith.mulf %412, %422 : vector<32x64xf32>
    %c1_221 = arith.constant 1 : index
    %c0_222 = arith.constant 0 : index
    %c0_223 = arith.constant 0 : index
    %424 = vector.load %arg17[%c1_221, %c0_222, %c0_223] : memref<2x64x32xf32, #tpu.memory_space<vmem>>, vector<1x64x32xf32>
    %425 = vector.shape_cast %424 : vector<1x64x32xf32> to vector<64x32xf32>
    %cst_224 = arith.constant dense<0.000000e+00> : vector<32x32xf32>
    %426 = tpu.matmul %423, %425, %cst_224 {dimension_numbers = #tpu.dot_dimension_numbers<[1], [0], [0], [1], [0, 0, 1, 1], [], []>} : vector<32x64xf32>, vector<64x32xf32>, vector<32x32xf32> -> vector<32x32xf32>
    %c1_225 = arith.constant 1 : index
    %c0_226 = arith.constant 0 : index
    %c0_227 = arith.constant 0 : index
    %427 = vector.load %arg18[%c1_225, %c0_226, %c0_227] : memref<2x1x32xf32, #tpu.memory_space<vmem>>, vector<1x1x32xf32>
    %428 = vector.shape_cast %427 : vector<1x1x32xf32> to vector<1x32xf32>
    %429 = vector.broadcast %428 : vector<1x32xf32> to vector<32x32xf32>
    %430 = arith.addf %426, %429 : vector<32x32xf32>
    %431 = arith.addf %430, %403 : vector<32x32xf32>
    %c1_228 = arith.constant 1 : index
    %c0_229 = arith.constant 0 : index
    %c0_230 = arith.constant 0 : index
    %432 = vector.load %arg21[%c1_228, %c0_229, %c0_230] : memref<2x1x32xf32, #tpu.memory_space<vmem>>, vector<1x1x32xf32>
    %433 = vector.shape_cast %432 : vector<1x1x32xf32> to vector<1x32xf32>
    %c1_231 = arith.constant 1 : index
    %c0_232 = arith.constant 0 : index
    %c0_233 = arith.constant 0 : index
    %434 = vector.load %arg22[%c1_231, %c0_232, %c0_233] : memref<2x1x32xf32, #tpu.memory_space<vmem>>, vector<1x1x32xf32>
    %435 = vector.shape_cast %434 : vector<1x1x32xf32> to vector<1x32xf32>
    %cst_234 = arith.constant dense<0.000000e+00> : vector<32xf32>
    %436 = vector.multi_reduction <add>, %431, %cst_234 [1] : vector<32x32xf32> to vector<32xf32>
    %437 = vector.shape_cast %436 : vector<32xf32> to vector<32x1xf32>
    %cst_235 = arith.constant 3.200000e+01 : f32
    %438 = vector.broadcast %cst_235 : f32 to vector<32x1xf32>
    %439 = arith.divf %437, %438 : vector<32x1xf32>
    %440 = vector.broadcast %439 : vector<32x1xf32> to vector<32x32xf32>
    %441 = arith.subf %431, %440 : vector<32x32xf32>
    %442 = arith.mulf %441, %441 : vector<32x32xf32>
    %cst_236 = arith.constant dense<0.000000e+00> : vector<32xf32>
    %443 = vector.multi_reduction <add>, %442, %cst_236 [1] : vector<32x32xf32> to vector<32xf32>
    %444 = vector.shape_cast %443 : vector<32xf32> to vector<32x1xf32>
    %cst_237 = arith.constant 3.200000e+01 : f32
    %445 = vector.broadcast %cst_237 : f32 to vector<32x1xf32>
    %446 = arith.divf %444, %445 : vector<32x1xf32>
    %cst_238 = arith.constant 9.99999996E-13 : f32
    %447 = vector.broadcast %cst_238 : f32 to vector<32x1xf32>
    %448 = arith.addf %446, %447 : vector<32x1xf32>
    %449 = math.rsqrt %448 : vector<32x1xf32>
    %450 = vector.broadcast %449 : vector<32x1xf32> to vector<32x32xf32>
    %451 = arith.mulf %441, %450 : vector<32x32xf32>
    %452 = vector.broadcast %433 : vector<1x32xf32> to vector<32x32xf32>
    %453 = arith.mulf %451, %452 : vector<32x32xf32>
    %454 = vector.broadcast %435 : vector<1x32xf32> to vector<32x32xf32>
    %455 = arith.addf %453, %454 : vector<32x32xf32>
    %c0_239 = arith.constant 0 : index
    %c0_240 = arith.constant 0 : index
    %c0_241 = arith.constant 0 : index
    %456 = vector.load %arg23[%c0_239, %c0_240, %c0_241] : memref<1x32x32xf32, #tpu.memory_space<vmem>>, vector<1x32x32xf32>
    %457 = vector.shape_cast %456 : vector<1x32x32xf32> to vector<32x32xf32>
    %458 = vector.shape_cast %455 : vector<32x32xf32> to vector<1x32x32xf32>
    tpu.vector_store %arg23[%c0_239, %c0_240, %c0_241], %458 {strides = array<i32>} : memref<1x32x32xf32, #tpu.memory_space<vmem>>, vector<1x32x32xf32>,
    return
  }
  func.func @transform_0(%arg0: i32) -> (i32, i32, i32) {
    %c0_i32 = arith.constant 0 : i32
    %c0_i32_0 = arith.constant 0 : i32
    %c0_i32_1 = arith.constant 0 : i32
    return %arg0, %c0_i32, %c0_i32_0 : i32, i32, i32
  }
  func.func @transform_1(%arg0: i32) -> (i32, i32, i32) {
    %c0_i32 = arith.constant 0 : i32
    %c0_i32_0 = arith.constant 0 : i32
    %c0_i32_1 = arith.constant 0 : i32
    return %arg0, %c0_i32, %c0_i32_0 : i32, i32, i32
  }
  func.func @transform_2(%arg0: i32) -> (i32, i32) {
    %c0_i32 = arith.constant 0 : i32
    %c0_i32_0 = arith.constant 0 : i32
    %c0_i32_1 = arith.constant 0 : i32
    return %c0_i32, %c0_i32_0 : i32, i32
  }
  func.func @transform_3(%arg0: i32) -> (i32, i32) {
    %c0_i32 = arith.constant 0 : i32
    %c0_i32_0 = arith.constant 0 : i32
    %c0_i32_1 = arith.constant 0 : i32
    return %c0_i32, %c0_i32_0 : i32, i32
  }
  func.func @transform_4(%arg0: i32) -> (i32, i32) {
    %c0_i32 = arith.constant 0 : i32
    %c0_i32_0 = arith.constant 0 : i32
    %c0_i32_1 = arith.constant 0 : i32
    return %c0_i32, %c0_i32_0 : i32, i32
  }
  func.func @transform_5(%arg0: i32) -> (i32, i32) {
    %c0_i32 = arith.constant 0 : i32
    %c0_i32_0 = arith.constant 0 : i32
    %c0_i32_1 = arith.constant 0 : i32
    return %c0_i32, %c0_i32_0 : i32, i32
  }
  func.func @transform_6(%arg0: i32) -> (i32, i32, i32) {
    %c0_i32 = arith.constant 0 : i32
    %c0_i32_0 = arith.constant 0 : i32
    %c0_i32_1 = arith.constant 0 : i32
    %c0_i32_2 = arith.constant 0 : i32
    return %c0_i32, %c0_i32_0, %c0_i32_1 : i32, i32, i32
  }
  func.func @transform_7(%arg0: i32) -> (i32, i32, i32) {
    %c0_i32 = arith.constant 0 : i32
    %c0_i32_0 = arith.constant 0 : i32
    %c0_i32_1 = arith.constant 0 : i32
    %c0_i32_2 = arith.constant 0 : i32
    return %c0_i32, %c0_i32_0, %c0_i32_1 : i32, i32, i32
  }
  func.func @transform_8(%arg0: i32) -> (i32, i32, i32) {
    %c0_i32 = arith.constant 0 : i32
    %c0_i32_0 = arith.constant 0 : i32
    %c0_i32_1 = arith.constant 0 : i32
    %c0_i32_2 = arith.constant 0 : i32
    return %c0_i32, %c0_i32_0, %c0_i32_1 : i32, i32, i32
  }
  func.func @transform_9(%arg0: i32) -> (i32, i32, i32) {
    %c0_i32 = arith.constant 0 : i32
    %c0_i32_0 = arith.constant 0 : i32
    %c0_i32_1 = arith.constant 0 : i32
    %c0_i32_2 = arith.constant 0 : i32
    return %c0_i32, %c0_i32_0, %c0_i32_1 : i32, i32, i32
  }
  func.func @transform_10(%arg0: i32) -> (i32, i32, i32) {
    %c0_i32 = arith.constant 0 : i32
    %c0_i32_0 = arith.constant 0 : i32
    %c0_i32_1 = arith.constant 0 : i32
    %c0_i32_2 = arith.constant 0 : i32
    return %c0_i32, %c0_i32_0, %c0_i32_1 : i32, i32, i32
  }
  func.func @transform_11(%arg0: i32) -> (i32, i32, i32) {
    %c0_i32 = arith.constant 0 : i32
    %c0_i32_0 = arith.constant 0 : i32
    %c0_i32_1 = arith.constant 0 : i32
    %c0_i32_2 = arith.constant 0 : i32
    return %c0_i32, %c0_i32_0, %c0_i32_1 : i32, i32, i32
  }
  func.func @transform_12(%arg0: i32) -> (i32, i32, i32) {
    %c0_i32 = arith.constant 0 : i32
    %c0_i32_0 = arith.constant 0 : i32
    %c0_i32_1 = arith.constant 0 : i32
    %c0_i32_2 = arith.constant 0 : i32
    return %c0_i32, %c0_i32_0, %c0_i32_1 : i32, i32, i32
  }
  func.func @transform_13(%arg0: i32) -> (i32, i32, i32) {
    %c0_i32 = arith.constant 0 : i32
    %c0_i32_0 = arith.constant 0 : i32
    %c0_i32_1 = arith.constant 0 : i32
    %c0_i32_2 = arith.constant 0 : i32
    return %c0_i32, %c0_i32_0, %c0_i32_1 : i32, i32, i32
  }
  func.func @transform_14(%arg0: i32) -> (i32, i32, i32) {
    %c0_i32 = arith.constant 0 : i32
    %c0_i32_0 = arith.constant 0 : i32
    %c0_i32_1 = arith.constant 0 : i32
    %c0_i32_2 = arith.constant 0 : i32
    return %c0_i32, %c0_i32_0, %c0_i32_1 : i32, i32, i32
  }
  func.func @transform_15(%arg0: i32) -> (i32, i32, i32) {
    %c0_i32 = arith.constant 0 : i32
    %c0_i32_0 = arith.constant 0 : i32
    %c0_i32_1 = arith.constant 0 : i32
    %c0_i32_2 = arith.constant 0 : i32
    return %c0_i32, %c0_i32_0, %c0_i32_1 : i32, i32, i32
  }
  func.func @transform_16(%arg0: i32) -> (i32, i32, i32) {
    %c0_i32 = arith.constant 0 : i32
    %c0_i32_0 = arith.constant 0 : i32
    %c0_i32_1 = arith.constant 0 : i32
    %c0_i32_2 = arith.constant 0 : i32
    return %c0_i32, %c0_i32_0, %c0_i32_1 : i32, i32, i32
  }
  func.func @transform_17(%arg0: i32) -> (i32, i32, i32) {
    %c0_i32 = arith.constant 0 : i32
    %c0_i32_0 = arith.constant 0 : i32
    %c0_i32_1 = arith.constant 0 : i32
    %c0_i32_2 = arith.constant 0 : i32
    return %c0_i32, %c0_i32_0, %c0_i32_1 : i32, i32, i32
  }
  func.func @transform_18(%arg0: i32) -> (i32, i32, i32) {
    %c0_i32 = arith.constant 0 : i32
    %c0_i32_0 = arith.constant 0 : i32
    %c0_i32_1 = arith.constant 0 : i32
    %c0_i32_2 = arith.constant 0 : i32
    return %c0_i32, %c0_i32_0, %c0_i32_1 : i32, i32, i32
  }
  func.func @transform_19(%arg0: i32) -> (i32, i32, i32) {
    %c0_i32 = arith.constant 0 : i32
    %c0_i32_0 = arith.constant 0 : i32
    %c0_i32_1 = arith.constant 0 : i32
    %c0_i32_2 = arith.constant 0 : i32
    return %c0_i32, %c0_i32_0, %c0_i32_1 : i32, i32, i32
  }
  func.func @transform_20(%arg0: i32) -> (i32, i32, i32) {
    %c0_i32 = arith.constant 0 : i32
    %c0_i32_0 = arith.constant 0 : i32
    %c0_i32_1 = arith.constant 0 : i32
    %c0_i32_2 = arith.constant 0 : i32
    return %c0_i32, %c0_i32_0, %c0_i32_1 : i32, i32, i32
  }
  func.func @transform_21(%arg0: i32) -> (i32, i32, i32) {
    %c0_i32 = arith.constant 0 : i32
    %c0_i32_0 = arith.constant 0 : i32
    %c0_i32_1 = arith.constant 0 : i32
    %c0_i32_2 = arith.constant 0 : i32
    return %c0_i32, %c0_i32_0, %c0_i32_1 : i32, i32, i32
  }
  func.func @transform_22(%arg0: i32) -> (i32, i32, i32) {
    %c0_i32 = arith.constant 0 : i32
    %c0_i32_0 = arith.constant 0 : i32
    %c0_i32_1 = arith.constant 0 : i32
    return %arg0, %c0_i32, %c0_i32_0 : i32, i32, i32
  }
}

</mosaic_0001>

<bundles_post_ra>
// kernel: transformer_encode.1
= control target key start
LH: loop header
LB: loop body
LE: loop exit
PB: predicated region body
PF: predicated region fallthrough
CT: control target
= control target key end

     0   :  { %s4675_s0 = inlined_call_operand.vmem [shape: s32[2,32,1], index: 0, kind: input, shape index: {}]   ;;  %s4676_s1 = inlined_call_operand.vmem [shape: s32[2,2,16], index: 1, kind: input, shape index: {}]   ;;  %s4677_s2 = inlined_call_operand.vmem [shape: f32[56,32], index: 2, kind: input, shape index: {}]   ;;  %s4678_s3 = inlined_call_operand.vmem [shape: f32[32,32], index: 3, kind: input, shape index: {}]   ;;  %s4679_s4 = inlined_call_operand.vmem [shape: f32[1,32], index: 4, kind: input, shape index: {}]   ;;  %s4680_s5 = inlined_call_operand.vmem [shape: f32[1,32], index: 5, kind: input, shape index: {}]   ;;  %s4681_s6 = inlined_call_operand.vmem [shape: f32[4,32,16], index: 6, kind: input, shape index: {}]   ;;  %s4682_s7 = inlined_call_operand.vmem [shape: f32[4,1,16], index: 7, kind: input, shape index: {}]   ;;  %s4683_s8 = inlined_call_operand.vmem [shape: f32[4,32,16], index: 8, kind: input, shape index: {}]   ;;  %s4684_s9 = inlined_call_operand.vmem [shape: f32[4,1,16], index: 9, kind: input, shape index: {}]   ;;  %s4685_s10 = inlined_call_operand.vmem [shape: f32[4,32,16], index: 10, kind: input, shape index: {}]   ;;  %s4686_s11 = inlined_call_operand.vmem [shape: f32[4,1,16], index: 11, kind: input, shape index: {}]   ;;  %s4687_s12 = inlined_call_operand.vmem [shape: f32[4,16,32], index: 12, kind: input, shape index: {}]   ;;  %s4688_s13 = inlined_call_operand.vmem [shape: f32[2,1,32], index: 13, kind: input, shape index: {}]   ;;  %s4689_s14 = inlined_call_operand.vmem [shape: f32[2,32,64], index: 14, kind: input, shape index: {}]   ;;  %s4690_s15 = inlined_call_operand.vmem [shape: f32[2,1,64], index: 15, kind: input, shape index: {}]   ;;  %s4691_s16 = inlined_call_operand.vmem [shape: f32[2,64,32], index: 16, kind: input, shape index: {}]   ;;  %s4692_s17 = inlined_call_operand.vmem [shape: f32[2,1,32], index: 17, kind: input, shape index: {}]   ;;  %s4693_s18 = inlined_call_operand.vmem [shape: f32[2,1,32], index: 18, kind: input, shape index: {}]   ;;  %s4694_s19 = inlined_call_operand.vmem [shape: f32[2,1,32], index: 19, kind: input, shape index: {}]   ;;  %s4695_s20 = inlined_call_operand.vmem [shape: f32[2,1,32], index: 20, kind: input, shape index: {}]   ;;  %s4696_s21 = inlined_call_operand.vmem [shape: f32[2,1,32], index: 21, kind: input, shape index: {}]   ;;  %s4697_s22 = inlined_call_operand.hbm [shape: f32[2,32,32], index: 22, kind: output, shape index: {}]  }
   0x1   :  { %4710 = sst [smem:[#allocation12_spill]] %s4675_s0 }
   0x2   :  { %4711 = sst [smem:[#allocation13_spill]] %s4676_s1 }
   0x3   :  { %4712 = sst [smem:[#allocation14_spill]] %s4677_s2 }
   0x4   :  { %4713 = sst [smem:[#allocation15_spill]] %s4678_s3 }
   0x5   :  { %4714 = sst [smem:[#allocation16_spill]] %s4679_s4 }
   0x6   :  { %4715 = sst [smem:[#allocation17_spill]] %s4680_s5 }
   0x7   :  { %4716 = sst [smem:[#allocation18_spill]] %s4681_s6 }
   0x8   :  { %4717 = sst [smem:[#allocation19_spill]] %s4682_s7 }
   0x9   :  { %4718 = sst [smem:[#allocation20_spill]] %s4683_s8 }
   0xa   :  { %4719 = sst [smem:[#allocation21_spill]] %s4684_s9 }
   0xb   :  { %4720 = sst [smem:[#allocation22_spill]] %s4685_s10 }
   0xc   :  { %27 = vsyncpa [#allocation3], 0 }
   0xd   :  { %29 = vsyncpa [#allocation3 + $0x1], 0  ;;  %s3699_s3 = smov 0   ;;  %s3701_s28 = smov 0  }
   0xe   :  { %s3703_s29 = smov 0   ;;  %s3705_s30 = smov 0  }
   0xf LB: > { %4721 = sst [smem:[#allocation5_spill]] %s3565_s3  ;;  %s3720_s4 = sadd.s32 4294967295, %s3577_s30   ;;  %s3577_s30 = sphi %s3705_s30, %s4745_s30   ;;  %s3573_s29 = sphi %s3703_s29, %s4750_s29   ;;  %s3569_s28 = sphi %s3701_s28, %s4749_s28   ;;  %s3565_s3 = sphi %s3699_s3, %s4748_s3  }
  0x10   : > { %4722 = sst [smem:[#allocation6_spill]] %s3573_s29  ;;  %s3094_s0 = sadd.s32 4294967294, %s3577_s30  }
  0x11   : > { %4723 = sst [smem:[#allocation7_spill]] %s3577_s30  ;;  %s3724_s23 = sadd.s32 1, %s3577_s30  }
  0x12   : > { %4724 = sst [smem:[#allocation8_spill]] %s3724_s23  ;;  %s514_s1 = sadd.s32 1, %s3573_s29 }
  0x13   : > { %s511_s5 = ssub.s32 %s3577_s30, %s3724_s23  ;;  %p524_p0 = scmp.ne.s32.totalorder %s3573_s29, %s3569_s28 }
  0x14   : > { %p512_p1 = scmp.eq.s32.totalorder %s511_s5, 0  ;;  %p525_p2 = scmp.eq.s32.totalorder %s3720_s4, 1 }
  0x15   : > { %p530_p3 = scmp.ne.s32.totalorder %s3569_s28, %s3565_s3  ;;  %p531_p4 = scmp.eq.s32.totalorder %s3094_s0, 1 }
  0x16   : > { %s3735_s24 = scalar_select %p512_p1, %s3573_s29, %s514_s1  }
  0x17   : > { %p3737_p5 = por %p525_p2, %p524_p0  ;;  %p3741_p6 = por %p531_p4, %p530_p3 }
  0x18   : > { %4725 = sst [smem:[#allocation9_spill]] %s3735_s24  ;;  %p3097_p7 = scmp.ge.s32.totalorder %s3577_s30, 1 }
  0x19   : > { %s4726_s6 = scalar_select %p3737_p5, 1, 0 }
  0x1a   : > { %s4728_s25 = scalar_select %p3741_p6, 1, 0 }
  0x1b   : > { %4727 = sst [smem:[#allocation10_spill]] %s4726_s6  ;;  %p624_p8 = scmp.lt.s32.totalorder %s3577_s30, 3 }
  0x1c   : > { %4729 = sst [smem:[#allocation11_spill]] %s4728_s25 }
  0x1d   : > { %p625_p9 = pnand %p3097_p7, %p624_p8 }
  0x1e   : > { %p690_p10 = scmp.lt.s32.totalorder (!%p625_p9), %s3720_s4, 1  ;;  %s4730_s27 = sld [smem:[#allocation14_spill]] (!%p625_p9) }
  0x1f   : > { %628 = sbr.rel (%p625_p9) target bundleno = 4912 (0x1330), region = 108  ;;  %s4731_s30 = sld [smem:[#allocation12_spill]] (!%p625_p9) }
  0x20   : > { %s4732_s25 = sld [smem:[#allocation15_spill]] (!%p625_p9)  ;;  %s687_s2 = sand.u32 (!%p625_p9), 1, %s3569_s28  }
  0x21   : > { %s4734_s8 = sld [smem:[#allocation20_spill]] (!%p625_p9)  ;;  %s3314_s3 = sshll.u32 (!%p625_p9), %s3720_s4, 5 }
  0x22   : > { %s4735_s10 = sld [smem:[#allocation22_spill]] (!%p625_p9)  ;;  %s3016_s26 = scalar_lea.hbm (!%p625_p9), %s4697_s22, %s3314_s3 }
  0x23   : > { %s4736_s1 = sld [smem:[#allocation16_spill]] (!%p625_p9) }
  0x24   : > { %v735_v0 = vld [vmem:[%s4730_s27 + $0x30] sm:$0xff]  ;;  %v3579_v1 = vmov 0   ;;  %v734_v2 = vld [vmem:[%s4730_s27 + $0x28] sm:$0xff]  ;;  %s3755_s5 = scalar_select %p690_p10, %s3720_s4, 1  ;;  %v733_v3 = vld [vmem:[%s4730_s27 + $0x20] sm:$0xff]  ;;  %v703_v12 = vlaneseq  ;;  %vm740_vm0 = vcmask 457728  }
  0x25   : > { %3363 = vset.pattern.permute.xlu0 %v3579_v1  ;;  %3364 = vset.pattern.permute.xlu1 %v3579_v1  ;;  %v732_v4 = vld [vmem:[%s4730_s27 + $0x18] sm:$0xff]  ;;  %v731_v7 = vld [vmem:[%s4730_s27 + $0x10] sm:$0xff]  ;;  %v730_v8 = vld [vmem:[%s4730_s27 + $0x8] sm:$0xff]  ;;  %v3580_v15 = vmov 0.0   ;;  %vm784_vm5 = vcmask 261120   ;;  %v3581_v39 = vmov 32.0  }
  0x26   : > { %762 = vmatpush.msra.mxu0 %v735_v0  ;;  %s3313_s23 = sshll.u32 %s3755_s5, 5  ;;  %v729_v11 = vld [vmem:[%s4730_s27] sm:$0xff]  ;;  %v704_v13 = vand.u32 127, %v703_v12  ;;  %v737_v27 = vld [vmem:[%s4732_s25 + $0x8] sm:$0xff]  ;;  %v738_v31 = vld [vmem:[%s4732_s25 + $0x10] sm:$0xff]  ;;  %3393 = vrcp.f32 %v3581_v39  ;;  %s4737_s24 = sld [smem:[#allocation17_spill]] }
  0x27   : > { %s694_s6 = scalar_lea.vmem %s4731_s30, %s3313_s23  ;;  %v736_v23 = vld [vmem:[%s4732_s25] sm:$0xff]  ;;  %v739_v35 = vld [vmem:[%s4732_s25 + $0x18] sm:$0xff]  ;;  %s4733_s23 = sld [smem:[#allocation18_spill]] }
  0x28   : > { %763 = vmatpush.msra.mxu0 %v734_v2  ;;  %v699_v5 = vld [vmem:[%s694_s6] sm:$0xff]  ;;  %v701_v6 = vld [vmem:[%s694_s6 + $0x10] sm:$0xff]  ;;  %v700_v9 = vld [vmem:[%s694_s6 + $0x8] sm:$0xff]  ;;  %s4738_s9 = sld [smem:[#allocation21_spill]]  ;;  %s3098_s25 = sshll.u32 %s687_s2, 5 }
  0x29   : > { %706 = vperm.xlu0 %3363, %v699_v5   ;;  %712 = vperm.xlu1 %3364, %v701_v6   ;;  %v702_v10 = vld [vmem:[%s694_s6 + $0x18] sm:$0xff]  ;;  %v953_v6 = vld [vmem:[%s4734_s8 + $0x10] sm:$0xff]  ;;  %v951_v12 = vld [vmem:[%s4734_s8] sm:$0xff]  ;;  %s4739_s7 = sld [smem:[#allocation19_spill]]  ;;  %s3101_s6 = sshll.u32 %s3755_s5, 1 }
  0x2a   : > { %764 = vmatpush.msra.mxu0 %v733_v3  ;;  %v954_v3 = vld [vmem:[%s4734_s8 + $0x18] sm:$0xff]  ;;  %s4740_s0 = sld [smem:[#allocation13_spill]]  ;;  %s3019_s4 = sshll.u32 %s3016_s26, 4  ;;  %s3020_s4 = int_to_ptr.hbm [resolvable:$true] %s3019_s4 }
  0x2b   : > { %971 = vmatpush.msra.mxu2 %v954_v3  ;;  %s3005_s5 = scalar_lea.sflag [#allocation3], %s687_s2  ;;  %s3529_s29 = sshra.s32 %s3020_s4, 4  ;;  %s3530_s29 = int_to_ptr.hbm [resolvable:$true] %s3529_s29 }
  0x2c   : > { %765 = vmatpush.msra.mxu0 %v732_v4  ;;  %v3394_v40 = vpop.eup %3393  ;;  %v991_v4 = vld [vmem:[%s4735_s10 + $0x18] sm:$0xff]  ;;  %p3536_p0 = scmp.lt.s32.totalorder %s3530_s29, %s4697_s22 }
  0x2d   : > { %v798_v41 = vmul.f32 32.0, %v3394_v40  ;;  %vm802_vm6 = vweird.f32 %v3394_v40  ;;  %v901_v2 = vld [vmem:[%s4733_s23 + $0x18] sm:$0xff]  ;;  %1008 = vmatpush.msra.mxu3 %v991_v4  ;;  %v900_v5 = vld [vmem:[%s4733_s23 + $0x10] sm:$0xff]  ;;  %972 = vmatpush.msra.mxu2 %v953_v6 }
  0x2e   : > { %766 = vmatpush.msra.mxu0 %v731_v7  ;;  %930 = vmatpush.msra.mxu1 %v901_v2  ;;  %v990_v7 = vld [vmem:[%s4735_s10 + $0x10] sm:$0xff] }
  0x2f   : > { %v799_v42 = vsub.f32 1.0, %v798_v41  ;;  %1009 = vmatpush.msra.mxu3 %v990_v7 }
  0x30   : > { %767 = vmatpush.msra.mxu0 %v730_v8  ;;  %931 = vmatpush.msra.mxu1 %v900_v5  ;;  %v899_v8 = vld [vmem:[%s4733_s23 + $0x8] sm:$0xff] }
  0x31   : > { %709 = vperm.xlu0 %3363, %v700_v9   ;;  %715 = vperm.xlu1 %3364, %v702_v10   ;;  %v800_v43 = vmul.f32 %v3394_v40, %v799_v42  ;;  %v952_v9 = vld [vmem:[%s4734_s8 + $0x8] sm:$0xff] }
  0x32   : > { %768 = vmatpush.msra.mxu0 %v729_v11  ;;  %v989_v10 = vld [vmem:[%s4735_s10 + $0x8] sm:$0xff]  ;;  %932 = vmatpush.msra.mxu1 %v899_v8  ;;  %v898_v11 = vld [vmem:[%s4733_s23] sm:$0xff] }
  0x33   : > { %v801_v44 = vadd.f32 %v3394_v40, %v800_v43  ;;  %973 = vmatpush.msra.mxu2 %v952_v9  ;;  %1010 = vmatpush.msra.mxu3 %v989_v10  ;;  %v3368_v9 = vld [vmem:[%s4738_s9] ss:$0 sm:$0xff] }
  0x34   : > { %933 = vmatpush.msra.mxu1 %v898_v11  ;;  %v3369_v11 = vld [vmem:[%s4686_s11] ss:$0 sm:$0xff] }
  0x35   : > { %v3796_v45 = vsel %vm802_vm6, %v3394_v40, %v801_v44  ;;  %974 = vmatpush.msra.mxu2 %v951_v12 }
  0x9b   : > { %v707_v14 = vpop.permute.xlu0 %706  ;;  %v713_v18 = vpop.permute.xlu1 %712 }
  0x9c   : > { %vm717_vm1 = vcmp.eq.s32.totalorder %v707_v14, %v704_v13  ;;  %vm719_vm3 = vcmp.eq.s32.totalorder %v713_v18, %v704_v13 }
  0x9d   : > { %v3102_v16 = vsel %vm717_vm1, 1.0, %v3580_v15  ;;  %v3104_v20 = vsel %vm719_vm3, 1.0, %v3580_v15  ;;  %vm1026_vm3 = vcmask 130048  }
  0x9e   : > { %3106 = vmatmul.msk.f32.vlgmr.msra.gmra.mxu0 %vm740_vm0, %v3102_v16 }
  0xa3   : > { %v710_v17 = vpop.permute.xlu0 %709  ;;  %v716_v21 = vpop.permute.xlu1 %715 }
  0xa4   : > { %vm718_vm2 = vcmp.eq.s32.totalorder %v710_v17, %v704_v13  ;;  %vm720_vm4 = vcmp.eq.s32.totalorder %v716_v21, %v704_v13  ;;  %v988_v13 = vld [vmem:[%s4735_s10] sm:$0xff] }
  0xa5   : > { %v3103_v19 = vsel %vm718_vm2, 1.0, %v3580_v15  ;;  %v3105_v22 = vsel %vm720_vm4, 1.0, %v3580_v15  ;;  %1011 = vmatpush.msra.mxu3 %v988_v13 }
  0xa6   : > { %3107 = vmatmul.msk.f32.gmra.mxu0 %vm740_vm0, %v3103_v19 }
  0xae   : > { %3108 = vmatmul.msk.f32.gmra.mxu0 %vm740_vm0, %v3104_v20 }
  0xb6   : > { %3109 = vmatmul.msk.f32.gmra.mxu0 %vm740_vm0, %v3105_v22 }
 0x11b   : > { %v770_v24 = vpop.f32.mrf.mxu0 }
 0x11c   : > { %v771_v25 = vadd.f32 %v770_v24, %v736_v23 }
 0x11e   : > { %v785_v26 = vsel %vm784_vm5, %v771_v25, 0.0 }
 0x11f   : > { %786 = vadd.xlane.f32.xlu2 %v785_v26 }
 0x123   : > { %v773_v28 = vpop.f32.mrf.mxu0 }
 0x124   : > { %v774_v29 = vadd.f32 %v773_v28, %v737_v27 }
 0x126   : > { %v788_v30 = vsel %vm784_vm5, %v774_v29, 0.0 }
 0x127   : > { %789 = vadd.xlane.f32.xlu2 %v788_v30 }
 0x12b   : > { %v776_v32 = vpop.f32.mrf.mxu0 }
 0x12c   : > { %v777_v33 = vadd.f32 %v776_v32, %v738_v31  ;;  %v3365_v31 = vld [vmem:[%s4736_s1] ss:$0 sm:$0xff]  ;;  %s698_s1 = scalar_lea.vmem %s4740_s0, %s3101_s6  ;;  %s3535_s6 = scalar_lea.hbm %s4697_s22, 64 }
 0x12e   : > { %v791_v34 = vsel %vm784_vm5, %v777_v33, 0.0 }
 0x12f   : > { %792 = vadd.xlane.f32.xlu2 %v791_v34  ;;  %v3366_v34 = vld [vmem:[%s4737_s24] ss:$0 sm:$0xff]  ;;  %s4628_s24 = scalar_lea.vmem [#allocation2], %s3098_s25  ;;  %s3531_s25 = scalar_lea.hbm %s3530_s29, 32 }
 0x130   : > { %p3532_p11 = scmp.ne.s32.totalorder %s3530_s29, %s3531_s25  ;;  %p3537_p1 = scmp.lt.s32.totalorder %s3535_s6, %s3531_s25 }
 0x132   : > { %p3533_p12 = pnand %p3532_p11, %p3737_p5  ;;  %p3538_p2 = por %p3537_p1, %p3536_p0 }
 0x133   : > { %v779_v36 = vpop.f32.mrf.mxu0 }
 0x134   : > { %v780_v37 = vadd.f32 %v779_v36, %v739_v35  ;;  %p3534_p13 = pneg %p3533_p12 }
 0x136   : > { %v794_v38 = vsel %vm784_vm5, %v780_v37, 0.0  ;;  %p3539_p3 = pnand %p3538_p2, %p3534_p13 }
 0x137   : > { %795 = vadd.xlane.f32.xlu2 %v794_v38 }
 0x192   : > { %v787_v46 = vpop.xlane.xlu2 %786 }
 0x193   : > { %v804_v47 = vmul.f32 %v3796_v45, %v787_v46 }
 0x195   : > { %v3799_v48 = vsub.f32 %v771_v25, %v804_v47 }
 0x197   : > { %v812_v49 = vmul.f32 %v3799_v48, %v3799_v48 }
 0x199   : > { %v816_v50 = vsel %vm784_vm5, %v812_v49, 0.0 }
 0x19a   : > { %817 = vadd.xlane.f32.xlu0 %v816_v50  ;;  %v790_v51 = vpop.xlane.xlu2 %789 }
 0x19b   : > { %v805_v52 = vmul.f32 %v3796_v45, %v790_v51 }
 0x19d   : > { %v3805_v53 = vsub.f32 %v774_v29, %v805_v52 }
 0x19f   : > { %v813_v54 = vmul.f32 %v3805_v53, %v3805_v53 }
 0x1a1   : > { %v819_v55 = vsel %vm784_vm5, %v813_v54, 0.0 }
 0x1a2   : > { %820 = vadd.xlane.f32.xlu1 %v819_v55  ;;  %v793_v56 = vpop.xlane.xlu2 %792 }
 0x1a3   : > { %v806_v57 = vmul.f32 %v3796_v45, %v793_v56 }
 0x1a5   : > { %v3811_v58 = vsub.f32 %v777_v33, %v806_v57 }
 0x1a7   : > { %v814_v59 = vmul.f32 %v3811_v58, %v3811_v58 }
 0x1a9   : > { %v822_v60 = vsel %vm784_vm5, %v814_v59, 0.0 }
 0x1aa   : > { %823 = vadd.xlane.f32.xlu2 %v822_v60  ;;  %v796_v61 = vpop.xlane.xlu2 %795 }
 0x1ab   : > { %v807_v62 = vmul.f32 %v3796_v45, %v796_v61 }
 0x1ad   : > { %v3817_v63 = vsub.f32 %v780_v37, %v807_v62 }
 0x1af   : > { %v815_v0 = vmul.f32 %v3817_v63, %v3817_v63 }
 0x1b1   : > { %v825_v1 = vsel %vm784_vm5, %v815_v0, 0.0 }
 0x1b2   : > { %826 = vadd.xlane.f32.xlu2 %v825_v1 }
 0x20d   : > { %v818_v14 = vpop.xlane.xlu0 %817 }
 0x20e   : > { %v828_v15 = vmul.f32 %v818_v14, %v3796_v45 }
 0x210   : > { %v832_v16 = vadd.f32 1e-12, %v828_v15 }
 0x212   : > { %3395 = vrsqrt.f32 %v832_v16  ;;  %vm842_vm8 = vweird.f32 %v832_v16 }
 0x215   : > { %v821_v17 = vpop.xlane.xlu1 %820 }
 0x216   : > { %v829_v18 = vmul.f32 %v821_v17, %v3796_v45 }
 0x218   : > { %v3396_v19 = vpop.eup %3395  ;;  %v833_v20 = vadd.f32 1e-12, %v829_v18 }
 0x219   : > { %v837_v21 = vmul.f32 %v3396_v19, %v832_v16  ;;  %vm843_vm7 = vweird.f32 %v3396_v19 }
 0x21a   : > { %3397 = vrsqrt.f32 %v833_v20  ;;  %vm844_vm9 = vmor %vm842_vm8, %vm843_vm7  ;;  %vm852_vm11 = vweird.f32 %v833_v20 }
 0x21b   : > { %v838_v22 = vmul.f32 %v3396_v19, %v837_v21 }
 0x21d   : > { %v839_v23 = vmul.f32 0.5, %v838_v22  ;;  %v824_v24 = vpop.xlane.xlu2 %823 }
 0x21e   : > { %v830_v25 = vmul.f32 %v824_v24, %v3796_v45  ;;  %v3136_v24 = vld [vmem:[%s4733_s23 + $0x30] sm:$0xff] }
 0x21f   : > { %v840_v26 = vsub.f32 1.5, %v839_v23 }
 0x220   : > { %v3398_v27 = vpop.eup %3397  ;;  %v834_v28 = vadd.f32 1e-12, %v830_v25 }
 0x221   : > { %v841_v29 = vmul.f32 %v3396_v19, %v840_v26  ;;  %v847_v30 = vmul.f32 %v3398_v27, %v833_v20  ;;  %vm853_vm10 = vweird.f32 %v3398_v27  ;;  %v3137_v20 = vld [vmem:[%s4733_s23 + $0x38] sm:$0xff]  ;;  %v3135_v26 = vld [vmem:[%s4733_s23 + $0x28] sm:$0xff] }
 0x222   : > { %3399 = vrsqrt.f32 %v834_v28  ;;  %vm854_vm12 = vmor %vm852_vm11, %vm853_vm10  ;;  %vm862_vm14 = vweird.f32 %v834_v28 }
 0x223   : > { %v845_v32 = vsel %vm844_vm9, %v3396_v19, %v841_v29  ;;  %v848_v33 = vmul.f32 %v3398_v27, %v847_v30 }
 0x224   : > { %v876_v35 = vmul.f32 %v845_v32, %v3799_v48 }
 0x225   : > { %v849_v36 = vmul.f32 0.5, %v848_v33  ;;  %v827_v37 = vpop.xlane.xlu2 %826 }
 0x226   : > { %v883_v38 = vmul.f32 %v3365_v31, %v876_v35  ;;  %v831_v39 = vmul.f32 %v827_v37, %v3796_v45 }
 0x227   : > { %v850_v40 = vsub.f32 1.5, %v849_v36  ;;  %v3155_v36 = vld [vmem:[%s4735_s10 + $0x38] sm:$0xff] }
 0x228   : > { %v3400_v41 = vpop.eup %3399  ;;  %v3869_v42 = vadd.f32 %v3366_v34, %v883_v38  ;;  %v835_v43 = vadd.f32 1e-12, %v831_v39  ;;  %v3154_v38 = vld [vmem:[%s4735_s10 + $0x30] sm:$0xff] }
 0x229   : > { %v851_v44 = vmul.f32 %v3398_v27, %v850_v40  ;;  %v857_v46 = vmul.f32 %v3400_v41, %v834_v28  ;;  %vm863_vm13 = vweird.f32 %v3400_v41  ;;  %v3153_v40 = vld [vmem:[%s4735_s10 + $0x28] sm:$0xff] }
 0x22a   : > { %3401 = vrsqrt.f32 %v835_v43  ;;  %3110 = vmatmul.msk.f32.vlgmr.msra.gmra.mxu1 %vm784_vm5, %v3869_v42  ;;  %3114 = vmatmul.msk.f32.vlgmr.msra.gmra.mxu2 %vm784_vm5, %v3869_v42  ;;  %vm864_vm15 = vmor %vm862_vm14, %vm863_vm13  ;;  %vm872_vm1 = vweird.f32 %v835_v43 }
 0x22b   : > { %v855_v47 = vsel %vm854_vm12, %v3398_v27, %v851_v44  ;;  %v858_v48 = vmul.f32 %v3400_v41, %v857_v46  ;;  %3118 = vmatmul.msk.f32.vlgmr.msra.gmra.mxu3 %vm784_vm5, %v3869_v42  ;;  %v3134_v27 = vld [vmem:[%s4733_s23 + $0x20] sm:$0xff] }
 0x22c   : > { %v877_v49 = vmul.f32 %v855_v47, %v3805_v53  ;;  %v894_v46 = vld [vmem:[%s698_s1] sm:$0x3]  ;;  %s3017_s1 = sshll.u32 %s4628_s24, 4  ;;  %s3018_s1 = int_to_ptr.vmem [resolvable:$true] %s3017_s1 }
 0x22d   : > { %v859_v50 = vmul.f32 0.5, %v858_v48  ;;  %v895_v47 = vcvt.s32.f32 %v894_v46 }
 0x22e   : > { %v884_v51 = vmul.f32 %v3365_v31, %v877_v49 }
 0x22f   : > { %v860_v52 = vsub.f32 1.5, %v859_v50  ;;  %v896_v48 = vsub.f32 1.0, %v895_v47 }
 0x230   : > { %v3402_v54 = vpop.eup %3401  ;;  %v3878_v55 = vadd.f32 %v3366_v34, %v884_v51 }
 0x231   : > { %v861_v56 = vmul.f32 %v3400_v41, %v860_v52  ;;  %v867_v57 = vmul.f32 %v3402_v54, %v835_v43  ;;  %vm873_vm0 = vweird.f32 %v3402_v54  ;;  %v3152_v43 = vld [vmem:[%s4735_s10 + $0x20] sm:$0xff]  ;;  %v897_v49 = vmul.f32 -1e+09, %v896_v48 }
 0x232   : > { %3111 = vmatmul.msk.f32.gmra.mxu1 %vm784_vm5, %v3878_v55  ;;  %3115 = vmatmul.msk.f32.gmra.mxu2 %vm784_vm5, %v3878_v55  ;;  %vm874_vm2 = vmor %vm872_vm1, %vm873_vm0  ;;  %vm1793_vm1 = vcmask 523264  }
 0x233   : > { %v865_v59 = vsel %vm864_vm15, %v3400_v41, %v861_v56  ;;  %v868_v60 = vmul.f32 %v3402_v54, %v867_v57  ;;  %3119 = vmatmul.msk.f32.gmra.mxu3 %vm784_vm5, %v3878_v55  ;;  %v3967_v50 = vperm.slane %v897_v49, 0 }
 0x234   : > { %v878_v53 = vmul.f32 %v865_v59, %v3811_v58 }
 0x235   : > { %v869_v61 = vmul.f32 0.5, %v868_v60  ;;  %v3973_v60 = vperm.slane %v897_v49, 1 }
 0x236   : > { %v885_v62 = vmul.f32 %v3365_v31, %v878_v53 }
 0x237   : > { %v870_v0 = vsub.f32 1.5, %v869_v61 }
 0x238   : > { %v3887_v1 = vadd.f32 %v3366_v34, %v885_v62 }
 0x239   : > { %v871_v2 = vmul.f32 %v3402_v54, %v870_v0 }
 0x23a   : > { %3112 = vmatmul.msk.f32.gmra.mxu1 %vm784_vm5, %v3887_v1  ;;  %3116 = vmatmul.msk.f32.gmra.mxu2 %vm784_vm5, %v3887_v1 }
 0x23b   : > { %v875_v3 = vsel %vm874_vm2, %v3402_v54, %v871_v2  ;;  %3120 = vmatmul.msk.f32.gmra.mxu3 %vm784_vm5, %v3887_v1  ;;  %v3371_v2 = vld [vmem:[%s4686_s11 + $0x1] ss:$0 sm:$0xff] }
 0x23c   : > { %v879_v58 = vmul.f32 %v875_v3, %v3817_v63  ;;  %v3367_v63 = vld [vmem:[%s4739_s7] ss:$0 sm:$0xff] }
 0x23e   : > { %v886_v4 = vmul.f32 %v3365_v31, %v879_v58 }
 0x240   : > { %v3896_v5 = vadd.f32 %v3366_v34, %v886_v4 }
 0x242   : > { %3113 = vmatmul.msk.f32.gmra.mxu1 %vm784_vm5, %v3896_v5  ;;  %3117 = vmatmul.msk.f32.gmra.mxu2 %vm784_vm5, %v3896_v5 }
 0x243   : > { %3121 = vmatmul.msk.f32.gmra.mxu3 %vm784_vm5, %v3896_v5 }
 0x2a7   : > { %v935_v6 = vpop.f32.mrf.mxu1 }
 0x2a8   : > { %v936_v16 = vadd.f32 %v3367_v63, %v935_v6 }
 0x2aa   : > { %v947_v21 = vmul.f32 0.25, %v936_v16 }
 0x2ad   : > { %v976_v7 = vpop.f32.mrf.mxu2 }
 0x2ae   : > { %v1013_v8 = vpop.f32.mrf.mxu3  ;;  %v977_v19 = vadd.f32 %v3368_v9, %v976_v7 }
 0x2af   : > { %v938_v12 = vpop.f32.mrf.mxu1  ;;  %v1014_v18 = vadd.f32 %v3369_v11, %v1013_v8 }
 0x2b0   : > { %v939_v17 = vadd.f32 %v3367_v63, %v938_v12 }
 0x2b2   : > { %v948_v22 = vmul.f32 0.25, %v939_v17 }
 0x2b5   : > { %v979_v10 = vpop.f32.mrf.mxu2 }
 0x2b6   : > { %v980_v13 = vadd.f32 %v3368_v9, %v979_v10  ;;  %v1016_v14 = vpop.f32.mrf.mxu3 }
 0x2b7   : > { %v1017_v15 = vadd.f32 %v3369_v11, %v1016_v14  ;;  %v941_v28 = vpop.f32.mrf.mxu1 }
 0x2b8   : > { %3122 = vmatpush.xpose.msk.msrb.mxu1 %vm1026_vm3, %v980_v13  ;;  %3315 = vmatpush.xpose.msk.msrb.mxu3 %vm1026_vm3, %v980_v13  ;;  %v942_v33 = vadd.f32 %v3367_v63, %v941_v28 }
 0x2b9   : > { %1104 = vmatpush.msrb.mxu0 %v1017_v15  ;;  %3317 = vmatpush.msrb.mxu2 %v1017_v15 }
 0x2ba   : > { %v949_v37 = vmul.f32 0.25, %v942_v33 }
 0x2bb   : > { %1105 = vmatpush.msrb.mxu0 %v1014_v18  ;;  %3318 = vmatpush.msrb.mxu2 %v1014_v18 }
 0x2bc   : > { %3123 = vmatpush.xpose.msk.msrb.mxu1 %vm1026_vm3, %v977_v19  ;;  %3316 = vmatpush.xpose.msk.msrb.mxu3 %vm1026_vm3, %v977_v19 }
 0x2bd   : > { %v982_v23 = vpop.f32.mrf.mxu2 }
 0x2be   : > { %v1019_v25 = vpop.f32.mrf.mxu3  ;;  %v983_v35 = vadd.f32 %v3368_v9, %v982_v23  ;;  %v3146_v23 = vld [vmem:[%s4734_s8 + $0x38] sm:$0xff] }
 0x2bf   : > { %3124 = vmatmul.msk.f32.vlgmr.msrb.gmra.mxu1 %vm1026_vm3, %v947_v21  ;;  %3125 = vmatmul.msk.f32.vlgmr.msrb.gmra.mxu3 %vm1026_vm3, %v948_v22  ;;  %v1020_v34 = vadd.f32 %v3369_v11, %v1019_v25  ;;  %v944_v39 = vpop.f32.mrf.mxu1  ;;  %v3144_v25 = vld [vmem:[%s4734_s8 + $0x28] sm:$0xff] }
 0x2c0   : > { %1224 = vmatpush.msra.mxu1 %v3137_v20  ;;  %v945_v41 = vadd.f32 %v3367_v63, %v944_v39  ;;  %1267 = vmatpush.msra.mxu2 %v3146_v23 }
 0x2c2   : > { %1225 = vmatpush.msra.mxu1 %v3136_v24  ;;  %v950_v44 = vmul.f32 0.25, %v945_v41  ;;  %v3145_v24 = vld [vmem:[%s4734_s8 + $0x30] sm:$0xff] }
 0x2c3   : > { %1268 = vmatpush.msra.mxu2 %v3145_v24 }
 0x2c4   : > { %1226 = vmatpush.msra.mxu1 %v3135_v26  ;;  %v3143_v26 = vld [vmem:[%s4734_s8 + $0x20] sm:$0xff] }
 0x2c5   : > { %v985_v29 = vpop.f32.mrf.mxu2  ;;  %1269 = vmatpush.msra.mxu2 %v3144_v25 }
 0x2c6   : > { %1227 = vmatpush.msra.mxu1 %v3134_v27  ;;  %v986_v30 = vadd.f32 %v3368_v9, %v985_v29  ;;  %v1022_v31 = vpop.f32.mrf.mxu3 }
 0x2c7   : > { %v1023_v32 = vadd.f32 %v3369_v11, %v1022_v31  ;;  %3139 = vmatmul.msk.f32.vlgmr.msra.gmra.mxu1 %vm784_vm5, %v3869_v42  ;;  %1270 = vmatpush.msra.mxu2 %v3143_v26 }
 0x2c8   : > { %3128 = vmatpush.xpose.msk.msra.mxu3 %vm1026_vm3, %v986_v30 }
 0x2c9   : > { %1191 = vmatpush.msra.mxu0 %v1023_v32 }
 0x2cb   : > { %1192 = vmatpush.msra.mxu0 %v1020_v34 }
 0x2cc   : > { %3129 = vmatpush.xpose.msk.msra.mxu3 %vm1026_vm3, %v983_v35 }
 0x2cf   : > { %3130 = vmatmul.msk.f32.vlgmr.msra.gmra.mxu3 %vm1026_vm3, %v949_v37  ;;  %3140 = vmatmul.msk.f32.gmra.mxu1 %vm784_vm5, %v3878_v55 }
 0x2d0   : > { %1306 = vmatpush.msrb.mxu3 %v3155_v36 }
 0x2d2   : > { %1307 = vmatpush.msrb.mxu3 %v3154_v38 }
 0x2d4   : > { %1308 = vmatpush.msrb.mxu3 %v3153_v40 }
 0x2d6   : > { %1309 = vmatpush.msrb.mxu3 %v3152_v43 }
 0x2d7   : > { %3131 = vmatmul.msk.f32.gmra.mxu3 %vm1026_vm3, %v950_v44  ;;  %3141 = vmatmul.msk.f32.gmra.mxu1 %vm784_vm5, %v3887_v1 }
 0x2df   : > { %3142 = vmatmul.msk.f32.gmra.mxu1 %vm784_vm5, %v3896_v5  ;;  %3157 = vmatmul.msk.f32.vlgmr.msrb.gmra.mxu3 %vm784_vm5, %v3869_v42 }
 0x2e7   : > { %3158 = vmatmul.msk.f32.gmra.mxu3 %vm784_vm5, %v3878_v55 }
 0x2ef   : > { %3159 = vmatmul.msk.f32.gmra.mxu3 %vm784_vm5, %v3887_v1 }
 0x2f7   : > { %3160 = vmatmul.msk.f32.gmra.mxu3 %vm784_vm5, %v3896_v5 }
 0x33c   : > { %v1056_v51 = vpop.f32.mrf.mxu1 }
 0x33d   : > { %v1057_v52 = vadd.f32 %v1056_v51, %v3967_v50 }
 0x33f   : > { %v1062_v54 = vsel %vm1026_vm3, %v1057_v52, -inf }
 0x340   : > { %1063 = vmax.xlane.f32.xlu0 %v1062_v54 }
 0x342   : > { %v1059_v56 = vpop.f32.mrf.mxu3 }
 0x343   : > { %v1060_v57 = vadd.f32 %v1059_v56, %v3967_v50  ;;  %v3372_v56 = vld [vmem:[%s4738_s9 + $0x1] ss:$0 sm:$0xff] }
 0x344   : > { %v1229_v54 = vpop.f32.mrf.mxu1 }
 0x345   : > { %v1065_v59 = vsel %vm1026_vm3, %v1060_v57, -inf }
 0x346   : > { %1066 = vmax.xlane.f32.xlu2 %v1065_v59 }
 0x352   : > { %v1143_v53 = vpop.f32.mrf.mxu3 }
 0x353   : > { %v1144_v61 = vadd.f32 %v1143_v53, %v3973_v60 }
 0x355   : > { %v1149_v62 = vsel %vm1026_vm3, %v1144_v61, -inf }
 0x356   : > { %1150 = vmax.xlane.f32.xlu1 %v1149_v62  ;;  %v1232_v62 = vpop.f32.mrf.mxu1 }
 0x35a   : > { %v1146_v0 = vpop.f32.mrf.mxu3 }
 0x35b   : > { %v1147_v16 = vadd.f32 %v1146_v0, %v3973_v60 }
 0x35d   : > { %v1152_v20 = vsel %vm1026_vm3, %v1147_v16, -inf }
 0x362   : > { %v1311_v3 = vpop.f32.mrf.mxu3 }
 0x363   : > { %v3980_v58 = vadd.f32 %v3371_v2, %v1311_v3 }
 0x36a   : > { %v1314_v4 = vpop.f32.mrf.mxu3 }
 0x36b   : > { %v3982_v6 = vadd.f32 %v3371_v2, %v1314_v4 }
 0x372   : > { %v1317_v28 = vpop.f32.mrf.mxu3 }
 0x373   : > { %v1318_v38 = vadd.f32 %v3371_v2, %v1317_v28 }
 0x37a   : > { %v1320_v32 = vpop.f32.mrf.mxu3 }
 0x37b   : > { %v1321_v36 = vadd.f32 %v3371_v2, %v1320_v32 }
 0x3b3   : > { %v1064_v7 = vpop.xlane.xlu0 %1063 }
 0x3b4   : > { %v1068_v8 = vsub.f32 %v1057_v52, %v1064_v7  ;;  %v1235_v7 = vpop.f32.mrf.mxu1 }
 0x3b6   : > { %v1070_v9 = vmul.f32 1.442695, %v1068_v8 }
 0x3b8   : > { %3403 = vpow2.f32 %v1070_v9 }
 0x3b9   : > { %v1067_v63 = vpop.xlane.xlu2 %1066 }
 0x3ba   : > { %v1069_v10 = vsub.f32 %v1060_v57, %v1067_v63  ;;  %v3370_v57 = vld [vmem:[%s4739_s7 + $0x1] ss:$0 sm:$0xff] }
 0x3bb   : > { %v1233_v4 = vadd.f32 %v3370_v57, %v1232_v62 }
 0x3bc   : > { %v1072_v11 = vmul.f32 1.442695, %v1069_v10  ;;  %v1236_v10 = vadd.f32 %v3370_v57, %v1235_v7 }
 0x3bd   : > { %v1242_v8 = vmul.f32 0.25, %v1233_v4 }
 0x3be   : > { %v3404_v12 = vpop.eup %3403  ;;  %3405 = vpow2.f32 %v1072_v11 }
 0x3bf   : > { %v1074_v13 = vsel %vm1026_vm3, %v3404_v12, 0.0 }
 0x3c0   : > { %1075 = vadd.xlane.f32.xlu0 %v1074_v13  ;;  %v1238_v13 = vpop.f32.mrf.mxu1 }
 0x3c4   : > { %v3406_v14 = vpop.eup %3405 }
 0x3c5   : > { %v1077_v15 = vsel %vm1026_vm3, %v3406_v14, 0.0 }
 0x3c6   : > { %1078 = vadd.xlane.f32.xlu2 %v1077_v15 }
 0x3c9   : > { %v1151_v17 = vpop.xlane.xlu1 %1150 }
 0x3ca   : > { %v1155_v18 = vsub.f32 %v1144_v61, %v1151_v17  ;;  %v1230_v61 = vadd.f32 %v3370_v57, %v1229_v54 }
 0x3cc   : > { %v1157_v19 = vmul.f32 1.442695, %v1155_v18  ;;  %v1241_v2 = vmul.f32 0.25, %v1230_v61 }
 0x3ce   : > { %3407 = vpow2.f32 %v1157_v19  ;;  %1153 = vmax.xlane.f32.xlu2 %v1152_v20 }
 0x3d4   : > { %v3408_v21 = vpop.eup %3407 }
 0x3d5   : > { %v1161_v22 = vsel %vm1026_vm3, %v3408_v21, 0.0 }
 0x3d6   : > { %1162 = vadd.xlane.f32.xlu1 %v1161_v22 }
 0x433   : > { %v1076_v27 = vpop.xlane.xlu0 %1075 }
 0x434   : > { %3409 = vrcp.f32 %v1076_v27 }
 0x439   : > { %v1079_v29 = vpop.xlane.xlu2 %1078 }
 0x43a   : > { %v3410_v30 = vpop.eup %3409  ;;  %3411 = vrcp.f32 %v1079_v29 }
 0x43b   : > { %v1082_v31 = vmul.f32 %v3410_v30, %v3404_v12  ;;  %v1243_v12 = vmul.f32 0.25, %v1236_v10 }
 0x43d   : > { %3126 = vmatmul.msk.f32.vlgmr.msrb.gmra.mxu0 %vm1026_vm3, %v1082_v31 }
 0x440   : > { %v3412_v33 = vpop.eup %3411 }
 0x441   : > { %v1154_v34 = vpop.xlane.xlu2 %1153  ;;  %v1083_v35 = vmul.f32 %v3412_v33, %v3406_v14 }
 0x442   : > { %v1156_v37 = vsub.f32 %v1147_v16, %v1154_v34 }
 0x443   : > { %3127 = vmatmul.msk.f32.vlgmr.msrb.gmra.mxu2 %vm1026_vm3, %v1083_v35 }
 0x444   : > { %v1159_v39 = vmul.f32 1.442695, %v1156_v37  ;;  %1486 = vmatpush.msrb.mxu2 %v1321_v36 }
 0x446   : > { %3413 = vpow2.f32 %v1159_v39  ;;  %1487 = vmatpush.msrb.mxu2 %v1318_v38 }
 0x449   : > { %v1163_v40 = vpop.xlane.xlu1 %1162 }
 0x44a   : > { %3415 = vrcp.f32 %v1163_v40 }
 0x44b   : > { %3148 = vmatmul.msk.f32.vlgmr.msra.gmra.mxu2 %vm784_vm5, %v3869_v42 }
 0x44c   : > { %v3414_v41 = vpop.eup %3413 }
 0x44d   : > { %v1164_v43 = vsel %vm1026_vm3, %v3414_v41, 0.0 }
 0x44e   : > { %1165 = vadd.xlane.f32.xlu2 %v1164_v43 }
 0x450   : > { %v3416_v44 = vpop.eup %3415 }
 0x451   : > { %v1169_v46 = vmul.f32 %v3416_v44, %v3408_v21 }
 0x453   : > { %3132 = vmatmul.msk.f32.vlgmr.msra.gmra.mxu0 %vm1026_vm3, %v1169_v46  ;;  %3149 = vmatmul.msk.f32.gmra.mxu2 %vm784_vm5, %v3878_v55  ;;  %v1201_v46 = vld [vmem:[%s4687_s12 + $0x8] sm:$0xff] }
 0x45b   : > { %3150 = vmatmul.msk.f32.gmra.mxu2 %vm784_vm5, %v3887_v1 }
 0x463   : > { %3151 = vmatmul.msk.f32.gmra.mxu2 %vm784_vm5, %v3896_v5 }
 0x4c1   : > { %v1166_v47 = vpop.xlane.xlu2 %1165 }
 0x4c2   : > { %3417 = vrcp.f32 %v1166_v47  ;;  %v1200_v47 = vld [vmem:[%s4687_s12] sm:$0xff] }
 0x4c6   : > { %v4013_v48 = vpop.f32.mrf.mxu2 }
 0x4c8   : > { %v3418_v49 = vpop.eup %3417 }
 0x4c9   : > { %v1170_v51 = vmul.f32 %v3418_v49, %v3414_v41 }
 0x4cb   : > { %3133 = vmatmul.msk.f32.gmra.mxu0 %vm1026_vm3, %v1170_v51 }
 0x4ce   : > { %v1272_v52 = vpop.f32.mrf.mxu2 }
 0x4cf   : > { %v1273_v0 = vadd.f32 %v3372_v56, %v1272_v52 }
 0x4d6   : > { %v1275_v59 = vpop.f32.mrf.mxu2 }
 0x4d7   : > { %v1276_v53 = vadd.f32 %v3372_v56, %v1275_v59 }
 0x4d9   : > { %3161 = vmatpush.xpose.msk.msrb.mxu0 %vm1026_vm3, %v1276_v53 }
 0x4dd   : > { %3162 = vmatpush.xpose.msk.msrb.mxu0 %vm1026_vm3, %v1273_v0  ;;  %v3174_v0 = vld [vmem:[%s4687_s12 + $0x18] sm:$0xff] }
 0x4de   : > { %v1278_v3 = vpop.f32.mrf.mxu2  ;;  %1524 = vmatpush.msra.mxu3 %v3174_v0 }
 0x4df   : > { %v1279_v11 = vadd.f32 %v3372_v56, %v1278_v3 }
 0x4e0   : > { %3163 = vmatmul.msk.f32.vlgmr.msrb.gmra.mxu0 %vm1026_vm3, %v1241_v2 }
 0x4e1   : > { %1400 = vmatpush.msra.mxu0 %v3982_v6  ;;  %v1239_v6 = vadd.f32 %v3370_v57, %v1238_v13 }
 0x4e3   : > { %1401 = vmatpush.msra.mxu0 %v3980_v58  ;;  %v1244_v14 = vmul.f32 0.25, %v1239_v6  ;;  %v4032_v58 = vpop.f32.mrf.mxu0  ;;  %v3373_v6 = vld [vmem:[%s4688_s13] ss:$0 sm:$0xff] }
 0x4e5   : > { %1565 = vmatpush.msrb.mxu0 %v1201_v46 }
 0x4e6   : > { %v1281_v9 = vpop.f32.mrf.mxu2 }
 0x4e7   : > { %v1282_v63 = vadd.f32 %v3372_v56, %v1281_v9  ;;  %1566 = vmatpush.msrb.mxu0 %v1200_v47 }
 0x4e8   : > { %3164 = vmatmul.msk.f32.gmra.mxu0 %vm1026_vm3, %v1242_v8  ;;  %v3173_v8 = vld [vmem:[%s4687_s12 + $0x10] sm:$0xff] }
 0x4e9   : > { %3167 = vmatpush.xpose.msk.msrb.mxu1 %vm1026_vm3, %v1282_v63  ;;  %1525 = vmatpush.msra.mxu3 %v3173_v8 }
 0x4eb   : > { %v4034_v15 = vpop.f32.mrf.mxu0 }
 0x4ed   : > { %3168 = vmatpush.xpose.msk.msrb.mxu1 %vm1026_vm3, %v1279_v11 }
 0x4f0   : > { %3169 = vmatmul.msk.f32.vlgmr.msrb.gmra.mxu1 %vm1026_vm3, %v1243_v12 }
 0x4f8   : > { %3170 = vmatmul.msk.f32.gmra.mxu1 %vm1026_vm3, %v1244_v14 }
 0x548   : > { %v4036_v16 = vpop.f32.mrf.mxu0 }
 0x55d   : > { %v1352_v17 = vpop.f32.mrf.mxu0 }
 0x55e   : > { %v1353_v18 = vadd.f32 %v1352_v17, %v3967_v50 }
 0x560   : > { %v1358_v19 = vsel %vm1026_vm3, %v1353_v18, -inf }
 0x561   : > { %1359 = vmax.xlane.f32.xlu0 %v1358_v19 }
 0x565   : > { %v1355_v20 = vpop.f32.mrf.mxu0 }
 0x566   : > { %v1356_v21 = vadd.f32 %v1355_v20, %v3967_v50 }
 0x568   : > { %v1361_v22 = vsel %vm1026_vm3, %v1356_v21, -inf }
 0x569   : > { %1362 = vmax.xlane.f32.xlu1 %v1361_v22 }
 0x56d   : > { %v1438_v23 = vpop.f32.mrf.mxu1 }
 0x56e   : > { %v1439_v24 = vadd.f32 %v1438_v23, %v3973_v60 }
 0x570   : > { %v1444_v25 = vsel %vm1026_vm3, %v1439_v24, -inf }
 0x571   : > { %1445 = vmax.xlane.f32.xlu1 %v1444_v25 }
 0x575   : > { %v1441_v34 = vpop.f32.mrf.mxu1 }
 0x576   : > { %v1442_v35 = vadd.f32 %v1441_v34, %v3973_v60 }
 0x578   : > { %v1447_v41 = vsel %vm1026_vm3, %v1442_v35, -inf }
 0x5d4   : > { %v1360_v26 = vpop.xlane.xlu0 %1359 }
 0x5d5   : > { %v1364_v27 = vsub.f32 %v1353_v18, %v1360_v26 }
 0x5d7   : > { %v1366_v28 = vmul.f32 1.442695, %v1364_v27 }
 0x5d9   : > { %3419 = vpow2.f32 %v1366_v28 }
 0x5dc   : > { %v1363_v29 = vpop.xlane.xlu1 %1362 }
 0x5dd   : > { %v1365_v30 = vsub.f32 %v1356_v21, %v1363_v29 }
 0x5df   : > { %v3420_v31 = vpop.eup %3419  ;;  %v1368_v32 = vmul.f32 1.442695, %v1365_v30 }
 0x5e0   : > { %v1370_v33 = vsel %vm1026_vm3, %v3420_v31, 0.0 }
 0x5e1   : > { %3421 = vpow2.f32 %v1368_v32  ;;  %1371 = vadd.xlane.f32.xlu2 %v1370_v33 }
 0x5e4   : > { %v1446_v36 = vpop.xlane.xlu1 %1445 }
 0x5e5   : > { %v1450_v37 = vsub.f32 %v1439_v24, %v1446_v36 }
 0x5e7   : > { %v3422_v38 = vpop.eup %3421  ;;  %v1452_v39 = vmul.f32 1.442695, %v1450_v37 }
 0x5e8   : > { %v1373_v40 = vsel %vm1026_vm3, %v3422_v38, 0.0 }
 0x5e9   : > { %3423 = vpow2.f32 %v1452_v39  ;;  %1374 = vadd.xlane.f32.xlu0 %v1373_v40  ;;  %1448 = vmax.xlane.f32.xlu2 %v1447_v41 }
 0x5ef   : > { %v3424_v43 = vpop.eup %3423 }
 0x5f0   : > { %v1456_v44 = vsel %vm1026_vm3, %v3424_v43, 0.0 }
 0x5f1   : > { %1457 = vadd.xlane.f32.xlu0 %v1456_v44 }
 0x654   : > { %v1372_v49 = vpop.xlane.xlu2 %1371 }
 0x655   : > { %3425 = vrcp.f32 %v1372_v49 }
 0x65b   : > { %v3426_v51 = vpop.eup %3425 }
 0x65c   : > { %v1378_v52 = vmul.f32 %v3426_v51, %v3420_v31  ;;  %v1449_v54 = vpop.xlane.xlu2 %1448  ;;  %v1375_v56 = vpop.xlane.xlu0 %1374 }
 0x65d   : > { %v1451_v57 = vsub.f32 %v1442_v35, %v1449_v54  ;;  %3427 = vrcp.f32 %v1375_v56  ;;  %v1699_v54 = vld [vmem:[%s4689_s14 + $0x18] sm:$0xff]  ;;  %v1697_v56 = vld [vmem:[%s4689_s14 + $0x8] sm:$0xff] }
 0x65e   : > { %3165 = vmatmul.msk.f32.vlgmr.msra.gmra.mxu0 %vm1026_vm3, %v1378_v52  ;;  %1728 = vmatpush.msra.mxu1 %v1699_v54  ;;  %v3376_v54 = vld [vmem:[%s4690_s15] ss:$0 sm:$0xff] }
 0x65f   : > { %v1454_v59 = vmul.f32 1.442695, %v1451_v57  ;;  %v1696_v57 = vld [vmem:[%s4689_s14] sm:$0xff] }
 0x661   : > { %3429 = vpow2.f32 %v1454_v59 }
 0x663   : > { %v3428_v53 = vpop.eup %3427 }
 0x664   : > { %v1458_v61 = vpop.xlane.xlu0 %1457  ;;  %v1379_v62 = vmul.f32 %v3428_v53, %v3422_v38 }
 0x665   : > { %3431 = vrcp.f32 %v1458_v61 }
 0x666   : > { %3166 = vmatmul.msk.f32.gmra.mxu0 %vm1026_vm3, %v1379_v62 }
 0x667   : > { %v3430_v2 = vpop.eup %3429 }
 0x668   : > { %v1459_v3 = vsel %vm1026_vm3, %v3430_v2, 0.0 }
 0x669   : > { %1460 = vadd.xlane.f32.xlu1 %v1459_v3 }
 0x66b   : > { %v3432_v4 = vpop.eup %3431 }
 0x66c   : > { %v1464_v7 = vmul.f32 %v3432_v4, %v3424_v43 }
 0x66e   : > { %3171 = vmatmul.msk.f32.vlgmr.msrb.gmra.mxu2 %vm1026_vm3, %v1464_v7  ;;  %3179 = vmatmul.msk.f32.vlgmr.msrb.gmra.mxu0 %vm1026_vm3, %v4032_v58 }
 0x676   : > { %3180 = vmatmul.msk.f32.gmra.mxu0 %vm1026_vm3, %v4013_v48 }
 0x67e   : > { %3181 = vmatmul.msk.f32.gmra.mxu0 %vm1026_vm3, %v4034_v15 }
 0x686   : > { %3182 = vmatmul.msk.f32.gmra.mxu0 %vm1026_vm3, %v4036_v16 }
 0x6db   : > { %v1403_v9 = vpop.f32.mrf.mxu0 }
 0x6dc   : > { %3175 = vmatmul.msk.f32.vlgmr.msra.gmra.mxu3 %vm1026_vm3, %v1403_v9  ;;  %v1461_v63 = vpop.xlane.xlu1 %1460 }
 0x6dd   : > { %3433 = vrcp.f32 %v1461_v63 }
 0x6e3   : > { %v3434_v10 = vpop.eup %3433  ;;  %v1406_v11 = vpop.f32.mrf.mxu0 }
 0x6e4   : > { %3176 = vmatmul.msk.f32.gmra.mxu3 %vm1026_vm3, %v1406_v11  ;;  %v1465_v48 = vmul.f32 %v3434_v10, %v3430_v2 }
 0x6e6   : > { %3172 = vmatmul.msk.f32.gmra.mxu2 %vm1026_vm3, %v1465_v48 }
 0x6eb   : > { %v1568_v13 = vpop.f32.mrf.mxu0 }
 0x6f1   : > { %v1489_v12 = vpop.f32.mrf.mxu2 }
 0x6f2   : > { %3177 = vmatmul.msk.f32.gmra.mxu3 %vm1026_vm3, %v1489_v12 }
 0x6f3   : > { %v1571_v18 = vpop.f32.mrf.mxu0 }
 0x6fb   : > { %v1574_v25 = vpop.f32.mrf.mxu0 }
 0x703   : > { %v1577_v38 = vpop.f32.mrf.mxu0 }
 0x75f   : > { %v1527_v14 = vpop.f32.mrf.mxu3 }
 0x760   : > { %v1569_v58 = vadd.f32 %v1568_v13, %v1527_v14  ;;  %v4121_v13 = vld [vmem:[%s4693_s18] ss:$0 sm:$0xff] }
 0x762   : > { %v1584_v15 = vadd.f32 %v3373_v6, %v1569_v58 }
 0x764   : > { %v1588_v16 = vadd.f32 %v1584_v15, %v3869_v42 }
 0x766   : > { %v1594_v17 = vsel %vm784_vm5, %v1588_v16, 0.0 }
 0x767   : > { %1595 = vadd.xlane.f32.xlu2 %v1594_v17  ;;  %v1530_v19 = vpop.f32.mrf.mxu3 }
 0x768   : > { %v1572_v20 = vadd.f32 %v1571_v18, %v1530_v19  ;;  %v4129_v18 = vld [vmem:[%s4694_s19] ss:$0 sm:$0xff] }
 0x769   : > { %v1492_v21 = vpop.f32.mrf.mxu2 }
 0x76a   : > { %v1585_v22 = vadd.f32 %v3373_v6, %v1572_v20  ;;  %3178 = vmatmul.msk.f32.gmra.mxu3 %vm1026_vm3, %v1492_v21 }
 0x76c   : > { %v1589_v23 = vadd.f32 %v1585_v22, %v3878_v55 }
 0x76e   : > { %v1597_v24 = vsel %vm784_vm5, %v1589_v23, 0.0 }
 0x76f   : > { %1598 = vadd.xlane.f32.xlu0 %v1597_v24 }
 0x775   : > { %v1533_v26 = vpop.f32.mrf.mxu3 }
 0x776   : > { %v1575_v27 = vadd.f32 %v1574_v25, %v1533_v26 }
 0x778   : > { %v1586_v28 = vadd.f32 %v3373_v6, %v1575_v27 }
 0x77a   : > { %v1590_v42 = vadd.f32 %v1586_v28, %v3887_v1 }
 0x77c   : > { %v1600_v29 = vsel %vm784_vm5, %v1590_v42, 0.0 }
 0x77d   : > { %1601 = vadd.xlane.f32.xlu0 %v1600_v29 }
 0x7da   : > { %v1596_v30 = vpop.xlane.xlu2 %1595 }
 0x7db   : > { %v1606_v31 = vmul.f32 %v1596_v30, %v3796_v45 }
 0x7dd   : > { %v1610_v32 = vsub.f32 %v1588_v16, %v1606_v31 }
 0x7df   : > { %v1614_v33 = vmul.f32 %v1610_v32, %v1610_v32 }
 0x7e1   : > { %v1618_v34 = vsel %vm784_vm5, %v1614_v33, 0.0 }
 0x7e2   : > { %1619 = vadd.xlane.f32.xlu1 %v1618_v34  ;;  %v1599_v55 = vpop.xlane.xlu0 %1598 }
 0x7e3   : > { %v1607_v35 = vmul.f32 %v1599_v55, %v3796_v45 }
 0x7e5   : > { %v4090_v36 = vsub.f32 %v1589_v23, %v1607_v35 }
 0x7e7   : > { %v1615_v37 = vmul.f32 %v4090_v36, %v4090_v36 }
 0x7e9   : > { %v1621_v1 = vsel %vm784_vm5, %v1615_v37, 0.0 }
 0x7ea   : > { %1622 = vadd.xlane.f32.xlu2 %v1621_v1 }
 0x7ed   : > { %v1536_v39 = vpop.f32.mrf.mxu3 }
 0x7ee   : > { %v1578_v40 = vadd.f32 %v1577_v38, %v1536_v39  ;;  %v1788_v38 = vld [vmem:[%s4691_s16 + $0x38] sm:$0xff]  ;;  %v1787_v39 = vld [vmem:[%s4691_s16 + $0x30] sm:$0xff] }
 0x7ef   : > { %1814 = vmatpush.msra.mxu2 %v1788_v38 }
 0x7f0   : > { %v1587_v41 = vadd.f32 %v3373_v6, %v1578_v40  ;;  %v1602_v43 = vpop.xlane.xlu0 %1601  ;;  %v1786_v40 = vld [vmem:[%s4691_s16 + $0x28] sm:$0xff] }
 0x7f1   : > { %v1608_v44 = vmul.f32 %v1602_v43, %v3796_v45  ;;  %1815 = vmatpush.msra.mxu2 %v1787_v39  ;;  %v1784_v43 = vld [vmem:[%s4691_s16 + $0x18] sm:$0xff] }
 0x7f2   : > { %v1591_v46 = vadd.f32 %v1587_v41, %v3896_v5  ;;  %v1698_v5 = vld [vmem:[%s4689_s14 + $0x10] sm:$0xff]  ;;  %v1785_v41 = vld [vmem:[%s4691_s16 + $0x20] sm:$0xff] }
 0x7f3   : > { %v4097_v47 = vsub.f32 %v1590_v42, %v1608_v44  ;;  %1729 = vmatpush.msra.mxu1 %v1698_v5  ;;  %1816 = vmatpush.msra.mxu2 %v1786_v40  ;;  %v1783_v44 = vld [vmem:[%s4691_s16 + $0x10] sm:$0xff] }
 0x7f4   : > { %v1603_v49 = vsel %vm784_vm5, %v1591_v46, 0.0 }
 0x7f5   : > { %1604 = vadd.xlane.f32.xlu1 %v1603_v49  ;;  %v1616_v51 = vmul.f32 %v4097_v47, %v4097_v47  ;;  %1730 = vmatpush.msra.mxu1 %v1697_v56 }
 0x7f6   : > { %1817 = vmatpush.msra.mxu2 %v1785_v41  ;;  %v3377_v41 = vld [vmem:[%s4692_s17] ss:$0 sm:$0xff] }
 0x7f7   : > { %v1624_v52 = vsel %vm784_vm5, %v1616_v51, 0.0  ;;  %1731 = vmatpush.msra.mxu1 %v1696_v57 }
 0x7f8   : > { %1625 = vadd.xlane.f32.xlu2 %v1624_v52  ;;  %1818 = vmatpush.msra.mxu2 %v1784_v43  ;;  %v1781_v52 = vld [vmem:[%s4691_s16] sm:$0xff] }
 0x7fa   : > { %1819 = vmatpush.msra.mxu2 %v1783_v44 }
 0x855   : > { %v1620_v59 = vpop.xlane.xlu1 %1619 }
 0x856   : > { %v1630_v53 = vmul.f32 %v1620_v59, %v3796_v45 }
 0x858   : > { %v1634_v61 = vadd.f32 1e-12, %v1630_v53 }
 0x85a   : > { %3435 = vrsqrt.f32 %v1634_v61  ;;  %vm1644_vm6 = vweird.f32 %v1634_v61 }
 0x85d   : > { %v1623_v62 = vpop.xlane.xlu2 %1622 }
 0x85e   : > { %v1631_v0 = vmul.f32 %v1623_v62, %v3796_v45 }
 0x860   : > { %v3436_v2 = vpop.eup %3435  ;;  %v1635_v3 = vadd.f32 1e-12, %v1631_v0 }
 0x861   : > { %v1639_v4 = vmul.f32 %v3436_v2, %v1634_v61  ;;  %vm1645_vm4 = vweird.f32 %v3436_v2 }
 0x862   : > { %3437 = vrsqrt.f32 %v1635_v3  ;;  %vm1646_vm7 = vmor %vm1644_vm6, %vm1645_vm4  ;;  %vm1654_vm9 = vweird.f32 %v1635_v3 }
 0x863   : > { %v1640_v7 = vmul.f32 %v3436_v2, %v1639_v4 }
 0x865   : > { %v1641_v8 = vmul.f32 0.5, %v1640_v7 }
 0x867   : > { %v1642_v9 = vsub.f32 1.5, %v1641_v8 }
 0x868   : > { %v3438_v63 = vpop.eup %3437  ;;  %v1605_v10 = vpop.xlane.xlu1 %1604 }
 0x869   : > { %v1643_v11 = vmul.f32 %v3436_v2, %v1642_v9  ;;  %v1649_v48 = vmul.f32 %v3438_v63, %v1635_v3  ;;  %v1609_v12 = vmul.f32 %v1605_v10, %v3796_v45  ;;  %vm1655_vm8 = vweird.f32 %v3438_v63 }
 0x86a   : > { %vm1656_vm10 = vmor %vm1654_vm9, %vm1655_vm8 }
 0x86b   : > { %v1647_v6 = vsel %vm1646_vm7, %v3436_v2, %v1643_v11  ;;  %v1650_v14 = vmul.f32 %v3438_v63, %v1649_v48  ;;  %v4123_v58 = vsub.f32 %v1591_v46, %v1609_v12  ;;  %v1626_v15 = vpop.xlane.xlu2 %1625  ;;  %v1782_v46 = vld [vmem:[%s4691_s16 + $0x8] sm:$0xff] }
 0x86c   : > { %v1678_v16 = vmul.f32 %v1647_v6, %v1610_v32  ;;  %v1632_v17 = vmul.f32 %v1626_v15, %v3796_v45  ;;  %1820 = vmatpush.msra.mxu2 %v1782_v46 }
 0x86d   : > { %v1651_v19 = vmul.f32 0.5, %v1650_v14  ;;  %v1617_v20 = vmul.f32 %v4123_v58, %v4123_v58 }
 0x86e   : > { %v1685_v21 = vmul.f32 %v4121_v13, %v1678_v16  ;;  %v1636_v22 = vadd.f32 1e-12, %v1632_v17  ;;  %1821 = vmatpush.msra.mxu2 %v1781_v52 }
 0x86f   : > { %v1652_v23 = vsub.f32 1.5, %v1651_v19  ;;  %v1627_v24 = vsel %vm784_vm5, %v1617_v20, 0.0 }
 0x870   : > { %3439 = vrsqrt.f32 %v1636_v22  ;;  %1628 = vadd.xlane.f32.xlu0 %v1627_v24  ;;  %v4136_v25 = vadd.f32 %v4129_v18, %v1685_v21  ;;  %vm1664_vm12 = vweird.f32 %v1636_v22 }
 0x871   : > { %v1653_v26 = vmul.f32 %v3438_v63, %v1652_v23 }
 0x872   : > { %3183 = vmatmul.msk.f32.vlgmr.msra.gmra.mxu1 %vm784_vm5, %v4136_v25 }
 0x873   : > { %v1657_v27 = vsel %vm1656_vm10, %v3438_v63, %v1653_v26 }
 0x874   : > { %v1679_v28 = vmul.f32 %v1657_v27, %v4090_v36 }
 0x876   : > { %v3440_v42 = vpop.eup %3439  ;;  %v1686_v29 = vmul.f32 %v4121_v13, %v1679_v28 }
 0x877   : > { %v1659_v30 = vmul.f32 %v3440_v42, %v1636_v22  ;;  %vm1665_vm11 = vweird.f32 %v3440_v42 }
 0x878   : > { %v4143_v31 = vadd.f32 %v4129_v18, %v1686_v29  ;;  %vm1666_vm13 = vmor %vm1664_vm12, %vm1665_vm11 }
 0x879   : > { %v1660_v32 = vmul.f32 %v3440_v42, %v1659_v30 }
 0x87a   : > { %3184 = vmatmul.msk.f32.gmra.mxu1 %vm784_vm5, %v4143_v31 }
 0x87b   : > { %v1661_v33 = vmul.f32 0.5, %v1660_v32 }
 0x87d   : > { %v1662_v34 = vsub.f32 1.5, %v1661_v33 }
 0x87f   : > { %v1663_v55 = vmul.f32 %v3440_v42, %v1662_v34 }
 0x881   : > { %v1667_v35 = vsel %vm1666_vm13, %v3440_v42, %v1663_v55 }
 0x882   : > { %v1680_v36 = vmul.f32 %v1667_v35, %v4097_v47 }
 0x884   : > { %v1687_v37 = vmul.f32 %v4121_v13, %v1680_v36 }
 0x886   : > { %v4150_v1 = vadd.f32 %v4129_v18, %v1687_v37 }
 0x888   : > { %3185 = vmatmul.msk.f32.gmra.mxu1 %vm784_vm5, %v4150_v1 }
 0x8e3   : > { %v1629_v47 = vpop.xlane.xlu0 %1628 }
 0x8e4   : > { %v1633_v49 = vmul.f32 %v1629_v47, %v3796_v45 }
 0x8e6   : > { %v1637_v51 = vadd.f32 1e-12, %v1633_v49 }
 0x8e8   : > { %3441 = vrsqrt.f32 %v1637_v51  ;;  %vm1674_vm15 = vweird.f32 %v1637_v51 }
 0x8ee   : > { %v3442_v5 = vpop.eup %3441 }
 0x8ef   : > { %v1669_v56 = vmul.f32 %v3442_v5, %v1637_v51  ;;  %v1733_v57 = vpop.f32.mrf.mxu1  ;;  %vm1675_vm14 = vweird.f32 %v3442_v5 }
 0x8f0   : > { %v1734_v59 = vadd.f32 %v3376_v54, %v1733_v57  ;;  %vm1676_vm0 = vmor %vm1674_vm15, %vm1675_vm14 }
 0x8f1   : > { %v1670_v53 = vmul.f32 %v3442_v5, %v1669_v56 }
 0x8f2   : > { %v1749_v61 = vmul.f32 0.044715, %v1734_v59  ;;  %v1745_v20 = vmul.f32 0.5, %v1734_v59 }
 0x8f3   : > { %v1671_v62 = vmul.f32 0.5, %v1670_v53 }
 0x8f4   : > { %v1753_v0 = vmul.f32 %v1749_v61, %v1734_v59 }
 0x8f5   : > { %v1672_v2 = vsub.f32 1.5, %v1671_v62 }
 0x8f6   : > { %v1757_v3 = vmul.f32 %v1753_v0, %v1734_v59 }
 0x8f7   : > { %v1673_v4 = vmul.f32 %v3442_v5, %v1672_v2  ;;  %v1736_v7 = vpop.f32.mrf.mxu1 }
 0x8f8   : > { %v1761_v8 = vadd.f32 %v1757_v3, %v1734_v59  ;;  %v1737_v9 = vadd.f32 %v3376_v54, %v1736_v7 }
 0x8f9   : > { %v1677_v63 = vsel %vm1676_vm0, %v3442_v5, %v1673_v4 }
 0x8fa   : > { %v1765_v10 = vmul.f32 0.7978846, %v1761_v8  ;;  %v1750_v11 = vmul.f32 0.044715, %v1737_v9  ;;  %v1681_v48 = vmul.f32 %v1677_v63, %v4123_v58  ;;  %v1746_v26 = vmul.f32 0.5, %v1737_v9 }
 0x8fc   : > { %3443 = vtanh.f32 %v1765_v10  ;;  %v1688_v12 = vmul.f32 %v4121_v13, %v1681_v48  ;;  %v1754_v6 = vmul.f32 %v1750_v11, %v1737_v9 }
 0x8fe   : > { %v4185_v14 = vadd.f32 %v4129_v18, %v1688_v12  ;;  %v1758_v15 = vmul.f32 %v1754_v6, %v1737_v9 }
 0x900   : > { %3186 = vmatmul.msk.f32.gmra.mxu1 %vm784_vm5, %v4185_v14  ;;  %v1762_v16 = vadd.f32 %v1758_v15, %v1737_v9 }
 0x902   : > { %v3444_v17 = vpop.eup %3443  ;;  %v1766_v19 = vmul.f32 0.7978846, %v1762_v16 }
 0x903   : > { %v1773_v21 = vadd.f32 1.0, %v3444_v17 }
 0x904   : > { %3445 = vtanh.f32 %v1766_v19 }
 0x905   : > { %v1739_v22 = vpop.f32.mrf.mxu1  ;;  %v1777_v58 = vmul.f32 %v1773_v21, %v1745_v20  ;;  %v3194_v21 = vld [vmem:[%s4733_s23 + $0x58] sm:$0xff] }
 0x906   : > { %v1740_v23 = vadd.f32 %v3376_v54, %v1739_v22  ;;  %v3203_v22 = vld [vmem:[%s4734_s8 + $0x58] sm:$0xff]  ;;  %1977 = vmatpush.msrb.mxu3 %v3194_v21 }
 0x907   : > { %3187 = vmatmul.msk.f32.vlgmr.msra.gmra.mxu2 %vm1793_vm1, %v1777_v58  ;;  %2020 = vmatpush.msra.mxu0 %v3203_v22  ;;  %v3193_v58 = vld [vmem:[%s4733_s23 + $0x50] sm:$0xff]  ;;  %v3233_v22 = vld [vmem:[%s4733_s23 + $0x68] sm:$0xff] }
 0x908   : > { %v1751_v13 = vmul.f32 0.044715, %v1740_v23  ;;  %v1747_v33 = vmul.f32 0.5, %v1740_v23  ;;  %1978 = vmatpush.msrb.mxu3 %v3193_v58  ;;  %v3232_v58 = vld [vmem:[%s4733_s23 + $0x60] sm:$0xff] }
 0x90a   : > { %v3446_v24 = vpop.eup %3445  ;;  %v1755_v18 = vmul.f32 %v1751_v13, %v1740_v23  ;;  %v3211_v13 = vld [vmem:[%s4735_s10 + $0x50] sm:$0xff] }
 0x90b   : > { %v1774_v27 = vadd.f32 1.0, %v3446_v24  ;;  %v3192_v24 = vld [vmem:[%s4733_s23 + $0x48] sm:$0xff] }
 0x90c   : > { %v1759_v28 = vmul.f32 %v1755_v18, %v1740_v23  ;;  %v3201_v18 = vld [vmem:[%s4734_s8 + $0x48] sm:$0xff]  ;;  %1979 = vmatpush.msrb.mxu3 %v3192_v24 }
 0x90d   : > { %v1778_v42 = vmul.f32 %v1774_v27, %v1746_v26  ;;  %v3210_v26 = vld [vmem:[%s4735_s10 + $0x48] sm:$0xff]  ;;  %v3191_v27 = vld [vmem:[%s4733_s23 + $0x40] sm:$0xff] }
 0x90e   : > { %v1763_v29 = vadd.f32 %v1759_v28, %v1740_v23  ;;  %v3202_v23 = vld [vmem:[%s4734_s8 + $0x50] sm:$0xff]  ;;  %v3200_v28 = vld [vmem:[%s4734_s8 + $0x40] sm:$0xff]  ;;  %1980 = vmatpush.msrb.mxu3 %v3191_v27 }
 0x90f   : > { %3188 = vmatmul.msk.f32.gmra.mxu2 %vm1793_vm1, %v1778_v42  ;;  %2021 = vmatpush.msra.mxu0 %v3202_v23  ;;  %v3209_v42 = vld [vmem:[%s4735_s10 + $0x40] sm:$0xff] }
 0x910   : > { %v1767_v30 = vmul.f32 0.7978846, %v1763_v29 }
 0x911   : > { %2022 = vmatpush.msra.mxu0 %v3201_v18 }
 0x912   : > { %3447 = vtanh.f32 %v1767_v30 }
 0x913   : > { %2023 = vmatpush.msra.mxu0 %v3200_v28 }
 0x918   : > { %v3448_v32 = vpop.eup %3447 }
 0x919   : > { %v1775_v34 = vadd.f32 1.0, %v3448_v32 }
 0x91b   : > { %v1779_v55 = vmul.f32 %v1775_v34, %v1747_v33 }
 0x91d   : > { %3189 = vmatmul.msk.f32.gmra.mxu2 %vm1793_vm1, %v1779_v55 }
 0x97d   : > { %v1742_v35 = vpop.f32.mrf.mxu1 }
 0x97e   : > { %v1743_v36 = vadd.f32 %v3376_v54, %v1742_v35 }
 0x980   : > { %v1752_v37 = vmul.f32 0.044715, %v1743_v36  ;;  %v1748_v52 = vmul.f32 0.5, %v1743_v36 }
 0x982   : > { %v1756_v38 = vmul.f32 %v1752_v37, %v1743_v36 }
 0x984   : > { %v1760_v39 = vmul.f32 %v1756_v38, %v1743_v36 }
 0x986   : > { %v1764_v40 = vadd.f32 %v1760_v39, %v1743_v36 }
 0x988   : > { %v1768_v43 = vmul.f32 0.7978846, %v1764_v40 }
 0x98a   : > { %v1823_v44 = vpop.f32.mrf.mxu2  ;;  %3449 = vtanh.f32 %v1768_v43 }
 0x98b   : > { %v1824_v46 = vadd.f32 %v3377_v41, %v1823_v44 }
 0x98d   : > { %v1835_v47 = vadd.f32 %v1824_v46, %v4136_v25 }
 0x98f   : > { %v1841_v49 = vsel %vm784_vm5, %v1835_v47, 0.0 }
 0x990   : > { %v3450_v51 = vpop.eup %3449  ;;  %1842 = vadd.xlane.f32.xlu1 %v1841_v49 }
 0x991   : > { %v1776_v54 = vadd.f32 1.0, %v3450_v51 }
 0x992   : > { %v1826_v5 = vpop.f32.mrf.mxu2 }
 0x993   : > { %v1827_v56 = vadd.f32 %v3377_v41, %v1826_v5  ;;  %v1780_v57 = vmul.f32 %v1776_v54, %v1748_v52  ;;  %v4271_v5 = vld [vmem:[%s4696_s21] ss:$0 sm:$0xff] }
 0x995   : > { %3190 = vmatmul.msk.f32.gmra.mxu2 %vm1793_vm1, %v1780_v57  ;;  %v1836_v59 = vadd.f32 %v1827_v56, %v4143_v31 }
 0x997   : > { %v1844_v53 = vsel %vm784_vm5, %v1836_v59, 0.0 }
 0x998   : > { %1845 = vadd.xlane.f32.xlu2 %v1844_v53 }
 0x9a0   : > { %v1829_v61 = vpop.f32.mrf.mxu2 }
 0x9a1   : > { %v1830_v62 = vadd.f32 %v3377_v41, %v1829_v61 }
 0x9a3   : > { %v1837_v25 = vadd.f32 %v1830_v62, %v4150_v1 }
 0x9a5   : > { %v1847_v0 = vsel %vm784_vm5, %v1837_v25, 0.0 }
 0x9a6   : > { %1848 = vadd.xlane.f32.xlu2 %v1847_v0 }
 0xa03   : > { %v1843_v2 = vpop.xlane.xlu1 %1842 }
 0xa04   : > { %v1853_v3 = vmul.f32 %v1843_v2, %v3796_v45 }
 0xa06   : > { %v4203_v4 = vsub.f32 %v1835_v47, %v1853_v3  ;;  %v4264_v47 = vld [vmem:[%s4695_s20] ss:$0 sm:$0xff] }
 0xa08   : > { %v1861_v7 = vmul.f32 %v4203_v4, %v4203_v4 }
 0xa0a   : > { %v1865_v31 = vsel %vm784_vm5, %v1861_v7, 0.0 }
 0xa0b   : > { %1866 = vadd.xlane.f32.xlu0 %v1865_v31  ;;  %v1846_v8 = vpop.xlane.xlu2 %1845 }
 0xa0c   : > { %v1854_v9 = vmul.f32 %v1846_v8, %v3796_v45 }
 0xa0e   : > { %v4209_v63 = vsub.f32 %v1836_v59, %v1854_v9 }
 0xa10   : > { %v1862_v1 = vmul.f32 %v4209_v63, %v4209_v63 }
 0xa12   : > { %v1868_v10 = vsel %vm784_vm5, %v1862_v1, 0.0 }
 0xa13   : > { %1869 = vadd.xlane.f32.xlu1 %v1868_v10 }
 0xa18   : > { %v1832_v11 = vpop.f32.mrf.mxu2 }
 0xa19   : > { %v1833_v48 = vadd.f32 %v3377_v41, %v1832_v11  ;;  %v1849_v12 = vpop.xlane.xlu2 %1848 }
 0xa1a   : > { %v1855_v6 = vmul.f32 %v1849_v12, %v3796_v45 }
 0xa1b   : > { %v1838_v15 = vadd.f32 %v1833_v48, %v4185_v14  ;;  %v3212_v14 = vld [vmem:[%s4735_s10 + $0x58] sm:$0xff] }
 0xa1c   : > { %v4216_v16 = vsub.f32 %v1837_v25, %v1855_v6  ;;  %2059 = vmatpush.msrb.mxu1 %v3212_v14 }
 0xa1d   : > { %v1850_v17 = vsel %vm784_vm5, %v1838_v15, 0.0 }
 0xa1e   : > { %1851 = vadd.xlane.f32.xlu0 %v1850_v17  ;;  %v1863_v19 = vmul.f32 %v4216_v16, %v4216_v16  ;;  %2060 = vmatpush.msrb.mxu1 %v3211_v13 }
 0xa20   : > { %v1871_v20 = vsel %vm784_vm5, %v1863_v19, 0.0  ;;  %2061 = vmatpush.msrb.mxu1 %v3210_v26  ;;  %v3235_v19 = vld [vmem:[%s4733_s23 + $0x78] sm:$0xff] }
 0xa21   : > { %1872 = vadd.xlane.f32.xlu1 %v1871_v20 }
 0xa22   : > { %2062 = vmatpush.msrb.mxu1 %v3209_v42  ;;  %v3380_v42 = vld [vmem:[%s4738_s9 + $0x2] ss:$0 sm:$0xff] }
 0xa24   : > { %2273 = vmatpush.msra.mxu1 %v3235_v19 }
 0xa7e   : > { %v1867_v29 = vpop.xlane.xlu0 %1866 }
 0xa7f   : > { %v1877_v30 = vmul.f32 %v1867_v29, %v3796_v45 }
 0xa81   : > { %v1881_v32 = vadd.f32 1e-12, %v1877_v30 }
 0xa83   : > { %3451 = vrsqrt.f32 %v1881_v32  ;;  %vm1891_vm4 = vweird.f32 %v1881_v32 }
 0xa86   : > { %v1870_v33 = vpop.xlane.xlu1 %1869 }
 0xa87   : > { %v1878_v34 = vmul.f32 %v1870_v33, %v3796_v45 }
 0xa89   : > { %v3452_v55 = vpop.eup %3451  ;;  %v1882_v35 = vadd.f32 1e-12, %v1878_v34 }
 0xa8a   : > { %v1886_v36 = vmul.f32 %v3452_v55, %v1881_v32  ;;  %vm1892_vm2 = vweird.f32 %v3452_v55  ;;  %v3382_v32 = vld [vmem:[%s4739_s7 + $0x2] ss:$0 sm:$0xff] }
 0xa8b   : > { %3453 = vrsqrt.f32 %v1882_v35  ;;  %vm1893_vm6 = vmor %vm1891_vm4, %vm1892_vm2  ;;  %vm1901_vm8 = vweird.f32 %v1882_v35 }
 0xa8c   : > { %v1887_v37 = vmul.f32 %v3452_v55, %v1886_v36 }
 0xa8e   : > { %v1888_v38 = vmul.f32 0.5, %v1887_v37  ;;  %v3381_v37 = vld [vmem:[%s4686_s11 + $0x2] ss:$0 sm:$0xff] }
 0xa90   : > { %v1889_v39 = vsub.f32 1.5, %v1888_v38 }
 0xa91   : > { %v3454_v40 = vpop.eup %3453  ;;  %v1852_v41 = vpop.xlane.xlu0 %1851 }
 0xa92   : > { %v1890_v43 = vmul.f32 %v3452_v55, %v1889_v39  ;;  %v1896_v44 = vmul.f32 %v3454_v40, %v1882_v35  ;;  %v1856_v46 = vmul.f32 %v1852_v41, %v3796_v45  ;;  %vm1902_vm7 = vweird.f32 %v3454_v40 }
 0xa93   : > { %vm1903_vm9 = vmor %vm1901_vm8, %vm1902_vm7 }
 0xa94   : > { %v1894_v49 = vsel %vm1893_vm6, %v3452_v55, %v1890_v43  ;;  %v1897_v51 = vmul.f32 %v3454_v40, %v1896_v44  ;;  %v4266_v52 = vsub.f32 %v1838_v15, %v1856_v46  ;;  %v1873_v54 = vpop.xlane.xlu1 %1872 }
 0xa95   : > { %v1925_v56 = vmul.f32 %v1894_v49, %v4203_v4  ;;  %v1879_v57 = vmul.f32 %v1873_v54, %v3796_v45 }
 0xa96   : > { %v1898_v59 = vmul.f32 0.5, %v1897_v51  ;;  %v1864_v53 = vmul.f32 %v4266_v52, %v4266_v52 }
 0xa97   : > { %v1932_v61 = vmul.f32 %v4264_v47, %v1925_v56  ;;  %v1883_v62 = vadd.f32 1e-12, %v1879_v57 }
 0xa98   : > { %v1899_v25 = vsub.f32 1.5, %v1898_v59  ;;  %v1874_v0 = vsel %vm784_vm5, %v1864_v53, 0.0 }
 0xa99   : > { %v4280_v2 = vadd.f32 %v4271_v5, %v1932_v61  ;;  %3455 = vrsqrt.f32 %v1883_v62  ;;  %1875 = vadd.xlane.f32.xlu2 %v1874_v0  ;;  %vm1911_vm11 = vweird.f32 %v1883_v62  ;;  %v3253_v0 = vld [vmem:[%s4735_s10 + $0x78] sm:$0xff] }
 0xa9a   : > { %v1900_v3 = vmul.f32 %v3454_v40, %v1899_v25 }
 0xa9b   : > { %3196 = vmatmul.msk.f32.vlgmr.msrb.gmra.mxu3 %vm784_vm5, %v4280_v2  ;;  %3205 = vmatmul.msk.f32.vlgmr.msra.gmra.mxu0 %vm784_vm5, %v4280_v2 }
 0xa9c   : > { %v1904_v4 = vsel %vm1903_vm9, %v3454_v40, %v1900_v3  ;;  %3214 = vmatmul.msk.f32.vlgmr.msrb.gmra.mxu1 %vm784_vm5, %v4280_v2 }
 0xa9d   : > { %v1926_v7 = vmul.f32 %v1904_v4, %v4209_v63 }
 0xa9f   : > { %v3456_v31 = vpop.eup %3455  ;;  %v1933_v8 = vmul.f32 %v4264_v47, %v1926_v7 }
 0xaa0   : > { %v1906_v9 = vmul.f32 %v3456_v31, %v1883_v62  ;;  %vm1912_vm10 = vweird.f32 %v3456_v31 }
 0xaa1   : > { %v4291_v1 = vadd.f32 %v4271_v5, %v1933_v8  ;;  %vm1913_vm12 = vmor %vm1911_vm11, %vm1912_vm10 }
 0xaa2   : > { %v1907_v10 = vmul.f32 %v3456_v31, %v1906_v9 }
 0xaa3   : > { %3197 = vmatmul.msk.f32.gmra.mxu3 %vm784_vm5, %v4291_v1  ;;  %3206 = vmatmul.msk.f32.gmra.mxu0 %vm784_vm5, %v4291_v1 }
 0xaa4   : > { %v1908_v11 = vmul.f32 0.5, %v1907_v10  ;;  %3215 = vmatmul.msk.f32.gmra.mxu1 %vm784_vm5, %v4291_v1  ;;  %v3251_v10 = vld [vmem:[%s4735_s10 + $0x68] sm:$0xff] }
 0xaa6   : > { %v1909_v48 = vsub.f32 1.5, %v1908_v11 }
 0xaa8   : > { %v1910_v63 = vmul.f32 %v3456_v31, %v1909_v48  ;;  %v3250_v48 = vld [vmem:[%s4735_s10 + $0x60] sm:$0xff] }
 0xaaa   : > { %v1914_v12 = vsel %vm1913_vm12, %v3456_v31, %v1910_v63  ;;  %v3252_v31 = vld [vmem:[%s4735_s10 + $0x70] sm:$0xff] }
 0xaab   : > { %v1927_v6 = vmul.f32 %v1914_v12, %v4216_v16  ;;  %v3234_v16 = vld [vmem:[%s4733_s23 + $0x70] sm:$0xff] }
 0xaac   : > { %2274 = vmatpush.msra.mxu1 %v3234_v16 }
 0xaad   : > { %v1934_v15 = vmul.f32 %v4264_v47, %v1927_v6 }
 0xaae   : > { %2275 = vmatpush.msra.mxu1 %v3233_v22 }
 0xaaf   : > { %v4302_v17 = vadd.f32 %v4271_v5, %v1934_v15 }
 0xab0   : > { %2276 = vmatpush.msra.mxu1 %v3232_v58 }
 0xab1   : > { %3198 = vmatmul.msk.f32.gmra.mxu3 %vm784_vm5, %v4302_v17  ;;  %3207 = vmatmul.msk.f32.gmra.mxu0 %vm784_vm5, %v4302_v17 }
 0xab2   : > { %3216 = vmatmul.msk.f32.gmra.mxu1 %vm784_vm5, %v4302_v17 }
 0xb0c   : > { %v1876_v20 = vpop.xlane.xlu2 %1875 }
 0xb0d   : > { %v1880_v21 = vmul.f32 %v1876_v20, %v3796_v45 }
 0xb0f   : > { %v1884_v14 = vadd.f32 1e-12, %v1880_v21 }
 0xb11   : > { %3457 = vrsqrt.f32 %v1884_v14  ;;  %vm1921_vm14 = vweird.f32 %v1884_v14 }
 0xb17   : > { %v3458_v23 = vpop.eup %3457 }
 0xb18   : > { %v1916_v13 = vmul.f32 %v3458_v23, %v1884_v14  ;;  %v2025_v24 = vpop.f32.mrf.mxu0  ;;  %vm1922_vm13 = vweird.f32 %v3458_v23 }
 0xb19   : > { %v2064_v18 = vpop.f32.mrf.mxu1  ;;  %vm1923_vm15 = vmor %vm1921_vm14, %vm1922_vm13  ;;  %v2026_v40 = vadd.f32 %v3380_v42, %v2025_v24 }
 0xb1a   : > { %v1917_v26 = vmul.f32 %v3458_v23, %v1916_v13  ;;  %v2065_v46 = vadd.f32 %v3381_v37, %v2064_v18 }
 0xb1c   : > { %v1918_v27 = vmul.f32 0.5, %v1917_v26 }
 0xb1e   : > { %v1919_v28 = vsub.f32 1.5, %v1918_v27  ;;  %v1982_v29 = vpop.f32.mrf.mxu3 }
 0xb1f   : > { %v1983_v38 = vadd.f32 %v3382_v32, %v1982_v29 }
 0xb20   : > { %v1920_v30 = vmul.f32 %v3458_v23, %v1919_v28  ;;  %v2028_v33 = vpop.f32.mrf.mxu0 }
 0xb21   : > { %v2029_v34 = vadd.f32 %v3380_v42, %v2028_v33  ;;  %v2067_v36 = vpop.f32.mrf.mxu1  ;;  %v1994_v44 = vmul.f32 0.25, %v1983_v38  ;;  %v3241_v38 = vld [vmem:[%s4734_s8 + $0x60] sm:$0xff] }
 0xb22   : > { %v1924_v55 = vsel %vm1923_vm15, %v3458_v23, %v1920_v30  ;;  %v2068_v41 = vadd.f32 %v3381_v37, %v2067_v36  ;;  %v3384_v30 = vld [vmem:[%s4686_s11 + $0x3] ss:$0 sm:$0xff]  ;;  %v3243_v36 = vld [vmem:[%s4734_s8 + $0x70] sm:$0xff] }
 0xb23   : > { %v1928_v35 = vmul.f32 %v1924_v55, %v4266_v52  ;;  %3218 = vmatpush.xpose.msk.msrb.mxu2 %vm1026_vm3, %v2029_v34 }
 0xb25   : > { %v1935_v39 = vmul.f32 %v4264_v47, %v1928_v35  ;;  %v3244_v35 = vld [vmem:[%s4734_s8 + $0x78] sm:$0xff] }
 0xb26   : > { %v1985_v49 = vpop.f32.mrf.mxu3 }
 0xb27   : > { %v4336_v43 = vadd.f32 %v4271_v5, %v1935_v39  ;;  %3219 = vmatpush.xpose.msk.msrb.mxu2 %vm1026_vm3, %v2026_v40  ;;  %v1986_v47 = vadd.f32 %v3382_v32, %v1985_v49 }
 0xb29   : > { %3199 = vmatmul.msk.f32.gmra.mxu3 %vm784_vm5, %v4336_v43  ;;  %3208 = vmatmul.msk.f32.gmra.mxu0 %vm784_vm5, %v4336_v43  ;;  %v1995_v51 = vmul.f32 0.25, %v1986_v47 }
 0xb2a   : > { %3217 = vmatmul.msk.f32.gmra.mxu1 %vm784_vm5, %v4336_v43  ;;  %3220 = vmatmul.msk.f32.vlgmr.msrb.gmra.mxu2 %vm1026_vm3, %v1994_v44 }
 0xb2b   : > { %2153 = vmatpush.msra.mxu2 %v2068_v41 }
 0xb2d   : > { %2154 = vmatpush.msra.mxu2 %v2065_v46 }
 0xb2e   : > { %v2031_v52 = vpop.f32.mrf.mxu0 }
 0xb2f   : > { %v2070_v54 = vpop.f32.mrf.mxu1  ;;  %v2032_v25 = vadd.f32 %v3380_v42, %v2031_v52  ;;  %2316 = vmatpush.msrb.mxu2 %v3244_v35 }
 0xb30   : > { %v2071_v61 = vadd.f32 %v3381_v37, %v2070_v54 }
 0xb31   : > { %2317 = vmatpush.msrb.mxu2 %v3243_v36 }
 0xb32   : > { %3237 = vmatmul.msk.f32.vlgmr.msra.gmra.mxu1 %vm784_vm5, %v4280_v2  ;;  %3221 = vmatmul.msk.f32.gmra.mxu2 %vm1026_vm3, %v1995_v51 }
 0xb34   : > { %v1988_v56 = vpop.f32.mrf.mxu3 }
 0xb35   : > { %v1989_v62 = vadd.f32 %v3382_v32, %v1988_v56 }
 0xb37   : > { %v1996_v4 = vmul.f32 0.25, %v1989_v62 }
 0xb3a   : > { %3238 = vmatmul.msk.f32.gmra.mxu1 %vm784_vm5, %v4291_v1 }
 0xb42   : > { %3239 = vmatmul.msk.f32.gmra.mxu1 %vm784_vm5, %v4302_v17 }
 0xb4a   : > { %3240 = vmatmul.msk.f32.gmra.mxu1 %vm784_vm5, %v4336_v43 }
 0xba6   : > { %v2034_v5 = vpop.f32.mrf.mxu0 }
 0xba7   : > { %v2035_v57 = vadd.f32 %v3380_v42, %v2034_v5  ;;  %v2073_v59 = vpop.f32.mrf.mxu1 }
 0xba8   : > { %v2074_v53 = vadd.f32 %v3381_v37, %v2073_v59  ;;  %v3242_v37 = vld [vmem:[%s4734_s8 + $0x68] sm:$0xff] }
 0xba9   : > { %3224 = vmatpush.xpose.msk.msra.mxu3 %vm1026_vm3, %v2035_v57  ;;  %2318 = vmatpush.msrb.mxu2 %v3242_v37 }
 0xbaa   : > { %2239 = vmatpush.msrb.mxu0 %v2074_v53 }
 0xbab   : > { %2319 = vmatpush.msrb.mxu2 %v3241_v38 }
 0xbac   : > { %2240 = vmatpush.msrb.mxu0 %v2071_v61  ;;  %v1991_v8 = vpop.f32.mrf.mxu3 }
 0xbad   : > { %v2105_v3 = vpop.f32.mrf.mxu2  ;;  %3225 = vmatpush.xpose.msk.msra.mxu3 %vm1026_vm3, %v2032_v25  ;;  %v1992_v11 = vadd.f32 %v3382_v32, %v1991_v8 }
 0xbae   : > { %v2106_v7 = vadd.f32 %v2105_v3, %v3967_v50 }
 0xbaf   : > { %v1997_v12 = vmul.f32 0.25, %v1992_v11 }
 0xbb0   : > { %3226 = vmatmul.msk.f32.vlgmr.msra.gmra.mxu3 %vm1026_vm3, %v1996_v4  ;;  %v2111_v9 = vsel %vm1026_vm3, %v2106_v7, -inf }
 0xbb1   : > { %2355 = vmatpush.msrb.mxu3 %v3253_v0  ;;  %2112 = vmax.xlane.f32.xlu0 %v2111_v9 }
 0xbb3   : > { %2356 = vmatpush.msrb.mxu3 %v3252_v31 }
 0xbb5   : > { %2357 = vmatpush.msrb.mxu3 %v3251_v10  ;;  %v2108_v63 = vpop.f32.mrf.mxu2 }
 0xbb6   : > { %v2109_v6 = vadd.f32 %v2108_v63, %v3967_v50 }
 0xbb7   : > { %2358 = vmatpush.msrb.mxu3 %v3250_v48 }
 0xbb8   : > { %3227 = vmatmul.msk.f32.gmra.mxu3 %vm1026_vm3, %v1997_v12  ;;  %v2114_v15 = vsel %vm1026_vm3, %v2109_v6, -inf  ;;  %v2278_v12 = vpop.f32.mrf.mxu1 }
 0xbb9   : > { %2115 = vmax.xlane.f32.xlu1 %v2114_v15  ;;  %v3383_v15 = vld [vmem:[%s4739_s7 + $0x3] ss:$0 sm:$0xff] }
 0xbc0   : > { %3255 = vmatmul.msk.f32.vlgmr.msrb.gmra.mxu3 %vm784_vm5, %v4280_v2 }
 0xbc8   : > { %3256 = vmatmul.msk.f32.gmra.mxu3 %vm784_vm5, %v4291_v1 }
 0xbd0   : > { %3257 = vmatmul.msk.f32.gmra.mxu3 %vm784_vm5, %v4302_v17 }
 0xbd8   : > { %3258 = vmatmul.msk.f32.gmra.mxu3 %vm784_vm5, %v4336_v43 }
 0xc24   : > { %v2113_v19 = vpop.xlane.xlu0 %2112 }
 0xc25   : > { %v2117_v16 = vsub.f32 %v2106_v7, %v2113_v19 }
 0xc27   : > { %v2119_v20 = vmul.f32 1.442695, %v2117_v16 }
 0xc29   : > { %3459 = vpow2.f32 %v2119_v20  ;;  %v2279_v20 = vadd.f32 %v3383_v15, %v2278_v12 }
 0xc2c   : > { %v2116_v21 = vpop.xlane.xlu1 %2115 }
 0xc2d   : > { %v2118_v22 = vsub.f32 %v2109_v6, %v2116_v21  ;;  %v3385_v6 = vld [vmem:[%s4738_s9 + $0x3] ss:$0 sm:$0xff]  ;;  %v2281_v21 = vpop.f32.mrf.mxu1 }
 0xc2f   : > { %v3460_v14 = vpop.eup %3459  ;;  %v2121_v58 = vmul.f32 1.442695, %v2118_v22 }
 0xc30   : > { %v2123_v23 = vsel %vm1026_vm3, %v3460_v14, 0.0 }
 0xc31   : > { %3461 = vpow2.f32 %v2121_v58  ;;  %2124 = vadd.xlane.f32.xlu2 %v2123_v23  ;;  %v2282_v23 = vadd.f32 %v3383_v15, %v2281_v21 }
 0xc33   : > { %v2191_v13 = vpop.f32.mrf.mxu3 }
 0xc34   : > { %v2192_v24 = vadd.f32 %v2191_v13, %v3973_v60 }
 0xc35   : > { %v2284_v13 = vpop.f32.mrf.mxu1 }
 0xc36   : > { %v2197_v18 = vsel %vm1026_vm3, %v2192_v24, -inf }
 0xc37   : > { %v3462_v26 = vpop.eup %3461  ;;  %2198 = vmax.xlane.f32.xlu1 %v2197_v18 }
 0xc38   : > { %v2126_v27 = vsel %vm1026_vm3, %v3462_v26, 0.0 }
 0xc39   : > { %2127 = vadd.xlane.f32.xlu0 %v2126_v27  ;;  %v2285_v27 = vadd.f32 %v3383_v15, %v2284_v13 }
 0xc3b   : > { %v2194_v28 = vpop.f32.mrf.mxu3 }
 0xc3c   : > { %v2195_v42 = vadd.f32 %v2194_v28, %v3973_v60 }
 0xc3e   : > { %v2200_v29 = vsel %vm1026_vm3, %v2195_v42, -inf }
 0xc3f   : > { %2201 = vmax.xlane.f32.xlu2 %v2200_v29  ;;  %v2287_v29 = vpop.f32.mrf.mxu1 }
 0xc43   : > { %v2360_v32 = vpop.f32.mrf.mxu3 }
 0xc44   : > { %v4392_v33 = vadd.f32 %v3384_v30, %v2360_v32 }
 0xc4b   : > { %v2363_v34 = vpop.f32.mrf.mxu3 }
 0xc4c   : > { %v4394_v55 = vadd.f32 %v3384_v30, %v2363_v34 }
 0xc53   : > { %v2366_v39 = vpop.f32.mrf.mxu3 }
 0xc54   : > { %v2367_v5 = vadd.f32 %v3384_v30, %v2366_v39 }
 0xc5b   : > { %v2369_v41 = vpop.f32.mrf.mxu3 }
 0xc5c   : > { %v2370_v52 = vadd.f32 %v3384_v30, %v2369_v41  ;;  %v2288_v30 = vadd.f32 %v3383_v15, %v2287_v29 }
 0xc5e   : > { %v2293_v32 = vmul.f32 0.25, %v2288_v30 }
 0xca4   : > { %v2125_v40 = vpop.xlane.xlu2 %2124 }
 0xca5   : > { %3463 = vrcp.f32 %v2125_v40 }
 0xcaa   : > { %v2199_v44 = vpop.xlane.xlu1 %2198 }
 0xcab   : > { %v3464_v46 = vpop.eup %3463  ;;  %v2203_v49 = vsub.f32 %v2192_v24, %v2199_v44  ;;  %v2291_v24 = vmul.f32 0.25, %v2282_v23 }
 0xcac   : > { %v2131_v47 = vmul.f32 %v3464_v46, %v3460_v14  ;;  %v2128_v51 = vpop.xlane.xlu0 %2127  ;;  %v2290_v14 = vmul.f32 0.25, %v2279_v20 }
 0xcad   : > { %v2205_v54 = vmul.f32 1.442695, %v2203_v49  ;;  %3465 = vrcp.f32 %v2128_v51 }
 0xcae   : > { %3222 = vmatmul.msk.f32.vlgmr.msra.gmra.mxu2 %vm1026_vm3, %v2131_v47 }
 0xcaf   : > { %3467 = vpow2.f32 %v2205_v54  ;;  %2535 = vmatpush.msra.mxu2 %v2370_v52 }
 0xcb1   : > { %2536 = vmatpush.msra.mxu2 %v2367_v5 }
 0xcb2   : > { %v2202_v56 = vpop.xlane.xlu2 %2201 }
 0xcb3   : > { %v3466_v57 = vpop.eup %3465  ;;  %v2204_v59 = vsub.f32 %v2195_v42, %v2202_v56  ;;  %v2292_v42 = vmul.f32 0.25, %v2285_v27 }
 0xcb4   : > { %v2132_v53 = vmul.f32 %v3466_v57, %v3462_v26 }
 0xcb5   : > { %v3468_v61 = vpop.eup %3467  ;;  %v2207_v62 = vmul.f32 1.442695, %v2204_v59 }
 0xcb6   : > { %3223 = vmatmul.msk.f32.gmra.mxu2 %vm1026_vm3, %v2132_v53  ;;  %v2209_v25 = vsel %vm1026_vm3, %v3468_v61, 0.0 }
 0xcb7   : > { %3469 = vpow2.f32 %v2207_v62  ;;  %2210 = vadd.xlane.f32.xlu0 %v2209_v25 }
 0xcbd   : > { %v3470_v0 = vpop.eup %3469 }
 0xcbe   : > { %3246 = vmatmul.msk.f32.vlgmr.msrb.gmra.mxu2 %vm784_vm5, %v4280_v2  ;;  %v2212_v3 = vsel %vm1026_vm3, %v3470_v0, 0.0 }
 0xcbf   : > { %2213 = vadd.xlane.f32.xlu1 %v2212_v3 }
 0xcc6   : > { %3247 = vmatmul.msk.f32.gmra.mxu2 %vm784_vm5, %v4291_v1 }
 0xcce   : > { %3248 = vmatmul.msk.f32.gmra.mxu2 %vm784_vm5, %v4302_v17 }
 0xcd6   : > { %3249 = vmatmul.msk.f32.gmra.mxu2 %vm784_vm5, %v4336_v43 }
 0xd2a   : > { %v2211_v4 = vpop.xlane.xlu0 %2210 }
 0xd2b   : > { %3471 = vrcp.f32 %v2211_v4 }
 0xd31   : > { %v3472_v7 = vpop.eup %3471  ;;  %v4420_v31 = vpop.f32.mrf.mxu2 }
 0xd32   : > { %v2217_v8 = vmul.f32 %v3472_v7, %v3468_v61  ;;  %v2214_v9 = vpop.xlane.xlu1 %2213 }
 0xd33   : > { %3473 = vrcp.f32 %v2214_v9 }
 0xd34   : > { %3228 = vmatmul.msk.f32.vlgmr.msrb.gmra.mxu0 %vm1026_vm3, %v2217_v8 }
 0xd39   : > { %v3474_v10 = vpop.eup %3473  ;;  %v4423_v11 = vpop.f32.mrf.mxu2 }
 0xd3a   : > { %v2218_v48 = vmul.f32 %v3474_v10, %v3470_v0 }
 0xd3c   : > { %3229 = vmatmul.msk.f32.gmra.mxu0 %vm1026_vm3, %v2218_v48  ;;  %v3231_v48 = vld [vmem:[%s4687_s12 + $0x28] sm:$0xff] }
 0xd41   : > { %v2321_v63 = vpop.f32.mrf.mxu2 }
 0xd42   : > { %v2322_v22 = vadd.f32 %v3385_v6, %v2321_v63  ;;  %v3230_v63 = vld [vmem:[%s4687_s12 + $0x20] sm:$0xff] }
 0xd49   : > { %v2324_v19 = vpop.f32.mrf.mxu2 }
 0xd4a   : > { %v2325_v16 = vadd.f32 %v3385_v6, %v2324_v19 }
 0xd4c   : > { %3259 = vmatpush.xpose.msk.msra.mxu0 %vm1026_vm3, %v2325_v16 }
 0xd50   : > { %3260 = vmatpush.xpose.msk.msra.mxu0 %vm1026_vm3, %v2322_v22  ;;  %v3272_v22 = vld [vmem:[%s4687_s12 + $0x38] sm:$0xff] }
 0xd51   : > { %v2327_v58 = vpop.f32.mrf.mxu2  ;;  %2573 = vmatpush.msra.mxu3 %v3272_v22 }
 0xd52   : > { %v2328_v28 = vadd.f32 %v3385_v6, %v2327_v58 }
 0xd53   : > { %3261 = vmatmul.msk.f32.vlgmr.msra.gmra.mxu0 %vm1026_vm3, %v2290_v14 }
 0xd54   : > { %2449 = vmatpush.msrb.mxu0 %v4394_v55 }
 0xd56   : > { %2450 = vmatpush.msrb.mxu0 %v4392_v33 }
 0xd58   : > { %2614 = vmatpush.msra.mxu0 %v3231_v48 }
 0xd59   : > { %v2330_v18 = vpop.f32.mrf.mxu2 }
 0xd5a   : > { %v2331_v26 = vadd.f32 %v3385_v6, %v2330_v18  ;;  %2615 = vmatpush.msra.mxu0 %v3230_v63  ;;  %v3271_v18 = vld [vmem:[%s4687_s12 + $0x30] sm:$0xff] }
 0xd5b   : > { %3262 = vmatmul.msk.f32.gmra.mxu0 %vm1026_vm3, %v2291_v24  ;;  %2574 = vmatpush.msra.mxu3 %v3271_v18 }
 0xd5c   : > { %3265 = vmatpush.xpose.msk.msrb.mxu1 %vm1026_vm3, %v2331_v26 }
 0xd60   : > { %3266 = vmatpush.xpose.msk.msrb.mxu1 %vm1026_vm3, %v2328_v28 }
 0xd63   : > { %3267 = vmatmul.msk.f32.vlgmr.msrb.gmra.mxu1 %vm1026_vm3, %v2292_v42  ;;  %v3386_v42 = vld [vmem:[%s4688_s13 + $0x1] ss:$0 sm:$0xff] }
 0xd6b   : > { %3268 = vmatmul.msk.f32.gmra.mxu1 %vm1026_vm3, %v2293_v32 }
 0xdb1   : > { %v4442_v33 = vpop.f32.mrf.mxu0 }
 0xdb9   : > { %v4444_v34 = vpop.f32.mrf.mxu0 }
 0xdd0   : > { %v2401_v55 = vpop.f32.mrf.mxu0 }
 0xdd1   : > { %v2402_v35 = vadd.f32 %v2401_v55, %v3967_v50 }
 0xdd3   : > { %v2407_v36 = vsel %vm1026_vm3, %v2402_v35, -inf }
 0xdd4   : > { %2408 = vmax.xlane.f32.xlu2 %v2407_v36 }
 0xdd8   : > { %v2404_v37 = vpop.f32.mrf.mxu0 }
 0xdd9   : > { %v2405_v38 = vadd.f32 %v2404_v37, %v3967_v50 }
 0xddb   : > { %v2410_v39 = vsel %vm1026_vm3, %v2405_v38, -inf }
 0xddc   : > { %2411 = vmax.xlane.f32.xlu0 %v2410_v39 }
 0xde0   : > { %v2487_v40 = vpop.f32.mrf.mxu1 }
 0xde1   : > { %v2488_v41 = vadd.f32 %v2487_v40, %v3973_v60 }
 0xde3   : > { %v2493_v44 = vsel %vm1026_vm3, %v2488_v41, -inf }
 0xde4   : > { %2494 = vmax.xlane.f32.xlu1 %v2493_v44 }
 0xde8   : > { %v2490_v46 = vpop.f32.mrf.mxu1 }
 0xde9   : > { %v2491_v49 = vadd.f32 %v2490_v46, %v3973_v60 }
 0xdeb   : > { %v2496_v47 = vsel %vm1026_vm3, %v2491_v49, -inf }
 0xdec   : > { %2497 = vmax.xlane.f32.xlu2 %v2496_v47 }
 0xe47   : > { %v2409_v51 = vpop.xlane.xlu2 %2408 }
 0xe48   : > { %v2413_v52 = vsub.f32 %v2402_v35, %v2409_v51 }
 0xe4a   : > { %v2415_v54 = vmul.f32 1.442695, %v2413_v52 }
 0xe4c   : > { %3475 = vpow2.f32 %v2415_v54 }
 0xe4f   : > { %v2412_v50 = vpop.xlane.xlu0 %2411 }
 0xe50   : > { %v2414_v5 = vsub.f32 %v2405_v38, %v2412_v50 }
 0xe52   : > { %v3476_v56 = vpop.eup %3475  ;;  %v2417_v57 = vmul.f32 1.442695, %v2414_v5 }
 0xe53   : > { %v2419_v59 = vsel %vm1026_vm3, %v3476_v56, 0.0 }
 0xe54   : > { %3477 = vpow2.f32 %v2417_v57  ;;  %2420 = vadd.xlane.f32.xlu0 %v2419_v59 }
 0xe57   : > { %v2495_v53 = vpop.xlane.xlu1 %2494 }
 0xe58   : > { %v2499_v61 = vsub.f32 %v2488_v41, %v2495_v53 }
 0xe5a   : > { %v3478_v62 = vpop.eup %3477  ;;  %v2501_v25 = vmul.f32 1.442695, %v2499_v61 }
 0xe5b   : > { %v2422_v60 = vsel %vm1026_vm3, %v3478_v62, 0.0 }
 0xe5c   : > { %3479 = vpow2.f32 %v2501_v25  ;;  %2423 = vadd.xlane.f32.xlu1 %v2422_v60 }
 0xe5f   : > { %v2498_v0 = vpop.xlane.xlu2 %2497 }
 0xe60   : > { %v2500_v3 = vsub.f32 %v2491_v49, %v2498_v0 }
 0xe62   : > { %v3480_v4 = vpop.eup %3479  ;;  %v2503_v7 = vmul.f32 1.442695, %v2500_v3 }
 0xe63   : > { %v2505_v8 = vsel %vm1026_vm3, %v3480_v4, 0.0 }
 0xe64   : > { %3481 = vpow2.f32 %v2503_v7  ;;  %2506 = vadd.xlane.f32.xlu2 %v2505_v8 }
 0xe6a   : > { %v3482_v9 = vpop.eup %3481 }
 0xe6b   : > { %v2508_v10 = vsel %vm1026_vm3, %v3482_v9, 0.0 }
 0xe6c   : > { %2509 = vadd.xlane.f32.xlu0 %v2508_v10 }
 0xec7   : > { %v2421_v12 = vpop.xlane.xlu0 %2420 }
 0xec8   : > { %3483 = vrcp.f32 %v2421_v12  ;;  %v3287_v12 = vld [vmem:[%s4689_s14 + $0x38] sm:$0xff] }
 0xec9   : > { %2782 = vmatpush.msra.mxu1 %v3287_v12  ;;  %v3295_v12 = vld [vmem:[%s4691_s16 + $0x50] sm:$0xff] }
 0xece   : > { %v3484_v6 = vpop.eup %3483 }
 0xecf   : > { %v2427_v15 = vmul.f32 %v3484_v6, %v3476_v56  ;;  %v2424_v19 = vpop.xlane.xlu1 %2423  ;;  %v3286_v6 = vld [vmem:[%s4689_s14 + $0x30] sm:$0xff] }
 0xed0   : > { %3485 = vrcp.f32 %v2424_v19  ;;  %2783 = vmatpush.msra.mxu1 %v3286_v6  ;;  %v3284_v19 = vld [vmem:[%s4689_s14 + $0x20] sm:$0xff]  ;;  %v3294_v6 = vld [vmem:[%s4691_s16 + $0x48] sm:$0xff] }
 0xed1   : > { %3263 = vmatmul.msk.f32.vlgmr.msrb.gmra.mxu0 %vm1026_vm3, %v2427_v15  ;;  %v3285_v15 = vld [vmem:[%s4689_s14 + $0x28] sm:$0xff] }
 0xed2   : > { %2784 = vmatpush.msra.mxu1 %v3285_v15  ;;  %v3293_v15 = vld [vmem:[%s4691_s16 + $0x40] sm:$0xff] }
 0xed4   : > { %2785 = vmatpush.msra.mxu1 %v3284_v19  ;;  %v3389_v19 = vld [vmem:[%s4690_s15 + $0x1] ss:$0 sm:$0xff] }
 0xed6   : > { %v3486_v16 = vpop.eup %3485 }
 0xed7   : > { %v2507_v20 = vpop.xlane.xlu2 %2506  ;;  %v2428_v21 = vmul.f32 %v3486_v16, %v3478_v62 }
 0xed8   : > { %3487 = vrcp.f32 %v2507_v20 }
 0xed9   : > { %3264 = vmatmul.msk.f32.gmra.mxu0 %vm1026_vm3, %v2428_v21 }
 0xede   : > { %v3488_v14 = vpop.eup %3487 }
 0xedf   : > { %v2513_v58 = vmul.f32 %v3488_v14, %v3480_v4  ;;  %v2510_v23 = vpop.xlane.xlu0 %2509 }
 0xee0   : > { %3489 = vrcp.f32 %v2510_v23 }
 0xee1   : > { %3269 = vmatmul.msk.f32.vlgmr.msra.gmra.mxu2 %vm1026_vm3, %v2513_v58  ;;  %3277 = vmatmul.msk.f32.vlgmr.msra.gmra.mxu0 %vm1026_vm3, %v4420_v31 }
 0xee6   : > { %v3490_v13 = vpop.eup %3489 }
 0xee7   : > { %v2514_v24 = vmul.f32 %v3490_v13, %v3482_v9 }
 0xee9   : > { %3270 = vmatmul.msk.f32.gmra.mxu2 %vm1026_vm3, %v2514_v24  ;;  %3278 = vmatmul.msk.f32.gmra.mxu0 %vm1026_vm3, %v4423_v11 }
 0xef1   : > { %3279 = vmatmul.msk.f32.gmra.mxu0 %vm1026_vm3, %v4442_v33 }
 0xef9   : > { %3280 = vmatmul.msk.f32.gmra.mxu0 %vm1026_vm3, %v4444_v34 }
 0xf4e   : > { %v2452_v26 = vpop.f32.mrf.mxu0 }
 0xf4f   : > { %3273 = vmatmul.msk.f32.vlgmr.msra.gmra.mxu3 %vm1026_vm3, %v2452_v26 }
 0xf56   : > { %v2455_v31 = vpop.f32.mrf.mxu0 }
 0xf57   : > { %3274 = vmatmul.msk.f32.gmra.mxu3 %vm1026_vm3, %v2455_v31 }
 0xf5e   : > { %v2617_v28 = vpop.f32.mrf.mxu0 }
 0xf64   : > { %v2538_v27 = vpop.f32.mrf.mxu2 }
 0xf65   : > { %3275 = vmatmul.msk.f32.gmra.mxu3 %vm1026_vm3, %v2538_v27 }
 0xf66   : > { %v2620_v55 = vpop.f32.mrf.mxu0 }
 0xf6c   : > { %v2541_v11 = vpop.f32.mrf.mxu2 }
 0xf6d   : > { %3276 = vmatmul.msk.f32.gmra.mxu3 %vm1026_vm3, %v2541_v11 }
 0xf6e   : > { %v2623_v40 = vpop.f32.mrf.mxu0 }
 0xf76   : > { %v2626_v47 = vpop.f32.mrf.mxu0 }
 0xfd2   : > { %v2576_v29 = vpop.f32.mrf.mxu3 }
 0xfd3   : > { %v2618_v30 = vadd.f32 %v2617_v28, %v2576_v29  ;;  %v3387_v28 = vld [vmem:[%s4693_s18 + $0x1] ss:$0 sm:$0xff] }
 0xfd5   : > { %v2634_v32 = vadd.f32 %v3386_v42, %v2618_v30 }
 0xfd7   : > { %v2638_v33 = vadd.f32 %v2634_v32, %v4280_v2  ;;  %v3388_v32 = vld [vmem:[%s4694_s19 + $0x1] ss:$0 sm:$0xff] }
 0xfd9   : > { %v2646_v34 = vsel %vm784_vm5, %v2638_v33, 0.0 }
 0xfda   : > { %2647 = vadd.xlane.f32.xlu1 %v2646_v34  ;;  %v2579_v35 = vpop.f32.mrf.mxu3 }
 0xfdb   : > { %v2621_v36 = vadd.f32 %v2620_v55, %v2579_v35 }
 0xfdd   : > { %v2635_v37 = vadd.f32 %v3386_v42, %v2621_v36 }
 0xfdf   : > { %v2639_v38 = vadd.f32 %v2635_v37, %v4291_v1 }
 0xfe1   : > { %v2649_v39 = vsel %vm784_vm5, %v2639_v38, 0.0 }
 0xfe2   : > { %2650 = vadd.xlane.f32.xlu2 %v2649_v39 }
 0xfe8   : > { %v2582_v41 = vpop.f32.mrf.mxu3 }
 0xfe9   : > { %v2624_v44 = vadd.f32 %v2623_v40, %v2582_v41 }
 0xfeb   : > { %v2636_v46 = vadd.f32 %v3386_v42, %v2624_v44 }
 0xfed   : > { %v2640_v49 = vadd.f32 %v2636_v46, %v4302_v17 }
 0xfef   : > { %v2652_v2 = vsel %vm784_vm5, %v2640_v49, 0.0 }
 0xff0   : > { %2653 = vadd.xlane.f32.xlu0 %v2652_v2  ;;  %v2585_v51 = vpop.f32.mrf.mxu3 }
 0xff1   : > { %v2627_v52 = vadd.f32 %v2626_v47, %v2585_v51 }
 0xff3   : > { %v2637_v54 = vadd.f32 %v3386_v42, %v2627_v52 }
 0xff5   : > { %v2641_v50 = vadd.f32 %v2637_v54, %v4336_v43 }
 0xff7   : > { %v2655_v1 = vsel %vm784_vm5, %v2641_v50, 0.0 }
 0xff8   : > { %2656 = vadd.xlane.f32.xlu1 %v2655_v1 }
0x104d   : > { %v2648_v5 = vpop.xlane.xlu1 %2647 }
0x104e   : > { %v2658_v56 = vmul.f32 %v2648_v5, %v3796_v45 }
0x1050   : > { %v2662_v57 = vsub.f32 %v2638_v33, %v2658_v56 }
0x1052   : > { %v2666_v59 = vmul.f32 %v2662_v57, %v2662_v57 }
0x1054   : > { %v2670_v53 = vsel %vm784_vm5, %v2666_v59, 0.0 }
0x1055   : > { %2671 = vadd.xlane.f32.xlu2 %v2670_v53  ;;  %v2651_v17 = vpop.xlane.xlu2 %2650 }
0x1056   : > { %v2659_v61 = vmul.f32 %v2651_v17, %v3796_v45 }
0x1058   : > { %v4500_v62 = vsub.f32 %v2639_v38, %v2659_v61 }
0x105a   : > { %v2667_v25 = vmul.f32 %v4500_v62, %v4500_v62 }
0x105c   : > { %v2673_v43 = vsel %vm784_vm5, %v2667_v25, 0.0 }
0x105d   : > { %2674 = vadd.xlane.f32.xlu0 %v2673_v43 }
0x1063   : > { %v2654_v60 = vpop.xlane.xlu0 %2653 }
0x1064   : > { %v2660_v0 = vmul.f32 %v2654_v60, %v3796_v45 }
0x1066   : > { %v4506_v3 = vsub.f32 %v2640_v49, %v2660_v0 }
0x1068   : > { %v2668_v4 = vmul.f32 %v4506_v3, %v4506_v3 }
0x106a   : > { %v2676_v7 = vsel %vm784_vm5, %v2668_v4, 0.0 }
0x106b   : > { %2677 = vadd.xlane.f32.xlu1 %v2676_v7  ;;  %v2657_v8 = vpop.xlane.xlu1 %2656 }
0x106c   : > { %v2661_v9 = vmul.f32 %v2657_v8, %v3796_v45 }
0x106e   : > { %v4512_v10 = vsub.f32 %v2641_v50, %v2661_v9  ;;  %v3299_v9 = vld [vmem:[%s4691_s16 + $0x70] sm:$0xff] }
0x1070   : > { %v2669_v48 = vmul.f32 %v4512_v10, %v4512_v10 }
0x1072   : > { %v2679_v63 = vsel %vm784_vm5, %v2669_v48, 0.0  ;;  %v3297_v48 = vld [vmem:[%s4691_s16 + $0x60] sm:$0xff] }
0x1073   : > { %2680 = vadd.xlane.f32.xlu2 %v2679_v63  ;;  %v3296_v63 = vld [vmem:[%s4691_s16 + $0x58] sm:$0xff] }
0x10c8   : > { %v2672_v16 = vpop.xlane.xlu2 %2671 }
0x10c9   : > { %v2682_v20 = vmul.f32 %v2672_v16, %v3796_v45 }
0x10cb   : > { %v2686_v21 = vadd.f32 1e-12, %v2682_v20 }
0x10cd   : > { %3491 = vrsqrt.f32 %v2686_v21  ;;  %vm2696_vm0 = vweird.f32 %v2686_v21 }
0x10d0   : > { %v2675_v22 = vpop.xlane.xlu0 %2674 }
0x10d1   : > { %v2683_v14 = vmul.f32 %v2675_v22, %v3796_v45 }
0x10d3   : > { %v3492_v58 = vpop.eup %3491  ;;  %v2687_v23 = vadd.f32 1e-12, %v2683_v14 }
0x10d4   : > { %v2691_v13 = vmul.f32 %v3492_v58, %v2686_v21  ;;  %vm2697_vm3 = vweird.f32 %v3492_v58 }
0x10d5   : > { %3493 = vrsqrt.f32 %v2687_v23  ;;  %vm2698_vm2 = vmor %vm2696_vm0, %vm2697_vm3  ;;  %vm2706_vm6 = vweird.f32 %v2687_v23 }
0x10d6   : > { %v2692_v24 = vmul.f32 %v3492_v58, %v2691_v13 }
0x10d8   : > { %v2693_v18 = vmul.f32 0.5, %v2692_v24 }
0x10da   : > { %v2694_v26 = vsub.f32 1.5, %v2693_v18 }
0x10db   : > { %v3494_v31 = vpop.eup %3493 }
0x10dc   : > { %v2695_v27 = vmul.f32 %v3492_v58, %v2694_v26  ;;  %v2701_v11 = vmul.f32 %v3494_v31, %v2687_v23  ;;  %vm2707_vm4 = vweird.f32 %v3494_v31 }
0x10dd   : > { %vm2708_vm7 = vmor %vm2706_vm6, %vm2707_vm4 }
0x10de   : > { %v2699_v42 = vsel %vm2698_vm2, %v3492_v58, %v2695_v27  ;;  %v2702_v29 = vmul.f32 %v3494_v31, %v2701_v11  ;;  %v2678_v30 = vpop.xlane.xlu1 %2677 }
0x10df   : > { %v2730_v33 = vmul.f32 %v2699_v42, %v2662_v57  ;;  %v2684_v34 = vmul.f32 %v2678_v30, %v3796_v45 }
0x10e0   : > { %v2703_v55 = vmul.f32 0.5, %v2702_v29 }
0x10e1   : > { %v2737_v35 = vmul.f32 %v3387_v28, %v2730_v33  ;;  %v2688_v36 = vadd.f32 1e-12, %v2684_v34 }
0x10e2   : > { %v2704_v37 = vsub.f32 1.5, %v2703_v55 }
0x10e3   : > { %v4538_v38 = vadd.f32 %v3388_v32, %v2737_v35  ;;  %3495 = vrsqrt.f32 %v2688_v36  ;;  %vm2716_vm9 = vweird.f32 %v2688_v36 }
0x10e4   : > { %v2705_v39 = vmul.f32 %v3494_v31, %v2704_v37 }
0x10e5   : > { %3289 = vmatmul.msk.f32.vlgmr.msra.gmra.mxu1 %vm784_vm5, %v4538_v38 }
0x10e6   : > { %v2709_v40 = vsel %vm2708_vm7, %v3494_v31, %v2705_v39  ;;  %v2681_v41 = vpop.xlane.xlu2 %2680 }
0x10e7   : > { %v2731_v44 = vmul.f32 %v2709_v40, %v4500_v62  ;;  %v2685_v46 = vmul.f32 %v2681_v41, %v3796_v45 }
0x10e9   : > { %v3496_v49 = vpop.eup %3495  ;;  %v2689_v2 = vadd.f32 1e-12, %v2685_v46  ;;  %v2738_v47 = vmul.f32 %v3387_v28, %v2731_v44 }
0x10ea   : > { %v2711_v51 = vmul.f32 %v3496_v49, %v2688_v36  ;;  %vm2717_vm8 = vweird.f32 %v3496_v49 }
0x10eb   : > { %3497 = vrsqrt.f32 %v2689_v2  ;;  %v4544_v52 = vadd.f32 %v3388_v32, %v2738_v47  ;;  %vm2718_vm10 = vmor %vm2716_vm9, %vm2717_vm8  ;;  %vm2726_vm12 = vweird.f32 %v2689_v2 }
0x10ec   : > { %v2712_v54 = vmul.f32 %v3496_v49, %v2711_v51 }
0x10ed   : > { %3290 = vmatmul.msk.f32.gmra.mxu1 %vm784_vm5, %v4544_v52 }
0x10ee   : > { %v2713_v50 = vmul.f32 0.5, %v2712_v54 }
0x10f0   : > { %v2714_v1 = vsub.f32 1.5, %v2713_v50 }
0x10f1   : > { %v3498_v5 = vpop.eup %3497 }
0x10f2   : > { %v2715_v56 = vmul.f32 %v3496_v49, %v2714_v1  ;;  %v2721_v57 = vmul.f32 %v3498_v5, %v2689_v2  ;;  %vm2727_vm11 = vweird.f32 %v3498_v5 }
0x10f3   : > { %vm2728_vm13 = vmor %vm2726_vm12, %vm2727_vm11 }
0x10f4   : > { %v2719_v59 = vsel %vm2718_vm10, %v3496_v49, %v2715_v56  ;;  %v2722_v53 = vmul.f32 %v3498_v5, %v2721_v57 }
0x10f5   : > { %v2732_v17 = vmul.f32 %v2719_v59, %v4506_v3  ;;  %v3300_v3 = vld [vmem:[%s4691_s16 + $0x78] sm:$0xff] }
0x10f6   : > { %v2723_v61 = vmul.f32 0.5, %v2722_v53  ;;  %2869 = vmatpush.msrb.mxu2 %v3300_v3 }
0x10f7   : > { %v2739_v62 = vmul.f32 %v3387_v28, %v2732_v17 }
0x10f8   : > { %v2724_v25 = vsub.f32 1.5, %v2723_v61  ;;  %2870 = vmatpush.msrb.mxu2 %v3299_v9 }
0x10f9   : > { %v4549_v43 = vadd.f32 %v3388_v32, %v2739_v62  ;;  %v3390_v62 = vld [vmem:[%s4692_s17 + $0x1] ss:$0 sm:$0xff] }
0x10fa   : > { %v2725_v60 = vmul.f32 %v3498_v5, %v2724_v25 }
0x10fb   : > { %3291 = vmatmul.msk.f32.gmra.mxu1 %vm784_vm5, %v4549_v43 }
0x10fc   : > { %v2729_v0 = vsel %vm2728_vm13, %v3498_v5, %v2725_v60 }
0x10fd   : > { %v2733_v4 = vmul.f32 %v2729_v0, %v4512_v10  ;;  %v3298_v10 = vld [vmem:[%s4691_s16 + $0x68] sm:$0xff] }
0x10fe   : > { %2871 = vmatpush.msrb.mxu2 %v3298_v10 }
0x10ff   : > { %v2740_v7 = vmul.f32 %v3387_v28, %v2733_v4 }
0x1100   : > { %2872 = vmatpush.msrb.mxu2 %v3297_v48 }
0x1101   : > { %v4554_v8 = vadd.f32 %v3388_v32, %v2740_v7 }
0x1102   : > { %2873 = vmatpush.msrb.mxu2 %v3296_v63 }
0x1103   : > { %3292 = vmatmul.msk.f32.gmra.mxu1 %vm784_vm5, %v4554_v8 }
0x1104   : > { %2874 = vmatpush.msrb.mxu2 %v3295_v12 }
0x1106   : > { %2875 = vmatpush.msrb.mxu2 %v3294_v6 }
0x1108   : > { %2876 = vmatpush.msrb.mxu2 %v3293_v15 }
0x1162   : > { %v2787_v16 = vpop.f32.mrf.mxu1 }
0x1163   : > { %v2788_v20 = vadd.f32 %v3389_v19, %v2787_v16 }
0x1165   : > { %v2803_v21 = vmul.f32 0.044715, %v2788_v20  ;;  %v2799_v42 = vmul.f32 0.5, %v2788_v20 }
0x1167   : > { %v2807_v22 = vmul.f32 %v2803_v21, %v2788_v20 }
0x1169   : > { %v2811_v14 = vmul.f32 %v2807_v22, %v2788_v20 }
0x116a   : > { %v2790_v58 = vpop.f32.mrf.mxu1 }
0x116b   : > { %v2815_v23 = vadd.f32 %v2811_v14, %v2788_v20  ;;  %v2791_v13 = vadd.f32 %v3389_v19, %v2790_v58 }
0x116d   : > { %v2819_v24 = vmul.f32 0.7978846, %v2815_v23  ;;  %v2804_v18 = vmul.f32 0.044715, %v2791_v13  ;;  %v2800_v36 = vmul.f32 0.5, %v2791_v13 }
0x116f   : > { %3499 = vtanh.f32 %v2819_v24  ;;  %v2808_v26 = vmul.f32 %v2804_v18, %v2791_v13 }
0x1171   : > { %v2812_v31 = vmul.f32 %v2808_v26, %v2791_v13 }
0x1173   : > { %v2816_v27 = vadd.f32 %v2812_v31, %v2791_v13 }
0x1175   : > { %v3500_v11 = vpop.eup %3499  ;;  %v2820_v28 = vmul.f32 0.7978846, %v2816_v27 }
0x1176   : > { %v2827_v29 = vadd.f32 1.0, %v3500_v11 }
0x1177   : > { %3501 = vtanh.f32 %v2820_v28 }
0x1178   : > { %v2831_v30 = vmul.f32 %v2827_v29, %v2799_v42  ;;  %v2793_v32 = vpop.f32.mrf.mxu1 }
0x1179   : > { %v2794_v33 = vadd.f32 %v3389_v19, %v2793_v32 }
0x117a   : > { %3302 = vmatmul.msk.f32.vlgmr.msrb.gmra.mxu2 %vm1793_vm1, %v2831_v30 }
0x117b   : > { %v2805_v34 = vmul.f32 0.044715, %v2794_v33  ;;  %v2801_v5 = vmul.f32 0.5, %v2794_v33 }
0x117d   : > { %v3502_v55 = vpop.eup %3501  ;;  %v2809_v35 = vmul.f32 %v2805_v34, %v2794_v33 }
0x117e   : > { %v2828_v37 = vadd.f32 1.0, %v3502_v55 }
0x117f   : > { %v2813_v39 = vmul.f32 %v2809_v35, %v2794_v33 }
0x1180   : > { %v2796_v40 = vpop.f32.mrf.mxu1  ;;  %v2832_v41 = vmul.f32 %v2828_v37, %v2800_v36 }
0x1181   : > { %v2797_v44 = vadd.f32 %v3389_v19, %v2796_v40  ;;  %v2817_v46 = vadd.f32 %v2813_v39, %v2794_v33 }
0x1182   : > { %3303 = vmatmul.msk.f32.gmra.mxu2 %vm1793_vm1, %v2832_v41 }
0x1183   : > { %v2806_v49 = vmul.f32 0.044715, %v2797_v44  ;;  %v2821_v2 = vmul.f32 0.7978846, %v2817_v46  ;;  %v2802_v53 = vmul.f32 0.5, %v2797_v44 }
0x1185   : > { %v2810_v47 = vmul.f32 %v2806_v49, %v2797_v44  ;;  %3503 = vtanh.f32 %v2821_v2 }
0x1187   : > { %v2814_v51 = vmul.f32 %v2810_v47, %v2797_v44  ;;  %v3391_v47 = vld [vmem:[%s4695_s20 + $0x1] ss:$0 sm:$0xff] }
0x1189   : > { %v2818_v54 = vadd.f32 %v2814_v51, %v2797_v44 }
0x118b   : > { %v3504_v50 = vpop.eup %3503  ;;  %v2822_v1 = vmul.f32 0.7978846, %v2818_v54 }
0x118c   : > { %v2829_v56 = vadd.f32 1.0, %v3504_v50 }
0x118d   : > { %3505 = vtanh.f32 %v2822_v1  ;;  %v3392_v1 = vld [vmem:[%s4696_s21 + $0x1] ss:$0 sm:$0xff] }
0x118e   : > { %v2833_v57 = vmul.f32 %v2829_v56, %v2801_v5 }
0x1190   : > { %3304 = vmatmul.msk.f32.gmra.mxu2 %vm1793_vm1, %v2833_v57 }
0x1193   : > { %v3506_v59 = vpop.eup %3505 }
0x1194   : > { %v2830_v17 = vadd.f32 1.0, %v3506_v59 }
0x1196   : > { %v2834_v61 = vmul.f32 %v2830_v17, %v2802_v53 }
0x1198   : > { %3305 = vmatmul.msk.f32.gmra.mxu2 %vm1793_vm1, %v2834_v61 }
0x11fd   : > { %v2878_v25 = vpop.f32.mrf.mxu2 }
0x11fe   : > { %v2879_v60 = vadd.f32 %v3390_v62, %v2878_v25 }
0x1200   : > { %v2890_v0 = vadd.f32 %v2879_v60, %v4538_v38 }
0x1202   : > { %v2898_v4 = vsel %vm784_vm5, %v2890_v0, 0.0 }
0x1203   : > { %2899 = vadd.xlane.f32.xlu0 %v2898_v4 }
0x1205   : > { %v2881_v7 = vpop.f32.mrf.mxu2 }
0x1206   : > { %v2882_v3 = vadd.f32 %v3390_v62, %v2881_v7 }
0x1208   : > { %v2891_v9 = vadd.f32 %v2882_v3, %v4544_v52 }
0x120a   : > { %v2901_v10 = vsel %vm784_vm5, %v2891_v9, 0.0 }
0x120b   : > { %2902 = vadd.xlane.f32.xlu1 %v2901_v10 }
0x1213   : > { %v2884_v48 = vpop.f32.mrf.mxu2 }
0x1214   : > { %v2885_v63 = vadd.f32 %v3390_v62, %v2884_v48 }
0x1216   : > { %v2892_v12 = vadd.f32 %v2885_v63, %v4549_v43 }
0x1218   : > { %v2904_v6 = vsel %vm784_vm5, %v2892_v12, 0.0 }
0x1219   : > { %2905 = vadd.xlane.f32.xlu2 %v2904_v6 }
0x121b   : > { %v2887_v15 = vpop.f32.mrf.mxu2 }
0x121c   : > { %v2888_v19 = vadd.f32 %v3390_v62, %v2887_v15 }
0x121e   : > { %v2893_v38 = vadd.f32 %v2888_v19, %v4554_v8 }
0x1220   : > { %v2907_v16 = vsel %vm784_vm5, %v2893_v38, 0.0 }
0x1221   : > { %2908 = vadd.xlane.f32.xlu0 %v2907_v16 }
0x1276   : > { %v2900_v20 = vpop.xlane.xlu0 %2899 }
0x1277   : > { %v2910_v52 = vmul.f32 %v2900_v20, %v3796_v45 }
0x1279   : > { %v2914_v21 = vsub.f32 %v2890_v0, %v2910_v52 }
0x127b   : > { %v2918_v22 = vmul.f32 %v2914_v21, %v2914_v21 }
0x127d   : > { %v2922_v14 = vsel %vm784_vm5, %v2918_v22, 0.0 }
0x127e   : > { %v2903_v58 = vpop.xlane.xlu1 %2902  ;;  %2923 = vadd.xlane.f32.xlu1 %v2922_v14 }
0x127f   : > { %v2911_v43 = vmul.f32 %v2903_v58, %v3796_v45 }
0x1281   : > { %v2915_v23 = vsub.f32 %v2891_v9, %v2911_v43 }
0x1283   : > { %v2919_v13 = vmul.f32 %v2915_v23, %v2915_v23 }
0x1285   : > { %v2925_v24 = vsel %vm784_vm5, %v2919_v13, 0.0 }
0x1286   : > { %2926 = vadd.xlane.f32.xlu2 %v2925_v24 }
0x128c   : > { %v2906_v8 = vpop.xlane.xlu2 %2905 }
0x128d   : > { %v2912_v18 = vmul.f32 %v2906_v8, %v3796_v45 }
0x128f   : > { %v4605_v26 = vsub.f32 %v2892_v12, %v2912_v18 }
0x1291   : > { %v2920_v31 = vmul.f32 %v4605_v26, %v4605_v26 }
0x1293   : > { %v2928_v27 = vsel %vm784_vm5, %v2920_v31, 0.0 }
0x1294   : > { %v2909_v11 = vpop.xlane.xlu0 %2908  ;;  %2929 = vadd.xlane.f32.xlu0 %v2928_v27 }
0x1295   : > { %v2913_v28 = vmul.f32 %v2909_v11, %v3796_v45 }
0x1297   : > { %v4611_v42 = vsub.f32 %v2893_v38, %v2913_v28 }
0x1299   : > { %v2921_v29 = vmul.f32 %v4611_v42, %v4611_v42 }
0x129b   : > { %v2931_v30 = vsel %vm784_vm5, %v2921_v29, 0.0 }
0x129c   : > { %2932 = vadd.xlane.f32.xlu1 %v2931_v30 }
0x12f1   : > { %v2924_v32 = vpop.xlane.xlu1 %2923 }
0x12f2   : > { %v2934_v33 = vmul.f32 %v2924_v32, %v3796_v45 }
0x12f4   : > { %v2938_v34 = vadd.f32 1e-12, %v2934_v33 }
0x12f6   : > { %3507 = vrsqrt.f32 %v2938_v34  ;;  %vm2948_vm14 = vweird.f32 %v2938_v34 }
0x12f9   : > { %v2927_v55 = vpop.xlane.xlu2 %2926 }
0x12fa   : > { %v2935_v35 = vmul.f32 %v2927_v55, %v3796_v45 }
0x12fc   : > { %v3508_v36 = vpop.eup %3507  ;;  %v2939_v37 = vadd.f32 1e-12, %v2935_v35 }
0x12fd   : > { %v2943_v39 = vmul.f32 %v3508_v36, %v2938_v34  ;;  %vm2949_vm1 = vweird.f32 %v3508_v36 }
0x12fe   : > { %3509 = vrsqrt.f32 %v2939_v37  ;;  %vm2950_vm15 = vmor %vm2948_vm14, %vm2949_vm1  ;;  %vm2958_vm0 = vweird.f32 %v2939_v37 }
0x12ff   : > { %v2944_v40 = vmul.f32 %v3508_v36, %v2943_v39 }
0x1301   : > { %v2945_v41 = vmul.f32 0.5, %v2944_v40 }
0x1303   : > { %v2946_v44 = vsub.f32 1.5, %v2945_v41 }
0x1304   : > { %v3510_v46 = vpop.eup %3509 }
0x1305   : > { %v2947_v49 = vmul.f32 %v3508_v36, %v2946_v44  ;;  %v2953_v2 = vmul.f32 %v3510_v46, %v2939_v37  ;;  %vm2959_vm3 = vweird.f32 %v3510_v46 }
0x1306   : > { %vm2960_vm2 = vmor %vm2958_vm0, %vm2959_vm3 }
0x1307   : > { %v2951_v51 = vsel %vm2950_vm15, %v3508_v36, %v2947_v49  ;;  %v2954_v54 = vmul.f32 %v3510_v46, %v2953_v2  ;;  %v2930_v50 = vpop.xlane.xlu0 %2929 }
0x1308   : > { %v2982_v5 = vmul.f32 %v2951_v51, %v2914_v21  ;;  %v2936_v56 = vmul.f32 %v2930_v50, %v3796_v45 }
0x1309   : > { %v2955_v57 = vmul.f32 0.5, %v2954_v54 }
0x130a   : > { %v2989_v59 = vmul.f32 %v3391_v47, %v2982_v5  ;;  %v2940_v53 = vadd.f32 1e-12, %v2936_v56 }
0x130b   : > { %v2956_v17 = vsub.f32 1.5, %v2955_v57 }
0x130c   : > { %v2996_v61 = vadd.f32 %v3392_v1, %v2989_v59  ;;  %3511 = vrsqrt.f32 %v2940_v53  ;;  %vm2968_vm6 = vweird.f32 %v2940_v53 }
0x130d   : > { %v2957_v62 = vmul.f32 %v3510_v46, %v2956_v17 }
0x130e   : > { %3000 = vst.msk [vmem:[%s4628_s24] sm:$0xff] %vm784_vm5, %v2996_v61 }
0x130f   : > { %v2961_v25 = vsel %vm2960_vm2, %v3510_v46, %v2957_v62  ;;  %v2933_v60 = vpop.xlane.xlu1 %2932 }
0x1310   : > { %v2983_v0 = vmul.f32 %v2961_v25, %v2915_v23  ;;  %v2937_v4 = vmul.f32 %v2933_v60, %v3796_v45 }
0x1312   : > { %v3512_v7 = vpop.eup %3511  ;;  %v2990_v3 = vmul.f32 %v3391_v47, %v2983_v0  ;;  %v2941_v9 = vadd.f32 1e-12, %v2937_v4 }
0x1313   : > { %v2963_v10 = vmul.f32 %v3512_v7, %v2940_v53  ;;  %vm2969_vm4 = vweird.f32 %v3512_v7 }
0x1314   : > { %v2997_v48 = vadd.f32 %v3392_v1, %v2990_v3  ;;  %3513 = vrsqrt.f32 %v2941_v9  ;;  %vm2970_vm7 = vmor %vm2968_vm6, %vm2969_vm4  ;;  %vm2978_vm9 = vweird.f32 %v2941_v9 }
0x1315   : > { %v2964_v63 = vmul.f32 %v3512_v7, %v2963_v10 }
0x1316   : > { %3001 = vst.msk [vmem:[%s4628_s24 + $0x8] sm:$0xff] %vm784_vm5, %v2997_v48 }
0x1317   : > { %v2965_v12 = vmul.f32 0.5, %v2964_v63 }
0x1319   : > { %v2966_v6 = vsub.f32 1.5, %v2965_v12 }
0x131a   : > { %v3514_v15 = vpop.eup %3513 }
0x131b   : > { %v2967_v19 = vmul.f32 %v3512_v7, %v2966_v6  ;;  %v2973_v38 = vmul.f32 %v3514_v15, %v2941_v9  ;;  %vm2979_vm8 = vweird.f32 %v3514_v15 }
0x131c   : > { %vm2980_vm10 = vmor %vm2978_vm9, %vm2979_vm8 }
0x131d   : > { %v2971_v45 = vsel %vm2970_vm7, %v3512_v7, %v2967_v19  ;;  %v2974_v16 = vmul.f32 %v3514_v15, %v2973_v38 }
0x131e   : > { %v2984_v20 = vmul.f32 %v2971_v45, %v4605_v26 }
0x131f   : > { %v2975_v52 = vmul.f32 0.5, %v2974_v16 }
0x1320   : > { %v2991_v21 = vmul.f32 %v3391_v47, %v2984_v20 }
0x1321   : > { %v2976_v22 = vsub.f32 1.5, %v2975_v52 }
0x1322   : > { %v2998_v14 = vadd.f32 %v3392_v1, %v2991_v21 }
0x1323   : > { %v2977_v58 = vmul.f32 %v3514_v15, %v2976_v22 }
0x1324   : > { %3002 = vst.msk [vmem:[%s4628_s24 + $0x10] sm:$0xff] %vm784_vm5, %v2998_v14 }
0x1325   : > { %v2981_v43 = vsel %vm2980_vm10, %v3514_v15, %v2977_v58 }
0x1326   : > { %v2985_v23 = vmul.f32 %v2981_v43, %v4611_v42 }
0x1328   : > { %v2992_v13 = vmul.f32 %v3391_v47, %v2985_v23 }
0x132a   : > { %v2999_v24 = vadd.f32 %v3392_v1, %v2992_v13 }
0x132c   : > { %3003 = vst.msk [vmem:[%s4628_s24 + $0x18] sm:$0xff] %vm784_vm5, %v2999_v24 }
0x132d   : > { %3542 = shalt.err (!%p3539_p3)
}
0x132e   : > { %s3582_s2 = smov 128   ;;  %s3583_s24 = smov 8  }
0x132f   : > { %3319 = dma.vmem_to_hbm [thread:$0]  (%p3737_p5), %s3018_s1, 512, %s3020_s4, %s3005_s5, %s3582_s2, %s3582_s2, %s3583_s24  }
0x1330 PF: > { %s4742_s8 = sld [smem:[#allocation7_spill]] }
0x1331   : > { %s4743_s9 = sld [smem:[#allocation5_spill]] }
0x1336   : > { %p3325_p4 = scmp.ge.s32.totalorder %s4742_s8, 2 }
0x1337   : > { %s3034_s3 = sand.u32 1, %s4743_s9  }
0x1338   : > { %p3322_p7 = pnand %p3325_p4, %p3741_p6  ;;  %s3035_s7 = scalar_lea.sflag [#allocation3], %s3034_s3 }
0x133a   : > { %p3323_p8 = pneg %p3322_p7 }
0x133c   : > { %3560 = dma.done.wait (%p3323_p8), %s3035_s7, 512  }
0x133d   : > { %3562 = vsyncadd (%p3323_p8), %s3035_s7, 4294966784  ;;  %s4745_s30 = sld [smem:[#allocation8_spill]]  ;;  %s4748_s3 = smov %s3569_s28 }
0x133e   : > { %s4746_s29 = sld [smem:[#allocation6_spill]] }
0x133f   : > { %s4747_s25 = sld [smem:[#allocation9_spill]] }
0x1343   : > { %p32_p9 = scmp.ge.s32.totalorder %s4745_s30, 4  }
0x1344   : > { %s4749_s28 = smov %s4746_s29 }
0x1345   : > { %s4750_s29 = smov %s4747_s25  ;;  %34 = sbr.rel (!%p32_p9) target bundleno = 15 (0xf), region = 176 }
0x134a   :  { %3041 = vsyncpa [#allocation3], 1 }
0x134b   :  { %3043 = vsyncpa [#allocation3 + $0x1], 1 }

</bundles_post_ra>
